<compile_context>
chip_gen: v7x
topology: tpu7x:2x2x1
jax: 0.10.0
libtpu: 0.0.40
codegen_flags: <defaults>
</compile_context>

<pallas_src>
import functools

import jax
import jax.numpy as jnp
import numpy as np
from jax.experimental import pallas as pl
from jax.experimental.pallas import tpu as pltpu

BN_EPS = 1e-5

# (kernel_size K, dilation d, padding p, out_channels Cout) per encoder conv.
_CONV_CFG = ((7, 2, 6, 128), (5, 4, 8, 256), (3, 8, 8, 128))


# ----------------------------------------------------------------------------
# Kernel helpers (traced inside the Pallas kernel)
# ----------------------------------------------------------------------------
def _bn_relu(a, g, be):
    """Train-mode BatchNorm1d over rows + ReLU, two-pass f32 statistics.

    a: (N, C) f32; g, be: (1, C) f32.  Biased variance, eps=1e-5, matching
    PyTorch training-mode BN.  Two-pass (mean, then centered variance) avoids
    the E[x^2]-E[x]^2 cancellation of the previous one-pass version.
    """
    inv_n = 1.0 / a.shape[0]
    mean = jnp.sum(a, axis=0, keepdims=True) * inv_n
    c = a - mean
    var = jnp.sum(c * c, axis=0, keepdims=True) * inv_n
    return jnp.maximum(c * (g * jax.lax.rsqrt(var + BN_EPS)) + be, 0.0)


# ----------------------------------------------------------------------------
# Fused Pallas kernel: encoder (3 convs + BN + ReLU + pool) + proj_head
# ----------------------------------------------------------------------------
def _mixup_fused_kernel(col1_ref, w1_ref, b1_ref, g1_ref, be1_ref,
                        w2p_ref, w2l_ref, b2_ref, g2_ref, be2_ref,
                        w3_ref, b3_ref, g3_ref, be3_ref,
                        pw1_ref, pb1_ref, pg_ref, pbe_ref,
                        pw2_ref, pb2_ref,
                        out_ref, h_ref,
                        y1pd_ref, y2pd_ref, *, B, L):
    bf16 = jnp.bfloat16
    N = B * L
    C1 = _CONV_CFG[0][3]
    K2, D2, P2, C2 = _CONV_CFG[1]
    K3, D3, P3, C3 = _CONV_CFG[2]

    # -- layer 1: Conv1d(n_in,128,k=7,d=2,p=6) as one (N, 7*n_in) MXU dot ----
    a1 = jnp.dot(col1_ref[...], w1_ref[...],
                 preferred_element_type=jnp.float32) + b1_ref[...]
    y1 = _bn_relu(a1, g1_ref[...], be1_ref[...])                  # (N,128) f32
    y1 = y1.astype(bf16).reshape(B, L, C1)

    # -- layer 2: Conv1d(128,256,k=5,d=4,p=8) as tap-pair MXU dots -----------
    # Doubled-channel padded scratch: lanes [0,C1) hold y1 shifted down by P2
    # rows, lanes [C1,2*C1) hold y1 unshifted, so one contiguous slice at row
    # offset k*D2 feeds the tap pair (k, k+2) as a single 256-deep contraction.
    # Only the padding edges are zeroed; every store is 8-row/128-lane aligned.
    y1pd_ref[:, 0:P2, 0:C1] = jnp.zeros((B, P2, C1), bf16)
    y1pd_ref[:, P2 + L:, 0:C1] = jnp.zeros((B, P2, C1), bf16)
    y1pd_ref[:, L:, C1:] = jnp.zeros((B, 2 * P2, C1), bf16)
    y1pd_ref[:, P2:P2 + L, 0:C1] = y1
    y1pd_ref[:, 0:L, C1:] = y1

    a2 = b2_ref[...]                                              # (1,256) f32
    for k in range(2):                       # pairs (0,2) and (1,3): 256-deep
        pair = y1pd_ref[:, k * D2:k * D2 + L, :].reshape(N, 2 * C1)
        a2 = a2 + jnp.dot(pair, w2p_ref[k],
                          preferred_element_type=jnp.float32)
    last = y1pd_ref[:, (K2 - 1) * D2:(K2 - 1) * D2 + L, 0:C1].reshape(N, C1)
    a2 = a2 + jnp.dot(last, w2l_ref[...], preferred_element_type=jnp.float32)
    y2 = _bn_relu(a2, g2_ref[...], be2_ref[...])                  # (N,256) f32
    y2 = y2.astype(bf16).reshape(B, L, C2)

    # -- layer 3: Conv1d(256,128,k=3,d=8,p=8) as per-tap (256-deep) dots -----
    y2pd_ref[:, 0:P3, :] = jnp.zeros((B, P3, C2), bf16)
    y2pd_ref[:, P3 + L:, :] = jnp.zeros((B, P3, C2), bf16)
    y2pd_ref[:, P3:P3 + L, :] = y2

    a3 = b3_ref[...]                                              # (1,128) f32
    for k in range(K3):                      # row offsets 0/8/16, all aligned
        tap = y2pd_ref[:, k * D3:k * D3 + L, :].reshape(N, C2)
        a3 = a3 + jnp.dot(tap, w3_ref[k], preferred_element_type=jnp.float32)
    y3 = _bn_relu(a3, g3_ref[...], be3_ref[...])                  # (N,128) f32

    # -- AdaptiveAvgPool1d(1) + Flatten --------------------------------------
    h = jnp.mean(y3.reshape(B, L, C3), axis=1)                    # (B,128) f32
    h_ref[...] = h

    # -- proj_head: Linear -> BN -> ReLU -> Linear ---------------------------
    z = jnp.dot(h.astype(bf16), pw1_ref[...],
                preferred_element_type=jnp.float32) + pb1_ref[...]
    z = _bn_relu(z, pg_ref[...], pbe_ref[...])
    out_ref[...] = jnp.dot(z.astype(bf16), pw2_ref[...],
                           preferred_element_type=jnp.float32) + pb2_ref[...]


# ----------------------------------------------------------------------------
# Wrapper (layout, tiny layer-1 im2col, tap-pair weight packing, VMEM budget)
# ----------------------------------------------------------------------------
def _vmem():
    return pl.BlockSpec(memory_space=pltpu.MemorySpace.VMEM)


def _vmem_limit_bytes(B, L):
    """Derive the Mosaic VMEM limit from the kernel's per-row live set."""
    # y1pd + y2pd (bf16, ~1 KiB/row) + lane-padded col1 (~0.25 KiB/row)
    # + ~3 KiB/row of f32 accumulator / centered-BN temporaries,
    # + a few MiB for weights and compiler slack.
    est = B * L * (2 * 512 + 256 + 3 * 1024) + (4 << 20)
    try:
        cap = int(0.8 * pltpu.get_tpu_info().vmem_capacity_bytes)
    except Exception:        # non-TPU trace / older jax: assume v7x (64 MiB)
        cap = 48 << 20
    return int(min(max(est, 32 << 20), max(cap, 32 << 20)))


def mixup_forward(params, x):
    """x: (B, n_in, T) in PyTorch NCL layout.  Returns (out, h), both (B,128)."""
    B, n_in, T = x.shape
    L = T
    for K, d, p, _ in _CONV_CFG:            # these convs are length-preserving
        assert T + 2 * p - d * (K - 1) == T, "conv hyper-params changed"
    # TODO(synk): support T % 8 != 0 (pad T and mask the mean-pool denominator).
    assert T % 8 == 0, "T must be a multiple of 8 (sublane tile)"

    f32, bf16 = jnp.float32, jnp.bfloat16
    K1, D1, P1, C1 = _CONV_CFG[0]
    _, _, P2, C2 = _CONV_CFG[1]
    _, _, P3, _ = _CONV_CFG[2]

    xt = jnp.transpose(x, (0, 2, 1)).astype(f32)                 # (B, T, n_in)

    # Layer-1 im2col on the tiny raw input (K1*n_in = 28 columns, ~56 B/row of
    # HBM): keeps layer 1 as one proven (N,28)x(28,128) MXU dot.
    xp = jnp.pad(xt, ((0, 0), (P1, P1), (0, 0)))
    col1 = jnp.concatenate(
        [xp[:, k * D1:k * D1 + L, :] for k in range(K1)], axis=-1)
    col1 = col1.reshape(B * L, K1 * n_in).astype(bf16)

    row = lambda v: v.reshape(1, -1).astype(f32)
    w1 = params["w1"].reshape(K1 * n_in, C1).astype(bf16)        # (28, 128)
    w2 = params["w2"].astype(bf16)                               # (5, 128, 256)
    # Pre-pair layer-2 taps (0,2) and (1,3) along Cin -> 256-deep contractions.
    w2p = jnp.stack([jnp.concatenate([w2[0], w2[2]], axis=0),
                     jnp.concatenate([w2[1], w2[3]], axis=0)], axis=0)
    w2l = w2[4]                                                  # (128, 256)
    w3 = params["w3"].astype(bf16)                               # (3, 256, 128)
    pw1 = params["pw1"].astype(bf16)
    pw2 = params["pw2"].astype(bf16)

    inputs = (
        col1, w1, row(params["b1"]), row(params["g1"]), row(params["be1"]),
        w2p, w2l, row(params["b2"]), row(params["g2"]), row(params["be2"]),
        w3, row(params["b3"]), row(params["g3"]), row(params["be3"]),
        pw1, row(params["pb1"]), row(params["pg"]), row(params["pbe"]),
        pw2, row(params["pb2"]))

    kernel = functools.partial(_mixup_fused_kernel, B=B, L=L)
    out, h = pl.pallas_call(
        kernel,
        out_shape=(jax.ShapeDtypeStruct((B, 128), f32),
                   jax.ShapeDtypeStruct((B, 128), f32)),
        in_specs=[_vmem()] * len(inputs),
        out_specs=(_vmem(), _vmem()),
        scratch_shapes=[
            pltpu.VMEM((B, L + 2 * P2, 2 * C1), bf16),   # layer-2 paired pad
            pltpu.VMEM((B, L + 2 * P3, C2), bf16)],      # layer-3 padded act
        compiler_params=pltpu.CompilerParams(
            vmem_limit_bytes=_vmem_limit_bytes(B, L)),
    )(*inputs)
    return out, h


# ----------------------------------------------------------------------------
# Deterministic parameter init (PyTorch-style uniform(-1/sqrt(fan_in), ...))
# Conv weights stored as (K, Cin, Cout); linear weights as (Din, Dout).
# ----------------------------------------------------------------------------
def init_params(key, n_in):
    def conv_w(k, K, cin, cout):
        bound = 1.0 / np.sqrt(cin * K)
        return jax.random.uniform(k, (K, cin, cout), jnp.float32, -bound, bound)

    def lin_w(k, din, dout):
        bound = 1.0 / np.sqrt(din)
        return jax.random.uniform(k, (din, dout), jnp.float32, -bound, bound)

    def bias(k, fan_in, n):
        bound = 1.0 / np.sqrt(fan_in)
        return jax.random.uniform(k, (n,), jnp.float32, -bound, bound)

    ks = jax.random.split(key, 10)
    return {
        "w1": conv_w(ks[0], 7, n_in, 128), "b1": bias(ks[1], n_in * 7, 128),
        "g1": jnp.ones((128,), jnp.float32), "be1": jnp.zeros((128,), jnp.float32),
        "w2": conv_w(ks[2], 5, 128, 256), "b2": bias(ks[3], 128 * 5, 256),
        "g2": jnp.ones((256,), jnp.float32), "be2": jnp.zeros((256,), jnp.float32),
        "w3": conv_w(ks[4], 3, 256, 128), "b3": bias(ks[5], 256 * 3, 128),
        "g3": jnp.ones((128,), jnp.float32), "be3": jnp.zeros((128,), jnp.float32),
        "pw1": lin_w(ks[6], 128, 128), "pb1": bias(ks[7], 128, 128),
        "pg": jnp.ones((128,), jnp.float32), "pbe": jnp.zeros((128,), jnp.float32),
        "pw2": lin_w(ks[8], 128, 128), "pb2": bias(ks[9], 128, 128),
    }


# ----------------------------------------------------------------------------
# Pure-JAX reference.  cast_bf16=True mirrors the kernel's bf16 MXU operands
# (logic check); cast_bf16=False is the full-f32 PyTorch-semantics reference.
# ----------------------------------------------------------------------------
def _ref_conv_bn_relu(x, w, b, g, be, *, dilation, padding, pool, dt):
    B, L, Cin = x.shape
    K, _, Cout = w.shape
    l_out = L + 2 * padding - dilation * (K - 1)
    xp = jnp.pad(x.astype(dt), ((0, 0), (padding, padding), (0, 0)))
    wc = w.astype(dt)
    acc = jnp.zeros((B, l_out, Cout), jnp.float32)
    for k in range(K):
        acc = acc + jnp.einsum("blc,cd->bld",
                               xp[:, k * dilation:k * dilation + l_out, :],
                               wc[k], preferred_element_type=jnp.float32)
    acc = acc + b
    flat = acc.reshape(B * l_out, Cout)
    mean = jnp.mean(flat, axis=0)
    var = jnp.mean(jnp.square(flat - mean), axis=0)
    y = (acc - mean) * jax.lax.rsqrt(var + BN_EPS) * g + be
    y = jnp.maximum(y, 0.0)
    return jnp.mean(y, axis=1) if pool else y


def mixup_forward_ref(params, x, *, cast_bf16):
    dt = jnp.bfloat16 if cast_bf16 else jnp.float32
    xt = jnp.transpose(x, (0, 2, 1)).astype(jnp.float32)
    h = _ref_conv_bn_relu(xt, params["w1"], params["b1"], params["g1"],
                          params["be1"], dilation=2, padding=6, pool=False, dt=dt)
    h = _ref_conv_bn_relu(h, params["w2"], params["b2"], params["g2"],
                          params["be2"], dilation=4, padding=8, pool=False, dt=dt)
    h = _ref_conv_bn_relu(h, params["w3"], params["b3"], params["g3"],
                          params["be3"], dilation=8, padding=8, pool=True, dt=dt)
    z = jnp.dot(h.astype(dt), params["pw1"].astype(dt),
                preferred_element_type=jnp.float32) + params["pb1"]
    mean = jnp.mean(z, axis=0)
    var = jnp.mean(jnp.square(z - mean), axis=0)
    z = (z - mean) * jax.lax.rsqrt(var + BN_EPS) * params["pg"] + params["pbe"]
    z = jnp.maximum(z, 0.0)
    out = jnp.dot(z.astype(dt), params["pw2"].astype(dt),
                  preferred_element_type=jnp.float32) + params["pb2"]
    return out, h


# ----------------------------------------------------------------------------
if __name__ == "__main__":
    key = jax.random.PRNGKey(0)
    k_x, k_p = jax.random.split(key)

    B, n_in, T = 8, 4, 16          # batch_size=8 like the module; small series
    x = jax.random.normal(k_x, (B, n_in, T), jnp.float32)   # NCL, like PyTorch
    params = init_params(k_p, n_in)

    fwd = jax.jit(mixup_forward)
    out, h = fwd(params, x)
    out = jax.block_until_ready(out)
    h = jax.block_until_ready(h)
    assert out.shape == (B, 128) and h.shape == (B, 128)

    # Strict logic check against a reference using the same bf16 MXU operands.
    out_bf, h_bf = mixup_forward_ref(params, x, cast_bf16=True)
    np.testing.assert_allclose(np.asarray(h), np.asarray(h_bf),
                               rtol=2e-2, atol=2e-3)
    np.testing.assert_allclose(np.asarray(out), np.asarray(out_bf),
                               rtol=2e-2, atol=2e-3)

    # Loose check against the full-f32 reference (difference = bf16 rounding).
    out_f, h_f = mixup_forward_ref(params, x, cast_bf16=False)
    np.testing.assert_allclose(np.asarray(h), np.asarray(h_f),
                               rtol=1e-1, atol=5e-2)
    np.testing.assert_allclose(np.asarray(out), np.asarray(out_f),
                               rtol=1e-1, atol=5e-2)

    print("KERNEL_OK")
</pallas_src>

<mosaic_0001>
module attributes {stable_mosaic.version = 11 : i64} {
  func.func @_mixup_fused_kernel(%arg0: memref<128x28xbf16, #tpu.memory_space<vmem>>, %arg1: memref<28x128xbf16, #tpu.memory_space<vmem>>, %arg2: memref<1x128xf32, #tpu.memory_space<vmem>>, %arg3: memref<1x128xf32, #tpu.memory_space<vmem>>, %arg4: memref<1x128xf32, #tpu.memory_space<vmem>>, %arg5: memref<2x256x256xbf16, #tpu.memory_space<vmem>>, %arg6: memref<128x256xbf16, #tpu.memory_space<vmem>>, %arg7: memref<1x256xf32, #tpu.memory_space<vmem>>, %arg8: memref<1x256xf32, #tpu.memory_space<vmem>>, %arg9: memref<1x256xf32, #tpu.memory_space<vmem>>, %arg10: memref<3x256x128xbf16, #tpu.memory_space<vmem>>, %arg11: memref<1x128xf32, #tpu.memory_space<vmem>>, %arg12: memref<1x128xf32, #tpu.memory_space<vmem>>, %arg13: memref<1x128xf32, #tpu.memory_space<vmem>>, %arg14: memref<128x128xbf16, #tpu.memory_space<vmem>>, %arg15: memref<1x128xf32, #tpu.memory_space<vmem>>, %arg16: memref<1x128xf32, #tpu.memory_space<vmem>>, %arg17: memref<1x128xf32, #tpu.memory_space<vmem>>, %arg18: memref<128x128xbf16, #tpu.memory_space<vmem>>, %arg19: memref<1x128xf32, #tpu.memory_space<vmem>>, %arg20: memref<8x128xf32, #tpu.memory_space<vmem>>, %arg21: memref<8x128xf32, #tpu.memory_space<vmem>>, %arg22: memref<8x32x256xbf16, #tpu.memory_space<vmem>>, %arg23: memref<8x32x256xbf16, #tpu.memory_space<vmem>>) attributes {dimension_semantics = [], scalar_prefetch = 0 : i64, scratch_operands = 2 : i64, tpu.core_type = #tpu.core_type<tc>} {
    %c0 = arith.constant 0 : index
    %c0_0 = arith.constant 0 : index
    %0 = vector.load %arg0[%c0, %c0_0] : memref<128x28xbf16, #tpu.memory_space<vmem>>, vector<128x28xbf16>
    %c0_1 = arith.constant 0 : index
    %c0_2 = arith.constant 0 : index
    %1 = vector.load %arg1[%c0_1, %c0_2] : memref<28x128xbf16, #tpu.memory_space<vmem>>, vector<28x128xbf16>
    %cst = arith.constant dense<0.000000e+00> : vector<128x128xf32>
    %2 = tpu.matmul %0, %1, %cst {dimension_numbers = #tpu.dot_dimension_numbers<[1], [0], [0], [1], [0, 0, 1, 1], [], []>} : vector<128x28xbf16>, vector<28x128xbf16>, vector<128x128xf32> -> vector<128x128xf32>
    %c0_3 = arith.constant 0 : index
    %c0_4 = arith.constant 0 : index
    %3 = vector.load %arg2[%c0_3, %c0_4] : memref<1x128xf32, #tpu.memory_space<vmem>>, vector<1x128xf32>
    %4 = vector.broadcast %3 : vector<1x128xf32> to vector<128x128xf32>
    %5 = arith.addf %2, %4 : vector<128x128xf32>
    %c0_5 = arith.constant 0 : index
    %c0_6 = arith.constant 0 : index
    %6 = vector.load %arg3[%c0_5, %c0_6] : memref<1x128xf32, #tpu.memory_space<vmem>>, vector<1x128xf32>
    %c0_7 = arith.constant 0 : index
    %c0_8 = arith.constant 0 : index
    %7 = vector.load %arg4[%c0_7, %c0_8] : memref<1x128xf32, #tpu.memory_space<vmem>>, vector<1x128xf32>
    %cst_9 = arith.constant dense<0.000000e+00> : vector<128xf32>
    %8 = vector.multi_reduction <add>, %5, %cst_9 [0] : vector<128x128xf32> to vector<128xf32>
    %9 = vector.shape_cast %8 : vector<128xf32> to vector<1x128xf32>
    %cst_10 = arith.constant 7.812500e-03 : f32
    %10 = vector.broadcast %cst_10 : f32 to vector<1x128xf32>
    %11 = arith.mulf %9, %10 : vector<1x128xf32>
    %12 = vector.broadcast %11 : vector<1x128xf32> to vector<128x128xf32>
    %13 = arith.subf %5, %12 : vector<128x128xf32>
    %14 = arith.mulf %13, %13 : vector<128x128xf32>
    %cst_11 = arith.constant dense<0.000000e+00> : vector<128xf32>
    %15 = vector.multi_reduction <add>, %14, %cst_11 [0] : vector<128x128xf32> to vector<128xf32>
    %16 = vector.shape_cast %15 : vector<128xf32> to vector<1x128xf32>
    %cst_12 = arith.constant 7.812500e-03 : f32
    %17 = vector.broadcast %cst_12 : f32 to vector<1x128xf32>
    %18 = arith.mulf %16, %17 : vector<1x128xf32>
    %cst_13 = arith.constant 9.99999974E-6 : f32
    %19 = vector.broadcast %cst_13 : f32 to vector<1x128xf32>
    %20 = arith.addf %18, %19 : vector<1x128xf32>
    %21 = math.rsqrt %20 : vector<1x128xf32>
    %22 = arith.mulf %6, %21 : vector<1x128xf32>
    %23 = vector.broadcast %22 : vector<1x128xf32> to vector<128x128xf32>
    %24 = arith.mulf %13, %23 : vector<128x128xf32>
    %25 = vector.broadcast %7 : vector<1x128xf32> to vector<128x128xf32>
    %26 = arith.addf %24, %25 : vector<128x128xf32>
    %cst_14 = arith.constant 0.000000e+00 : f32
    %27 = vector.broadcast %cst_14 : f32 to vector<128x128xf32>
    %28 = arith.maximumf %26, %27 : vector<128x128xf32>
    %29 = arith.truncf %28 : vector<128x128xf32> to vector<128x128xbf16>
    %30 = vector.shape_cast %29 : vector<128x128xbf16> to vector<8x16x128xbf16>
    %cst_15 = arith.constant 0.000000e+00 : bf16
    %31 = vector.broadcast %cst_15 : bf16 to vector<8x8x128xbf16>
    %c0_16 = arith.constant 0 : index
    %c0_17 = arith.constant 0 : index
    %c0_18 = arith.constant 0 : index
    %32 = vector.load %arg22[%c0_16, %c0_17, %c0_18] : memref<8x32x256xbf16, #tpu.memory_space<vmem>>, vector<8x8x128xbf16>
    tpu.vector_store %arg22[%c0_16, %c0_17, %c0_18], %31 {strides = array<i32>} : memref<8x32x256xbf16, #tpu.memory_space<vmem>>, vector<8x8x128xbf16>,
    %cst_19 = arith.constant 0.000000e+00 : bf16
    %33 = vector.broadcast %cst_19 : bf16 to vector<8x8x128xbf16>
    %c0_20 = arith.constant 0 : index
    %c24 = arith.constant 24 : index
    %c0_21 = arith.constant 0 : index
    %34 = vector.load %arg22[%c0_20, %c24, %c0_21] : memref<8x32x256xbf16, #tpu.memory_space<vmem>>, vector<8x8x128xbf16>
    tpu.vector_store %arg22[%c0_20, %c24, %c0_21], %33 {strides = array<i32>} : memref<8x32x256xbf16, #tpu.memory_space<vmem>>, vector<8x8x128xbf16>,
    %cst_22 = arith.constant 0.000000e+00 : bf16
    %35 = vector.broadcast %cst_22 : bf16 to vector<8x16x128xbf16>
    %c0_23 = arith.constant 0 : index
    %c16 = arith.constant 16 : index
    %c128 = arith.constant 128 : index
    %36 = vector.load %arg22[%c0_23, %c16, %c128] : memref<8x32x256xbf16, #tpu.memory_space<vmem>>, vector<8x16x128xbf16>
    tpu.vector_store %arg22[%c0_23, %c16, %c128], %35 {strides = array<i32>} : memref<8x32x256xbf16, #tpu.memory_space<vmem>>, vector<8x16x128xbf16>,
    %c0_24 = arith.constant 0 : index
    %c8 = arith.constant 8 : index
    %c0_25 = arith.constant 0 : index
    %37 = vector.load %arg22[%c0_24, %c8, %c0_25] : memref<8x32x256xbf16, #tpu.memory_space<vmem>>, vector<8x16x128xbf16>
    tpu.vector_store %arg22[%c0_24, %c8, %c0_25], %30 {strides = array<i32>} : memref<8x32x256xbf16, #tpu.memory_space<vmem>>, vector<8x16x128xbf16>,
    %c0_26 = arith.constant 0 : index
    %c0_27 = arith.constant 0 : index
    %c128_28 = arith.constant 128 : index
    %38 = vector.load %arg22[%c0_26, %c0_27, %c128_28] : memref<8x32x256xbf16, #tpu.memory_space<vmem>>, vector<8x16x128xbf16>
    tpu.vector_store %arg22[%c0_26, %c0_27, %c128_28], %30 {strides = array<i32>} : memref<8x32x256xbf16, #tpu.memory_space<vmem>>, vector<8x16x128xbf16>,
    %c0_29 = arith.constant 0 : index
    %c0_30 = arith.constant 0 : index
    %39 = vector.load %arg7[%c0_29, %c0_30] : memref<1x256xf32, #tpu.memory_space<vmem>>, vector<1x256xf32>
    %c0_31 = arith.constant 0 : index
    %c0_32 = arith.constant 0 : index
    %c0_33 = arith.constant 0 : index
    %40 = vector.load %arg22[%c0_31, %c0_32, %c0_33] : memref<8x32x256xbf16, #tpu.memory_space<vmem>>, vector<8x16x256xbf16>
    %41 = vector.shape_cast %40 : vector<8x16x256xbf16> to vector<128x256xbf16>
    %c0_34 = arith.constant 0 : index
    %c0_35 = arith.constant 0 : index
    %c0_36 = arith.constant 0 : index
    %42 = vector.load %arg5[%c0_34, %c0_35, %c0_36] : memref<2x256x256xbf16, #tpu.memory_space<vmem>>, vector<1x256x256xbf16>
    %43 = vector.shape_cast %42 : vector<1x256x256xbf16> to vector<256x256xbf16>
    %cst_37 = arith.constant dense<0.000000e+00> : vector<128x256xf32>
    %44 = tpu.matmul %41, %43, %cst_37 {dimension_numbers = #tpu.dot_dimension_numbers<[1], [0], [0], [1], [0, 0, 1, 1], [], []>} : vector<128x256xbf16>, vector<256x256xbf16>, vector<128x256xf32> -> vector<128x256xf32>
    %45 = vector.broadcast %39 : vector<1x256xf32> to vector<128x256xf32>
    %46 = arith.addf %45, %44 : vector<128x256xf32>
    %c0_38 = arith.constant 0 : index
    %c4 = arith.constant 4 : index
    %c0_39 = arith.constant 0 : index
    %47 = vector.load %arg22[%c0_38, %c4, %c0_39] : memref<8x32x256xbf16, #tpu.memory_space<vmem>>, vector<8x16x256xbf16>
    %48 = vector.shape_cast %47 : vector<8x16x256xbf16> to vector<128x256xbf16>
    %c1 = arith.constant 1 : index
    %c0_40 = arith.constant 0 : index
    %c0_41 = arith.constant 0 : index
    %49 = vector.load %arg5[%c1, %c0_40, %c0_41] : memref<2x256x256xbf16, #tpu.memory_space<vmem>>, vector<1x256x256xbf16>
    %50 = vector.shape_cast %49 : vector<1x256x256xbf16> to vector<256x256xbf16>
    %cst_42 = arith.constant dense<0.000000e+00> : vector<128x256xf32>
    %51 = tpu.matmul %48, %50, %cst_42 {dimension_numbers = #tpu.dot_dimension_numbers<[1], [0], [0], [1], [0, 0, 1, 1], [], []>} : vector<128x256xbf16>, vector<256x256xbf16>, vector<128x256xf32> -> vector<128x256xf32>
    %52 = arith.addf %46, %51 : vector<128x256xf32>
    %c0_43 = arith.constant 0 : index
    %c16_44 = arith.constant 16 : index
    %c0_45 = arith.constant 0 : index
    %53 = vector.load %arg22[%c0_43, %c16_44, %c0_45] : memref<8x32x256xbf16, #tpu.memory_space<vmem>>, vector<8x16x128xbf16>
    %54 = vector.shape_cast %53 : vector<8x16x128xbf16> to vector<128x128xbf16>
    %c0_46 = arith.constant 0 : index
    %c0_47 = arith.constant 0 : index
    %55 = vector.load %arg6[%c0_46, %c0_47] : memref<128x256xbf16, #tpu.memory_space<vmem>>, vector<128x256xbf16>
    %cst_48 = arith.constant dense<0.000000e+00> : vector<128x256xf32>
    %56 = tpu.matmul %54, %55, %cst_48 {dimension_numbers = #tpu.dot_dimension_numbers<[1], [0], [0], [1], [0, 0, 1, 1], [], []>} : vector<128x128xbf16>, vector<128x256xbf16>, vector<128x256xf32> -> vector<128x256xf32>
    %57 = arith.addf %52, %56 : vector<128x256xf32>
    %c0_49 = arith.constant 0 : index
    %c0_50 = arith.constant 0 : index
    %58 = vector.load %arg8[%c0_49, %c0_50] : memref<1x256xf32, #tpu.memory_space<vmem>>, vector<1x256xf32>
    %c0_51 = arith.constant 0 : index
    %c0_52 = arith.constant 0 : index
    %59 = vector.load %arg9[%c0_51, %c0_52] : memref<1x256xf32, #tpu.memory_space<vmem>>, vector<1x256xf32>
    %cst_53 = arith.constant dense<0.000000e+00> : vector<256xf32>
    %60 = vector.multi_reduction <add>, %57, %cst_53 [0] : vector<128x256xf32> to vector<256xf32>
    %61 = vector.shape_cast %60 : vector<256xf32> to vector<1x256xf32>
    %cst_54 = arith.constant 7.812500e-03 : f32
    %62 = vector.broadcast %cst_54 : f32 to vector<1x256xf32>
    %63 = arith.mulf %61, %62 : vector<1x256xf32>
    %64 = vector.broadcast %63 : vector<1x256xf32> to vector<128x256xf32>
    %65 = arith.subf %57, %64 : vector<128x256xf32>
    %66 = arith.mulf %65, %65 : vector<128x256xf32>
    %cst_55 = arith.constant dense<0.000000e+00> : vector<256xf32>
    %67 = vector.multi_reduction <add>, %66, %cst_55 [0] : vector<128x256xf32> to vector<256xf32>
    %68 = vector.shape_cast %67 : vector<256xf32> to vector<1x256xf32>
    %cst_56 = arith.constant 7.812500e-03 : f32
    %69 = vector.broadcast %cst_56 : f32 to vector<1x256xf32>
    %70 = arith.mulf %68, %69 : vector<1x256xf32>
    %cst_57 = arith.constant 9.99999974E-6 : f32
    %71 = vector.broadcast %cst_57 : f32 to vector<1x256xf32>
    %72 = arith.addf %70, %71 : vector<1x256xf32>
    %73 = math.rsqrt %72 : vector<1x256xf32>
    %74 = arith.mulf %58, %73 : vector<1x256xf32>
    %75 = vector.broadcast %74 : vector<1x256xf32> to vector<128x256xf32>
    %76 = arith.mulf %65, %75 : vector<128x256xf32>
    %77 = vector.broadcast %59 : vector<1x256xf32> to vector<128x256xf32>
    %78 = arith.addf %76, %77 : vector<128x256xf32>
    %cst_58 = arith.constant 0.000000e+00 : f32
    %79 = vector.broadcast %cst_58 : f32 to vector<128x256xf32>
    %80 = arith.maximumf %78, %79 : vector<128x256xf32>
    %81 = arith.truncf %80 : vector<128x256xf32> to vector<128x256xbf16>
    %82 = vector.shape_cast %81 : vector<128x256xbf16> to vector<8x16x256xbf16>
    %cst_59 = arith.constant 0.000000e+00 : bf16
    %83 = vector.broadcast %cst_59 : bf16 to vector<8x8x256xbf16>
    %c0_60 = arith.constant 0 : index
    %c0_61 = arith.constant 0 : index
    %c0_62 = arith.constant 0 : index
    %84 = vector.load %arg23[%c0_60, %c0_61, %c0_62] : memref<8x32x256xbf16, #tpu.memory_space<vmem>>, vector<8x8x256xbf16>
    tpu.vector_store %arg23[%c0_60, %c0_61, %c0_62], %83 {strides = array<i32>} : memref<8x32x256xbf16, #tpu.memory_space<vmem>>, vector<8x8x256xbf16>,
    %cst_63 = arith.constant 0.000000e+00 : bf16
    %85 = vector.broadcast %cst_63 : bf16 to vector<8x8x256xbf16>
    %c0_64 = arith.constant 0 : index
    %c24_65 = arith.constant 24 : index
    %c0_66 = arith.constant 0 : index
    %86 = vector.load %arg23[%c0_64, %c24_65, %c0_66] : memref<8x32x256xbf16, #tpu.memory_space<vmem>>, vector<8x8x256xbf16>
    tpu.vector_store %arg23[%c0_64, %c24_65, %c0_66], %85 {strides = array<i32>} : memref<8x32x256xbf16, #tpu.memory_space<vmem>>, vector<8x8x256xbf16>,
    %c0_67 = arith.constant 0 : index
    %c8_68 = arith.constant 8 : index
    %c0_69 = arith.constant 0 : index
    %87 = vector.load %arg23[%c0_67, %c8_68, %c0_69] : memref<8x32x256xbf16, #tpu.memory_space<vmem>>, vector<8x16x256xbf16>
    tpu.vector_store %arg23[%c0_67, %c8_68, %c0_69], %82 {strides = array<i32>} : memref<8x32x256xbf16, #tpu.memory_space<vmem>>, vector<8x16x256xbf16>,
    %c0_70 = arith.constant 0 : index
    %c0_71 = arith.constant 0 : index
    %88 = vector.load %arg11[%c0_70, %c0_71] : memref<1x128xf32, #tpu.memory_space<vmem>>, vector<1x128xf32>
    %c0_72 = arith.constant 0 : index
    %c0_73 = arith.constant 0 : index
    %c0_74 = arith.constant 0 : index
    %89 = vector.load %arg23[%c0_72, %c0_73, %c0_74] : memref<8x32x256xbf16, #tpu.memory_space<vmem>>, vector<8x16x256xbf16>
    %90 = vector.shape_cast %89 : vector<8x16x256xbf16> to vector<128x256xbf16>
    %c0_75 = arith.constant 0 : index
    %c0_76 = arith.constant 0 : index
    %c0_77 = arith.constant 0 : index
    %91 = vector.load %arg10[%c0_75, %c0_76, %c0_77] : memref<3x256x128xbf16, #tpu.memory_space<vmem>>, vector<1x256x128xbf16>
    %92 = vector.shape_cast %91 : vector<1x256x128xbf16> to vector<256x128xbf16>
    %cst_78 = arith.constant dense<0.000000e+00> : vector<128x128xf32>
    %93 = tpu.matmul %90, %92, %cst_78 {dimension_numbers = #tpu.dot_dimension_numbers<[1], [0], [0], [1], [0, 0, 1, 1], [], []>} : vector<128x256xbf16>, vector<256x128xbf16>, vector<128x128xf32> -> vector<128x128xf32>
    %94 = vector.broadcast %88 : vector<1x128xf32> to vector<128x128xf32>
    %95 = arith.addf %94, %93 : vector<128x128xf32>
    %c0_79 = arith.constant 0 : index
    %c8_80 = arith.constant 8 : index
    %c0_81 = arith.constant 0 : index
    %96 = vector.load %arg23[%c0_79, %c8_80, %c0_81] : memref<8x32x256xbf16, #tpu.memory_space<vmem>>, vector<8x16x256xbf16>
    %97 = vector.shape_cast %96 : vector<8x16x256xbf16> to vector<128x256xbf16>
    %c1_82 = arith.constant 1 : index
    %c0_83 = arith.constant 0 : index
    %c0_84 = arith.constant 0 : index
    %98 = vector.load %arg10[%c1_82, %c0_83, %c0_84] : memref<3x256x128xbf16, #tpu.memory_space<vmem>>, vector<1x256x128xbf16>
    %99 = vector.shape_cast %98 : vector<1x256x128xbf16> to vector<256x128xbf16>
    %cst_85 = arith.constant dense<0.000000e+00> : vector<128x128xf32>
    %100 = tpu.matmul %97, %99, %cst_85 {dimension_numbers = #tpu.dot_dimension_numbers<[1], [0], [0], [1], [0, 0, 1, 1], [], []>} : vector<128x256xbf16>, vector<256x128xbf16>, vector<128x128xf32> -> vector<128x128xf32>
    %101 = arith.addf %95, %100 : vector<128x128xf32>
    %c0_86 = arith.constant 0 : index
    %c16_87 = arith.constant 16 : index
    %c0_88 = arith.constant 0 : index
    %102 = vector.load %arg23[%c0_86, %c16_87, %c0_88] : memref<8x32x256xbf16, #tpu.memory_space<vmem>>, vector<8x16x256xbf16>
    %103 = vector.shape_cast %102 : vector<8x16x256xbf16> to vector<128x256xbf16>
    %c2 = arith.constant 2 : index
    %c0_89 = arith.constant 0 : index
    %c0_90 = arith.constant 0 : index
    %104 = vector.load %arg10[%c2, %c0_89, %c0_90] : memref<3x256x128xbf16, #tpu.memory_space<vmem>>, vector<1x256x128xbf16>
    %105 = vector.shape_cast %104 : vector<1x256x128xbf16> to vector<256x128xbf16>
    %cst_91 = arith.constant dense<0.000000e+00> : vector<128x128xf32>
    %106 = tpu.matmul %103, %105, %cst_91 {dimension_numbers = #tpu.dot_dimension_numbers<[1], [0], [0], [1], [0, 0, 1, 1], [], []>} : vector<128x256xbf16>, vector<256x128xbf16>, vector<128x128xf32> -> vector<128x128xf32>
    %107 = arith.addf %101, %106 : vector<128x128xf32>
    %c0_92 = arith.constant 0 : index
    %c0_93 = arith.constant 0 : index
    %108 = vector.load %arg12[%c0_92, %c0_93] : memref<1x128xf32, #tpu.memory_space<vmem>>, vector<1x128xf32>
    %c0_94 = arith.constant 0 : index
    %c0_95 = arith.constant 0 : index
    %109 = vector.load %arg13[%c0_94, %c0_95] : memref<1x128xf32, #tpu.memory_space<vmem>>, vector<1x128xf32>
    %cst_96 = arith.constant dense<0.000000e+00> : vector<128xf32>
    %110 = vector.multi_reduction <add>, %107, %cst_96 [0] : vector<128x128xf32> to vector<128xf32>
    %111 = vector.shape_cast %110 : vector<128xf32> to vector<1x128xf32>
    %cst_97 = arith.constant 7.812500e-03 : f32
    %112 = vector.broadcast %cst_97 : f32 to vector<1x128xf32>
    %113 = arith.mulf %111, %112 : vector<1x128xf32>
    %114 = vector.broadcast %113 : vector<1x128xf32> to vector<128x128xf32>
    %115 = arith.subf %107, %114 : vector<128x128xf32>
    %116 = arith.mulf %115, %115 : vector<128x128xf32>
    %cst_98 = arith.constant dense<0.000000e+00> : vector<128xf32>
    %117 = vector.multi_reduction <add>, %116, %cst_98 [0] : vector<128x128xf32> to vector<128xf32>
    %118 = vector.shape_cast %117 : vector<128xf32> to vector<1x128xf32>
    %cst_99 = arith.constant 7.812500e-03 : f32
    %119 = vector.broadcast %cst_99 : f32 to vector<1x128xf32>
    %120 = arith.mulf %118, %119 : vector<1x128xf32>
    %cst_100 = arith.constant 9.99999974E-6 : f32
    %121 = vector.broadcast %cst_100 : f32 to vector<1x128xf32>
    %122 = arith.addf %120, %121 : vector<1x128xf32>
    %123 = math.rsqrt %122 : vector<1x128xf32>
    %124 = arith.mulf %108, %123 : vector<1x128xf32>
    %125 = vector.broadcast %124 : vector<1x128xf32> to vector<128x128xf32>
    %126 = arith.mulf %115, %125 : vector<128x128xf32>
    %127 = vector.broadcast %109 : vector<1x128xf32> to vector<128x128xf32>
    %128 = arith.addf %126, %127 : vector<128x128xf32>
    %cst_101 = arith.constant 0.000000e+00 : f32
    %129 = vector.broadcast %cst_101 : f32 to vector<128x128xf32>
    %130 = arith.maximumf %128, %129 : vector<128x128xf32>
    %131 = vector.shape_cast %130 : vector<128x128xf32> to vector<8x16x128xf32>
    %cst_102 = arith.constant dense<0.000000e+00> : vector<8x128xf32>
    %132 = vector.multi_reduction <add>, %131, %cst_102 [1] : vector<8x16x128xf32> to vector<8x128xf32>
    %cst_103 = arith.constant 1.600000e+01 : f32
    %133 = vector.broadcast %cst_103 : f32 to vector<8x128xf32>
    %134 = arith.divf %132, %133 : vector<8x128xf32>
    %c0_104 = arith.constant 0 : index
    %c0_105 = arith.constant 0 : index
    %135 = vector.load %arg21[%c0_104, %c0_105] : memref<8x128xf32, #tpu.memory_space<vmem>>, vector<8x128xf32>
    tpu.vector_store %arg21[%c0_104, %c0_105], %134 {strides = array<i32>} : memref<8x128xf32, #tpu.memory_space<vmem>>, vector<8x128xf32>,
    %136 = arith.truncf %134 : vector<8x128xf32> to vector<8x128xbf16>
    %c0_106 = arith.constant 0 : index
    %c0_107 = arith.constant 0 : index
    %137 = vector.load %arg14[%c0_106, %c0_107] : memref<128x128xbf16, #tpu.memory_space<vmem>>, vector<128x128xbf16>
    %cst_108 = arith.constant dense<0.000000e+00> : vector<8x128xf32>
    %138 = tpu.matmul %136, %137, %cst_108 {dimension_numbers = #tpu.dot_dimension_numbers<[1], [0], [0], [1], [0, 0, 1, 1], [], []>} : vector<8x128xbf16>, vector<128x128xbf16>, vector<8x128xf32> -> vector<8x128xf32>
    %c0_109 = arith.constant 0 : index
    %c0_110 = arith.constant 0 : index
    %139 = vector.load %arg15[%c0_109, %c0_110] : memref<1x128xf32, #tpu.memory_space<vmem>>, vector<1x128xf32>
    %140 = vector.broadcast %139 : vector<1x128xf32> to vector<8x128xf32>
    %141 = arith.addf %138, %140 : vector<8x128xf32>
    %c0_111 = arith.constant 0 : index
    %c0_112 = arith.constant 0 : index
    %142 = vector.load %arg16[%c0_111, %c0_112] : memref<1x128xf32, #tpu.memory_space<vmem>>, vector<1x128xf32>
    %c0_113 = arith.constant 0 : index
    %c0_114 = arith.constant 0 : index
    %143 = vector.load %arg17[%c0_113, %c0_114] : memref<1x128xf32, #tpu.memory_space<vmem>>, vector<1x128xf32>
    %cst_115 = arith.constant dense<0.000000e+00> : vector<128xf32>
    %144 = vector.multi_reduction <add>, %141, %cst_115 [0] : vector<8x128xf32> to vector<128xf32>
    %145 = vector.shape_cast %144 : vector<128xf32> to vector<1x128xf32>
    %cst_116 = arith.constant 1.250000e-01 : f32
    %146 = vector.broadcast %cst_116 : f32 to vector<1x128xf32>
    %147 = arith.mulf %145, %146 : vector<1x128xf32>
    %148 = vector.broadcast %147 : vector<1x128xf32> to vector<8x128xf32>
    %149 = arith.subf %141, %148 : vector<8x128xf32>
    %150 = arith.mulf %149, %149 : vector<8x128xf32>
    %cst_117 = arith.constant dense<0.000000e+00> : vector<128xf32>
    %151 = vector.multi_reduction <add>, %150, %cst_117 [0] : vector<8x128xf32> to vector<128xf32>
    %152 = vector.shape_cast %151 : vector<128xf32> to vector<1x128xf32>
    %cst_118 = arith.constant 1.250000e-01 : f32
    %153 = vector.broadcast %cst_118 : f32 to vector<1x128xf32>
    %154 = arith.mulf %152, %153 : vector<1x128xf32>
    %cst_119 = arith.constant 9.99999974E-6 : f32
    %155 = vector.broadcast %cst_119 : f32 to vector<1x128xf32>
    %156 = arith.addf %154, %155 : vector<1x128xf32>
    %157 = math.rsqrt %156 : vector<1x128xf32>
    %158 = arith.mulf %142, %157 : vector<1x128xf32>
    %159 = vector.broadcast %158 : vector<1x128xf32> to vector<8x128xf32>
    %160 = arith.mulf %149, %159 : vector<8x128xf32>
    %161 = vector.broadcast %143 : vector<1x128xf32> to vector<8x128xf32>
    %162 = arith.addf %160, %161 : vector<8x128xf32>
    %cst_120 = arith.constant 0.000000e+00 : f32
    %163 = vector.broadcast %cst_120 : f32 to vector<8x128xf32>
    %164 = arith.maximumf %162, %163 : vector<8x128xf32>
    %165 = arith.truncf %164 : vector<8x128xf32> to vector<8x128xbf16>
    %c0_121 = arith.constant 0 : index
    %c0_122 = arith.constant 0 : index
    %166 = vector.load %arg18[%c0_121, %c0_122] : memref<128x128xbf16, #tpu.memory_space<vmem>>, vector<128x128xbf16>
    %cst_123 = arith.constant dense<0.000000e+00> : vector<8x128xf32>
    %167 = tpu.matmul %165, %166, %cst_123 {dimension_numbers = #tpu.dot_dimension_numbers<[1], [0], [0], [1], [0, 0, 1, 1], [], []>} : vector<8x128xbf16>, vector<128x128xbf16>, vector<8x128xf32> -> vector<8x128xf32>
    %c0_124 = arith.constant 0 : index
    %c0_125 = arith.constant 0 : index
    %168 = vector.load %arg19[%c0_124, %c0_125] : memref<1x128xf32, #tpu.memory_space<vmem>>, vector<1x128xf32>
    %169 = vector.broadcast %168 : vector<1x128xf32> to vector<8x128xf32>
    %170 = arith.addf %167, %169 : vector<8x128xf32>
    %c0_126 = arith.constant 0 : index
    %c0_127 = arith.constant 0 : index
    %171 = vector.load %arg20[%c0_126, %c0_127] : memref<8x128xf32, #tpu.memory_space<vmem>>, vector<8x128xf32>
    tpu.vector_store %arg20[%c0_126, %c0_127], %170 {strides = array<i32>} : memref<8x128xf32, #tpu.memory_space<vmem>>, vector<8x128xf32>,
    return
  }
}

</mosaic_0001>

<bundles_post_ra>
// kernel: mixup_forward.1
= control target key start
LH: loop header
LB: loop body
LE: loop exit
PB: predicated region body
PF: predicated region fallthrough
CT: control target
= control target key end

     0   :  { %s5763_s0 = inlined_call_operand.vmem [shape: bf16[128,28], index: 0, kind: input, shape index: {}]   ;;  %s5764_s1 = inlined_call_operand.vmem [shape: bf16[28,128], index: 1, kind: input, shape index: {}]   ;;  %s5765_s2 = inlined_call_operand.vmem [shape: f32[1,128], index: 2, kind: input, shape index: {}]   ;;  %s5766_s3 = inlined_call_operand.vmem [shape: f32[1,128], index: 3, kind: input, shape index: {}]   ;;  %s5767_s4 = inlined_call_operand.vmem [shape: f32[1,128], index: 4, kind: input, shape index: {}]   ;;  %s5768_s5 = inlined_call_operand.vmem [shape: bf16[2,256,256], index: 5, kind: input, shape index: {}]   ;;  %s5769_s6 = inlined_call_operand.vmem [shape: bf16[128,256], index: 6, kind: input, shape index: {}]   ;;  %s5770_s7 = inlined_call_operand.vmem [shape: f32[1,256], index: 7, kind: input, shape index: {}]   ;;  %s5771_s8 = inlined_call_operand.vmem [shape: f32[1,256], index: 8, kind: input, shape index: {}]   ;;  %s5772_s9 = inlined_call_operand.vmem [shape: f32[1,256], index: 9, kind: input, shape index: {}]   ;;  %s5773_s10 = inlined_call_operand.vmem [shape: bf16[3,256,128], index: 10, kind: input, shape index: {}]   ;;  %s5774_s11 = inlined_call_operand.vmem [shape: f32[1,128], index: 11, kind: input, shape index: {}]   ;;  %s5775_s12 = inlined_call_operand.vmem [shape: f32[1,128], index: 12, kind: input, shape index: {}]   ;;  %s5776_s13 = inlined_call_operand.vmem [shape: f32[1,128], index: 13, kind: input, shape index: {}]   ;;  %s5777_s14 = inlined_call_operand.vmem [shape: bf16[128,128], index: 14, kind: input, shape index: {}]   ;;  %s5778_s15 = inlined_call_operand.vmem [shape: f32[1,128], index: 15, kind: input, shape index: {}]   ;;  %s5779_s16 = inlined_call_operand.vmem [shape: f32[1,128], index: 16, kind: input, shape index: {}]   ;;  %s5780_s17 = inlined_call_operand.vmem [shape: f32[1,128], index: 17, kind: input, shape index: {}]   ;;  %s5781_s18 = inlined_call_operand.vmem [shape: bf16[128,128], index: 18, kind: input, shape index: {}]   ;;  %s5782_s19 = inlined_call_operand.vmem [shape: f32[1,128], index: 19, kind: input, shape index: {}]   ;;  %s5783_s20 = inlined_call_operand.hbm [shape: f32[8,128], index: 20, kind: output, shape index: {0}]   ;;  %s5784_s21 = inlined_call_operand.hbm [shape: f32[8,128], index: 21, kind: output, shape index: {1}]  }
   0x1   :  { %5788 = sst [smem:[#allocation10_spill]] %s5763_s0 }
   0x2   :  { %5789 = sst [smem:[#allocation11_spill]] %s5764_s1 }
   0x3   :  { %5790 = sst [smem:[#allocation12_spill]] %s5765_s2 }
   0x4   :  { %5791 = sst [smem:[#allocation13_spill]] %s5766_s3 }
   0x5   :  { %5792 = sst [smem:[#allocation14_spill]] %s5767_s4 }
   0x6   :  { %5793 = sst [smem:[#allocation15_spill]] %s5768_s5 }
   0x7   :  { %27 = vsyncpa [#allocation5], 0  ;;  %s5794_s26 = sld [smem:[#allocation11_spill]]  ;;  %vm173_vm0 = vcmask 1045504   ;;  %s5795_s0 = sld [smem:[#allocation10_spill]]  ;;  %vm148_vm1 = vcmask 228352  }
   0xd   :  { %v4091_v0 = vld [vmem:[%s5794_s26] sm:$0xff]   ;;  %v4092_v1 = vld [vmem:[%s5794_s26 + $0x8] sm:$0x3f]   ;;  %v4095_v5 = vld [vmem:[%s5795_s0 + $0x10] sm:$0xff]  }
   0xe   :  { %3928 = vmatprep.subr.bf16.mxu0 %v4091_v0  ;;  %v4093_v2 = vld [vmem:[%s5795_s0] sm:$0xff]   ;;  %v175_v3 = vsel %vm173_vm0, %v4092_v1, 0  ;;  %v4094_v4 = vld [vmem:[%s5795_s0 + $0x8] sm:$0xff]   ;;  %v4096_v6 = vld [vmem:[%s5795_s0 + $0x18] sm:$0xff]  }
   0xf   :  { %3929 = vmatpush3.bf16.msra.mxu0 %v4091_v0  ;;  %3932 = vmatprep.mubr.msk.bf16.mxu0 %vm148_vm1, %v4093_v2  ;;  %v4097_v7 = vld [vmem:[%s5795_s0 + $0x20] sm:$0xff]   ;;  %v4098_v8 = vld [vmem:[%s5795_s0 + $0x28] sm:$0xff]   ;;  %v4099_v9 = vld [vmem:[%s5795_s0 + $0x30] sm:$0xff]  }
  0x10   :  { %4084 = vmatprep.subr.msk.bf16.mxu0 %vm173_vm0, %v4092_v1  ;;  %v4100_v10 = vld [vmem:[%s5795_s0 + $0x38] sm:$0xff]  }
  0x13   :  { %3931 = vmatpush3.bf16.msra.mxu0 %v175_v3 }
  0x16   :  { %3933 = vmatmul.mubr.msk.bf16.vlgmr.msra.gmra.mrb[0].mxu0 %vm148_vm1, %v4094_v4 }
  0x17   :  { %3936 = vmatprep.mubr.msk.bf16.mxu0 %vm148_vm1, %v4095_v5 }
  0x1e   :  { %3937 = vmatmul.mubr.msk.bf16.gmra.mrb[4].mxu0 %vm148_vm1, %v4096_v6 }
  0x1f   :  { %3940 = vmatprep.mubr.msk.bf16.mxu0 %vm148_vm1, %v4097_v7 }
  0x26   :  { %3941 = vmatmul.mubr.msk.bf16.gmra.mrb[8].mxu0 %vm148_vm1, %v4098_v8 }
  0x27   :  { %3944 = vmatprep.mubr.msk.bf16.mxu0 %vm148_vm1, %v4099_v9 }
  0x2e   :  { %3945 = vmatmul.mubr.msk.bf16.gmra.mrb[12].mxu0 %vm148_vm1, %v4100_v10 }
  0x2f   :  { %28 = vsyncpa [#allocation7], 0  ;;  %s5796_s5 = sld [smem:[#allocation15_spill]]  ;;  %s5797_s28 = sld [smem:[#allocation12_spill]]  ;;  %v4343_v57 = vmov 0   ;;  %vm2327_vm2 = vcmask 1043456  }
  0x30   :  { %423 = vst [vmem:[#allocation2] sm:$0xf] %v4343_v57  ;;  %424 = vst [vmem:[#allocation2 + $0x20] sm:$0xf] %v4343_v57  ;;  %s5798_s30 = sld [smem:[#allocation13_spill]]  ;;  %s5799_s1 = sld [smem:[#allocation14_spill]] }
  0x31   :  { %425 = vst [vmem:[#allocation2 + $0x40] sm:$0xf] %v4343_v57  ;;  %426 = vst [vmem:[#allocation2 + $0x60] sm:$0xf] %v4343_v57  ;;  %vm4346_vm3 = vmmov 0   ;;  %vm3106_vm4 = vcmask 1041409  }
  0x32   :  { %427 = vst [vmem:[#allocation2 + $0x80] sm:$0xf] %v4343_v57  ;;  %428 = vst [vmem:[#allocation2 + $0xa0] sm:$0xf] %v4343_v57  ;;  %vm3108_vm5 = vcmask 1042434   ;;  %vm3110_vm6 = vcmask 1043459  }
  0x33   :  { %429 = vst [vmem:[#allocation2 + $0xc0] sm:$0xf] %v4343_v57  ;;  %430 = vst [vmem:[#allocation2 + $0xe0] sm:$0xf] %v4343_v57  ;;  %vm3112_vm7 = vcmask 1044484   ;;  %vm3114_vm8 = vcmask 1045509  }
  0x34   :  { %431 = vst [vmem:[#allocation2 + $0x10] sm:$0xf0] %v4343_v57  ;;  %432 = vst [vmem:[#allocation2 + $0x30] sm:$0xf0] %v4343_v57  ;;  %vm3116_vm9 = vcmask 1046534   ;;  %vm3118_vm10 = vcmask 1047559  }
  0x35   :  { %v4101_v11 = vld [vmem:[%s5796_s5 + $0x4] ss:$8 sps:$4 sm:$0xff]   ;;  %v4103_v12 = vld [vmem:[%s5796_s5] ss:$8 sps:$4 sm:$0xff]   ;;  %v4104_v13 = vld [vmem:[%s5796_s5 + $0x14] ss:$8 sps:$4 sm:$0xff]  }
  0x36   :  { %704 = vmatprep.subr.bf16.mxu1 %v4101_v11  ;;  %v4106_v14 = vld [vmem:[%s5796_s5 + $0x10] ss:$8 sps:$4 sm:$0xff]   ;;  %v4107_v15 = vld [vmem:[%s5796_s5 + $0x24] ss:$8 sps:$4 sm:$0xff]   ;;  %v4109_v16 = vld [vmem:[%s5796_s5 + $0x20] ss:$8 sps:$4 sm:$0xff]  }
  0x37   :  { %705 = vmatpush1.bf16.msra.mxu1 %v4103_v12  ;;  %v4110_v17 = vld [vmem:[%s5796_s5 + $0x34] ss:$8 sps:$4 sm:$0xff]   ;;  %v4112_v18 = vld [vmem:[%s5796_s5 + $0x30] ss:$8 sps:$4 sm:$0xff]   ;;  %v4113_v19 = vld [vmem:[%s5796_s5 + $0x44] ss:$8 sps:$4 sm:$0xff]  }
  0x38   :  { %706 = vmatprep.subr.bf16.mxu1 %v4104_v13  ;;  %v4115_v20 = vld [vmem:[%s5796_s5 + $0x40] ss:$8 sps:$4 sm:$0xff]   ;;  %v4116_v21 = vld [vmem:[%s5796_s5 + $0x54] ss:$8 sps:$4 sm:$0xff]   ;;  %v4118_v22 = vld [vmem:[%s5796_s5 + $0x50] ss:$8 sps:$4 sm:$0xff]  }
  0x39   :  { %v4119_v23 = vld [vmem:[%s5796_s5 + $0x64] ss:$8 sps:$4 sm:$0xff]   ;;  %v4121_v24 = vld [vmem:[%s5796_s5 + $0x60] ss:$8 sps:$4 sm:$0xff]   ;;  %v4122_v25 = vld [vmem:[%s5796_s5 + $0x74] ss:$8 sps:$4 sm:$0xff]  }
  0x3a   :  { %v4124_v26 = vld [vmem:[%s5796_s5 + $0x70] ss:$8 sps:$4 sm:$0xff]   ;;  %v4125_v27 = vld [vmem:[%s5796_s5 + $0x84] ss:$8 sps:$4 sm:$0xff]   ;;  %v4127_v28 = vld [vmem:[%s5796_s5 + $0x80] ss:$8 sps:$4 sm:$0xff]  }
  0x3b   :  { %707 = vmatpush1.bf16.msra.mxu1 %v4106_v14  ;;  %v4128_v29 = vld [vmem:[%s5796_s5 + $0x94] ss:$8 sps:$4 sm:$0xff]   ;;  %v4130_v30 = vld [vmem:[%s5796_s5 + $0x90] ss:$8 sps:$4 sm:$0xff]   ;;  %v4131_v31 = vld [vmem:[%s5796_s5 + $0xa4] ss:$8 sps:$4 sm:$0xff]  }
  0x3c   :  { %708 = vmatprep.subr.bf16.mxu1 %v4107_v15  ;;  %v4133_v32 = vld [vmem:[%s5796_s5 + $0xa0] ss:$8 sps:$4 sm:$0xff]   ;;  %v4134_v33 = vld [vmem:[%s5796_s5 + $0xb4] ss:$8 sps:$4 sm:$0xff]   ;;  %v4136_v34 = vld [vmem:[%s5796_s5 + $0xb0] ss:$8 sps:$4 sm:$0xff]  }
  0x3d   :  { %v4137_v35 = vld [vmem:[%s5796_s5 + $0xc4] ss:$8 sps:$4 sm:$0xff]   ;;  %v4139_v36 = vld [vmem:[%s5796_s5 + $0xc0] ss:$8 sps:$4 sm:$0xff]   ;;  %v4140_v40 = vld [vmem:[%s5796_s5 + $0xd4] ss:$8 sps:$4 sm:$0xff]  }
  0x3e   :  { %v4580_v38 = vld [vmem:[%s5797_s28] ss:$0 sm:$0xff]  ;;  %v4142_v42 = vld [vmem:[%s5796_s5 + $0xd0] ss:$8 sps:$4 sm:$0xff]   ;;  %v4143_v46 = vld [vmem:[%s5796_s5 + $0xe4] ss:$8 sps:$4 sm:$0xff]  }
  0x3f   :  { %709 = vmatpush1.bf16.msra.mxu1 %v4109_v16  ;;  %v4145_v49 = vld [vmem:[%s5796_s5 + $0xe0] ss:$8 sps:$4 sm:$0xff]   ;;  %v4616_v53 = vld [vmem:[%s5796_s5 + $0xf4] ss:$8 sps:$4 sm:$0xff]   ;;  %v4621_v54 = vld [vmem:[%s5796_s5 + $0xf0] ss:$8 sps:$4 sm:$0xff]  }
  0x40   :  { %710 = vmatprep.subr.bf16.mxu1 %v4110_v17  ;;  %v4626_v56 = vld [vmem:[%s5796_s5 + $0x104] ss:$8 sps:$4 sm:$0xff]   ;;  %433 = vst [vmem:[#allocation2 + $0x50] sm:$0xf0] %v4343_v57  ;;  %434 = vst [vmem:[#allocation2 + $0x70] sm:$0xf0] %v4343_v57 }
  0x41   :  { %435 = vst [vmem:[#allocation2 + $0x90] sm:$0xf0] %v4343_v57  ;;  %436 = vst [vmem:[#allocation2 + $0xb0] sm:$0xf0] %v4343_v57 }
  0x42   :  { %437 = vst [vmem:[#allocation2 + $0xd0] sm:$0xf0] %v4343_v57  ;;  %438 = vst [vmem:[#allocation2 + $0xf0] sm:$0xf0] %v4343_v57 }
  0x43   :  { %711 = vmatpush1.bf16.msra.mxu1 %v4112_v18  ;;  %439 = vst [vmem:[#allocation2 + $0x18] sm:$0xff] %v4343_v57  ;;  %440 = vst [vmem:[#allocation2 + $0x38] sm:$0xff] %v4343_v57 }
  0x44   :  { %712 = vmatprep.subr.bf16.mxu1 %v4113_v19  ;;  %441 = vst [vmem:[#allocation2 + $0x58] sm:$0xff] %v4343_v57  ;;  %442 = vst [vmem:[#allocation2 + $0x78] sm:$0xff] %v4343_v57 }
  0x45   :  { %443 = vst [vmem:[#allocation2 + $0x98] sm:$0xff] %v4343_v57  ;;  %444 = vst [vmem:[#allocation2 + $0xb8] sm:$0xff] %v4343_v57 }
  0x46   :  { %445 = vst [vmem:[#allocation2 + $0xd8] sm:$0xff] %v4343_v57  ;;  %446 = vst [vmem:[#allocation2 + $0xf8] sm:$0xff] %v4343_v57 }
  0x47   :  { %713 = vmatpush1.bf16.msra.mxu1 %v4115_v20  ;;  %1887 = vst [vmem:[#allocation3] sm:$0xf] %v4343_v57  ;;  %1888 = vst [vmem:[#allocation3 + $0x8] sm:$0xf] %v4343_v57 }
  0x48   :  { %714 = vmatprep.subr.bf16.mxu1 %v4116_v21  ;;  %1889 = vst [vmem:[#allocation3 + $0x20] sm:$0xf] %v4343_v57  ;;  %1890 = vst [vmem:[#allocation3 + $0x28] sm:$0xf] %v4343_v57 }
  0x49   :  { %1891 = vst [vmem:[#allocation3 + $0x40] sm:$0xf] %v4343_v57  ;;  %1892 = vst [vmem:[#allocation3 + $0x48] sm:$0xf] %v4343_v57 }
  0x4a   :  { %1893 = vst [vmem:[#allocation3 + $0x60] sm:$0xf] %v4343_v57  ;;  %1894 = vst [vmem:[#allocation3 + $0x68] sm:$0xf] %v4343_v57 }
  0x4b   :  { %715 = vmatpush1.bf16.msra.mxu1 %v4118_v22  ;;  %1895 = vst [vmem:[#allocation3 + $0x80] sm:$0xf] %v4343_v57  ;;  %1896 = vst [vmem:[#allocation3 + $0x88] sm:$0xf] %v4343_v57 }
  0x4c   :  { %716 = vmatprep.subr.bf16.mxu1 %v4119_v23  ;;  %1897 = vst [vmem:[#allocation3 + $0xa0] sm:$0xf] %v4343_v57  ;;  %1898 = vst [vmem:[#allocation3 + $0xa8] sm:$0xf] %v4343_v57 }
  0x4d   :  { %1899 = vst [vmem:[#allocation3 + $0xc0] sm:$0xf] %v4343_v57  ;;  %1900 = vst [vmem:[#allocation3 + $0xc8] sm:$0xf] %v4343_v57 }
  0x4e   :  { %1901 = vst [vmem:[#allocation3 + $0xe0] sm:$0xf] %v4343_v57  ;;  %1902 = vst [vmem:[#allocation3 + $0xe8] sm:$0xf] %v4343_v57 }
  0x4f   :  { %717 = vmatpush1.bf16.msra.mxu1 %v4121_v24  ;;  %1903 = vst [vmem:[#allocation3 + $0x10] sm:$0xf0] %v4343_v57  ;;  %1904 = vst [vmem:[#allocation3 + $0x18] sm:$0xf0] %v4343_v57 }
  0x50   :  { %718 = vmatprep.subr.bf16.mxu1 %v4122_v25  ;;  %1905 = vst [vmem:[#allocation3 + $0x30] sm:$0xf0] %v4343_v57  ;;  %1906 = vst [vmem:[#allocation3 + $0x38] sm:$0xf0] %v4343_v57 }
  0x51   :  { %1907 = vst [vmem:[#allocation3 + $0x50] sm:$0xf0] %v4343_v57  ;;  %1908 = vst [vmem:[#allocation3 + $0x58] sm:$0xf0] %v4343_v57 }
  0x52   :  { %1909 = vst [vmem:[#allocation3 + $0x70] sm:$0xf0] %v4343_v57  ;;  %1910 = vst [vmem:[#allocation3 + $0x78] sm:$0xf0] %v4343_v57 }
  0x53   :  { %719 = vmatpush1.bf16.msra.mxu1 %v4124_v26  ;;  %1911 = vst [vmem:[#allocation3 + $0x90] sm:$0xf0] %v4343_v57  ;;  %1912 = vst [vmem:[#allocation3 + $0x98] sm:$0xf0] %v4343_v57 }
  0x54   :  { %720 = vmatprep.subr.bf16.mxu1 %v4125_v27  ;;  %1913 = vst [vmem:[#allocation3 + $0xb0] sm:$0xf0] %v4343_v57  ;;  %1914 = vst [vmem:[#allocation3 + $0xb8] sm:$0xf0] %v4343_v57 }
  0x55   :  { %1915 = vst [vmem:[#allocation3 + $0xd0] sm:$0xf0] %v4343_v57  ;;  %1916 = vst [vmem:[#allocation3 + $0xd8] sm:$0xf0] %v4343_v57 }
  0x56   :  { %1917 = vst [vmem:[#allocation3 + $0xf0] sm:$0xf0] %v4343_v57  ;;  %1918 = vst [vmem:[#allocation3 + $0xf8] sm:$0xf0] %v4343_v57 }
  0x57   :  { %721 = vmatpush1.bf16.msra.mxu1 %v4127_v28 }
  0x58   :  { %722 = vmatprep.subr.bf16.mxu1 %v4128_v29 }
  0x5b   :  { %723 = vmatpush1.bf16.msra.mxu1 %v4130_v30 }
  0x5c   :  { %724 = vmatprep.subr.bf16.mxu1 %v4131_v31 }
  0x5f   :  { %725 = vmatpush1.bf16.msra.mxu1 %v4133_v32 }
  0x60   :  { %726 = vmatprep.subr.bf16.mxu1 %v4134_v33 }
  0x63   :  { %727 = vmatpush1.bf16.msra.mxu1 %v4136_v34 }
  0x64   :  { %728 = vmatprep.subr.bf16.mxu1 %v4137_v35 }
  0x67   :  { %729 = vmatpush1.bf16.msra.mxu1 %v4139_v36 }
  0x68   :  { %730 = vmatprep.subr.bf16.mxu1 %v4140_v40 }
  0x6b   :  { %731 = vmatpush1.bf16.msra.mxu1 %v4142_v42 }
  0x6c   :  { %732 = vmatprep.subr.bf16.mxu1 %v4143_v46 }
  0x6f   :  { %733 = vmatpush1.bf16.msra.mxu1 %v4145_v49 }
  0x70   :  { %734 = vmatprep.subr.bf16.mxu1 %v4616_v53 }
  0x73   :  { %735 = vmatpush1.bf16.msra.mxu1 %v4621_v54 }
  0x74   :  { %1182 = vmatprep.subr.bf16.mxu1 %v4626_v56 }
  0xe9   :  { %v3934_v37 = vpop.f32.mrb[0].mxu0 }
  0xea   :  { %v211_v39 = vpop.f32.mrb[1].mxu0  ;;  %v4598_v47 = vadd.f32 %v3934_v37, %v4580_v38 }
  0xeb   :  { %v3935_v41 = vpop.f32.mrb[2].mxu0  ;;  %v4589_v44 = vadd.f32 %v4580_v38, %v211_v39 }
  0xec   :  { %v214_v43 = vpop.f32.mrb[3].mxu0  ;;  %v4606_v50 = vadd.f32 %v3935_v41, %v4580_v38 }
  0xed   :  { %v4592_v45 = vadd.f32 %v4580_v38, %v214_v43 }
  0xef   :  { %v276_v48 = vadd.f32 %v4592_v45, %v4589_v44 }
  0xf1   :  { %v4609_v51 = vadd.f32 %v276_v48, %v4598_v47  ;;  %v4611_v52 = vpop.f32.mrb[4].mxu0 }
  0xf2   :  { %v227_v55 = vpop.f32.mrb[5].mxu0  ;;  %v236_v0 = vadd.f32 %v4611_v52, %v4580_v38 }
  0xf3   :  { %v228_v58 = vadd.f32 %v4580_v38, %v227_v55  ;;  %v278_v59 = vadd.f32 %v4609_v51, %v4606_v50  ;;  %v3939_v60 = vpop.f32.mrb[6].mxu0 }
  0xf4   :  { %v230_v61 = vpop.f32.mrb[7].mxu0  ;;  %v239_v2 = vadd.f32 %v3939_v60, %v4580_v38 }
  0xf5   :  { %v279_v62 = vadd.f32 %v278_v59, %v228_v58  ;;  %v231_v63 = vadd.f32 %v4580_v38, %v230_v61 }
  0xf7   :  { %v280_v1 = vadd.f32 %v279_v62, %v231_v63 }
  0xf9   :  { %v281_v3 = vadd.f32 %v280_v1, %v236_v0  ;;  %v3942_v4 = vpop.f32.mrb[8].mxu0 }
  0xfa   :  { %v243_v5 = vpop.f32.mrb[9].mxu0  ;;  %v252_v12 = vadd.f32 %v3942_v4, %v4580_v38 }
  0xfb   :  { %v244_v6 = vadd.f32 %v4580_v38, %v243_v5  ;;  %v282_v7 = vadd.f32 %v281_v3, %v239_v2  ;;  %v3943_v8 = vpop.f32.mrb[10].mxu0 }
  0xfc   :  { %v246_v9 = vpop.f32.mrb[11].mxu0  ;;  %v255_v14 = vadd.f32 %v3943_v8, %v4580_v38 }
  0xfd   :  { %v283_v10 = vadd.f32 %v282_v7, %v244_v6  ;;  %v247_v11 = vadd.f32 %v4580_v38, %v246_v9 }
  0xff   :  { %v284_v13 = vadd.f32 %v283_v10, %v247_v11 }
 0x101   :  { %v285_v15 = vadd.f32 %v284_v13, %v252_v12  ;;  %v3946_v16 = vpop.f32.mrb[12].mxu0 }
 0x102   :  { %v259_v17 = vpop.f32.mrb[13].mxu0  ;;  %v268_v24 = vadd.f32 %v3946_v16, %v4580_v38 }
 0x103   :  { %v260_v18 = vadd.f32 %v4580_v38, %v259_v17  ;;  %v286_v19 = vadd.f32 %v285_v15, %v255_v14  ;;  %v3947_v20 = vpop.f32.mrb[14].mxu0 }
 0x104   :  { %v262_v21 = vpop.f32.mrb[15].mxu0  ;;  %v271_v26 = vadd.f32 %v3947_v20, %v4580_v38 }
 0x105   :  { %v287_v22 = vadd.f32 %v286_v19, %v260_v18  ;;  %v263_v23 = vadd.f32 %v4580_v38, %v262_v21 }
 0x107   :  { %v288_v25 = vadd.f32 %v287_v22, %v263_v23 }
 0x109   :  { %v289_v27 = vadd.f32 %v288_v25, %v268_v24 }
 0x10b   :  { %v290_v28 = vadd.f32 %v289_v27, %v271_v26 }
 0x10d   :  { %v291_v29 = vrot.slane %v290_v28, 4 }
 0x10f   :  { %v292_v30 = vadd.f32 %v291_v29, %v290_v28  ;;  %v356_v28 = vlaneseq }
 0x111   :  { %v293_v31 = vrot.slane %v292_v30, 2  ;;  %v4770_v29 = vshrl.u32 %v356_v28, 7 }
 0x113   :  { %v294_v32 = vadd.f32 %v293_v31, %v292_v30  ;;  %v274_v30 = vld [vmem:[%s5798_s30] sm:$0x1]  ;;  %v4776_v31 = vsub.s32 0, %v4770_v29 }
 0x115   :  { %v295_v33 = vrot.slane %v294_v32, 1 }
 0x117   :  { %v296_v34 = vadd.f32 %v295_v33, %v294_v32 }
 0x119   :  { %v297_v35 = vmul.f32 0.0078125, %v296_v34 }
 0x11b   :  { %v4703_v36 = vsub.f32 %v4589_v44, %v297_v35  ;;  %v4706_v37 = vsub.f32 %v4592_v45, %v297_v35  ;;  %v4709_v39 = vsub.f32 %v4598_v47, %v297_v35  ;;  %v4712_v38 = vsub.f32 %v4606_v50, %v297_v35 }
 0x11c   :  { %v4714_v40 = vsub.f32 %v228_v58, %v297_v35  ;;  %v4716_v41 = vsub.f32 %v231_v63, %v297_v35  ;;  %v4718_v42 = vsub.f32 %v236_v0, %v297_v35  ;;  %v4720_v43 = vsub.f32 %v239_v2, %v297_v35 }
 0x11d   :  { %v4722_v46 = vsub.f32 %v244_v6, %v297_v35  ;;  %v4724_v44 = vsub.f32 %v247_v11, %v297_v35  ;;  %v4726_v45 = vsub.f32 %v252_v12, %v297_v35  ;;  %v4728_v48 = vsub.f32 %v255_v14, %v297_v35 }
 0x11e   :  { %v4730_v47 = vsub.f32 %v260_v18, %v297_v35  ;;  %v4732_v49 = vsub.f32 %v263_v23, %v297_v35  ;;  %v4734_v50 = vsub.f32 %v268_v24, %v297_v35  ;;  %v4736_v51 = vsub.f32 %v271_v26, %v297_v35 }
 0x11f   :  { %v314_v52 = vmul.f32 %v4703_v36, %v4703_v36  ;;  %v315_v53 = vmul.f32 %v4706_v37, %v4706_v37  ;;  %v316_v54 = vmul.f32 %v4709_v39, %v4709_v39  ;;  %v317_v56 = vmul.f32 %v4712_v38, %v4712_v38 }
 0x120   :  { %v318_v59 = vmul.f32 %v4714_v40, %v4714_v40  ;;  %v319_v61 = vmul.f32 %v4716_v41, %v4716_v41  ;;  %v320_v63 = vmul.f32 %v4718_v42, %v4718_v42  ;;  %v321_v1 = vmul.f32 %v4720_v43, %v4720_v43 }
 0x121   :  { %v330_v55 = vadd.f32 %v315_v53, %v314_v52  ;;  %v322_v3 = vmul.f32 %v4722_v46, %v4722_v46  ;;  %v323_v5 = vmul.f32 %v4724_v44, %v4724_v44  ;;  %v324_v7 = vmul.f32 %v4726_v45, %v4726_v45 }
 0x122   :  { %v325_v9 = vmul.f32 %v4728_v48, %v4728_v48  ;;  %v326_v11 = vmul.f32 %v4730_v47, %v4730_v47  ;;  %v327_v13 = vmul.f32 %v4732_v49, %v4732_v49  ;;  %v328_v15 = vmul.f32 %v4734_v50, %v4734_v50 }
 0x123   :  { %v331_v58 = vadd.f32 %v330_v55, %v316_v54  ;;  %v329_v17 = vmul.f32 %v4736_v51, %v4736_v51  ;;  %v3462_v55 = vld [vmem:[%s5799_s1] ss:$0 sm:$0xff] }
 0x125   :  { %v332_v60 = vadd.f32 %v331_v58, %v317_v56 }
 0x127   :  { %v333_v62 = vadd.f32 %v332_v60, %v318_v59 }
 0x129   :  { %v334_v0 = vadd.f32 %v333_v62, %v319_v61 }
 0x12b   :  { %v335_v2 = vadd.f32 %v334_v0, %v320_v63 }
 0x12d   :  { %v336_v4 = vadd.f32 %v335_v2, %v321_v1 }
 0x12f   :  { %v337_v6 = vadd.f32 %v336_v4, %v322_v3 }
 0x131   :  { %v338_v8 = vadd.f32 %v337_v6, %v323_v5 }
 0x133   :  { %v339_v10 = vadd.f32 %v338_v8, %v324_v7 }
 0x135   :  { %v340_v12 = vadd.f32 %v339_v10, %v325_v9 }
 0x137   :  { %v341_v14 = vadd.f32 %v340_v12, %v326_v11 }
 0x139   :  { %v342_v16 = vadd.f32 %v341_v14, %v327_v13 }
 0x13b   :  { %v343_v18 = vadd.f32 %v342_v16, %v328_v15 }
 0x13d   :  { %v344_v19 = vadd.f32 %v343_v18, %v329_v17 }
 0x13f   :  { %v345_v20 = vrot.slane %v344_v19, 4 }
 0x141   :  { %v346_v21 = vadd.f32 %v345_v20, %v344_v19 }
 0x143   :  { %v347_v22 = vrot.slane %v346_v21, 2 }
 0x145   :  { %v348_v23 = vadd.f32 %v347_v22, %v346_v21 }
 0x147   :  { %v349_v24 = vrot.slane %v348_v23, 1 }
 0x149   :  { %v350_v25 = vadd.f32 %v349_v24, %v348_v23 }
 0x14b   :  { %v351_v26 = vmul.f32 0.0078125, %v350_v25 }
 0x14d   :  { %v352_v27 = vadd.f32 1e-05, %v351_v26 }
 0x14f   :  { %4285 = vrsqrt.f32 %v352_v27 }
 0x159   :  { %v4286_v32 = vpop.eup %4285 }
 0x15a   :  { %v354_v33 = vmul.f32 %v4286_v32, %v274_v30 }
 0x15c   :  { %v359_v34 = vrot.slane %v354_v33, %v4776_v31 }
 0x15e   :  { %v361_v35 = vmul.f32 %v359_v34, %v4703_v36  ;;  %v362_v52 = vmul.f32 %v359_v34, %v4706_v37  ;;  %v363_v53 = vmul.f32 %v359_v34, %v4709_v39  ;;  %v364_v54 = vmul.f32 %v359_v34, %v4712_v38 }
 0x15f   :  { %v365_v56 = vmul.f32 %v359_v34, %v4714_v40  ;;  %v366_v58 = vmul.f32 %v359_v34, %v4716_v41  ;;  %v367_v59 = vmul.f32 %v359_v34, %v4718_v42  ;;  %v368_v60 = vmul.f32 %v359_v34, %v4720_v43 }
 0x160   :  { %v369_v36 = vmul.f32 %v359_v34, %v4722_v46  ;;  %v370_v37 = vmul.f32 %v359_v34, %v4724_v44  ;;  %v371_v39 = vmul.f32 %v359_v34, %v4726_v45  ;;  %v372_v38 = vmul.f32 %v359_v34, %v4728_v48 }
 0x161   :  { %v373_v61 = vmul.f32 %v359_v34, %v4730_v47  ;;  %v374_v62 = vmul.f32 %v359_v34, %v4732_v49  ;;  %v375_v40 = vmul.f32 %v359_v34, %v4734_v50  ;;  %v376_v41 = vmul.f32 %v359_v34, %v4736_v51 }
 0x162   :  { %v385_v63 = vadd.f32 %v3462_v55, %v363_v53  ;;  %v386_v42 = vadd.f32 %v3462_v55, %v364_v54  ;;  %v387_v0 = vadd.f32 %v3462_v55, %v365_v56  ;;  %v388_v43 = vadd.f32 %v3462_v55, %v366_v58  ;;  %v4154_v56 = vld [vmem:[%s5796_s5 + $0x114] ss:$8 sps:$4 sm:$0xff]  }
 0x163   :  { %v389_v1 = vadd.f32 %v3462_v55, %v367_v59  ;;  %v390_v46 = vadd.f32 %v3462_v55, %v368_v60  ;;  %v391_v2 = vadd.f32 %v3462_v55, %v369_v36  ;;  %v392_v44 = vadd.f32 %v3462_v55, %v370_v37  ;;  %v4152_v59 = vld [vmem:[%s5796_s5 + $0x110] ss:$8 sps:$4 sm:$0xff]   ;;  %v4157_v60 = vld [vmem:[%s5796_s5 + $0x124] ss:$8 sps:$4 sm:$0xff]   ;;  %v4155_v36 = vld [vmem:[%s5796_s5 + $0x120] ss:$8 sps:$4 sm:$0xff]  }
 0x164   :  { %v393_v3 = vadd.f32 %v3462_v55, %v371_v39  ;;  %v394_v45 = vadd.f32 %v3462_v55, %v372_v38  ;;  %v395_v4 = vadd.f32 %v3462_v55, %v373_v61  ;;  %v396_v48 = vadd.f32 %v3462_v55, %v374_v62  ;;  %v4160_v37 = vld [vmem:[%s5796_s5 + $0x134] ss:$8 sps:$4 sm:$0xff]   ;;  %v4158_v38 = vld [vmem:[%s5796_s5 + $0x130] ss:$8 sps:$4 sm:$0xff]   ;;  %v4163_v61 = vld [vmem:[%s5796_s5 + $0x144] ss:$8 sps:$4 sm:$0xff]  }
 0x165   :  { %v397_v5 = vadd.f32 %v3462_v55, %v375_v40  ;;  %v398_v47 = vadd.f32 %v3462_v55, %v376_v41  ;;  %v401_v6 = vmax.f32 %v385_v63, 0.0  ;;  %v402_v49 = vmax.f32 %v386_v42, 0.0  ;;  %v4161_v62 = vld [vmem:[%s5796_s5 + $0x140] ss:$8 sps:$4 sm:$0xff]   ;;  %v4166_v40 = vld [vmem:[%s5796_s5 + $0x154] ss:$8 sps:$4 sm:$0xff]  }
 0x166   :  { %v403_v7 = vmax.f32 %v387_v0, 0.0  ;;  %v404_v50 = vmax.f32 %v388_v43, 0.0  ;;  %v405_v8 = vmax.f32 %v389_v1, 0.0  ;;  %v406_v51 = vmax.f32 %v390_v46, 0.0  ;;  %v4164_v63 = vld [vmem:[%s5796_s5 + $0x150] ss:$8 sps:$4 sm:$0xff]  }
 0x167   :  { %v407_v9 = vmax.f32 %v391_v2, 0.0  ;;  %v408_v10 = vmax.f32 %v392_v44, 0.0  ;;  %v409_v11 = vmax.f32 %v393_v3, 0.0  ;;  %v410_v12 = vmax.f32 %v394_v45, 0.0  ;;  %v4169_v42 = vld [vmem:[%s5796_s5 + $0x164] ss:$8 sps:$4 sm:$0xff]  }
 0x168   :  { %v411_v13 = vmax.f32 %v395_v4, 0.0  ;;  %v412_v14 = vmax.f32 %v396_v48, 0.0  ;;  %v413_v15 = vmax.f32 %v397_v5, 0.0  ;;  %v414_v16 = vmax.f32 %v398_v47, 0.0  ;;  %v4167_v0 = vld [vmem:[%s5796_s5 + $0x160] ss:$8 sps:$4 sm:$0xff]  }
 0x169   :  { %v417_v17 = vpack.c.bf16 %v404_v50, %v403_v7  ;;  %v418_v18 = vpack.c.bf16 %v406_v51, %v405_v8  ;;  %v4798_v19 = vpack.c.bf16 %v408_v10, %v407_v9  ;;  %v4800_v20 = vpack.c.bf16 %v410_v12, %v409_v11  ;;  %v4172_v43 = vld [vmem:[%s5796_s5 + $0x174] ss:$8 sps:$4 sm:$0xff]   ;;  %v4170_v46 = vld [vmem:[%s5796_s5 + $0x170] ss:$8 sps:$4 sm:$0xff]   ;;  %v4175_v2 = vld [vmem:[%s5796_s5 + $0x184] ss:$8 sps:$4 sm:$0xff]  }
 0x16a   :  { %v4802_v21 = vpack.c.bf16 %v412_v14, %v411_v13  ;;  %v4804_v22 = vpack.c.bf16 %v414_v16, %v413_v15  ;;  %v383_v23 = vadd.f32 %v3462_v55, %v361_v35  ;;  %v384_v24 = vadd.f32 %v3462_v55, %v362_v52  ;;  %v4149_v55 = vld [vmem:[%s5796_s5 + $0x100] ss:$8 sps:$4 sm:$0xff]   ;;  %v4178_v3 = vld [vmem:[%s5796_s5 + $0x194] ss:$8 sps:$4 sm:$0xff]   ;;  %v4176_v4 = vld [vmem:[%s5796_s5 + $0x190] ss:$8 sps:$4 sm:$0xff]  }
 0x16b   :  { %v457_v25 = vrot.slane %v417_v17, 4  ;;  %v458_v26 = vrot.slane %v418_v18, 4  ;;  %v459_v27 = vrot.slane %v4798_v19, 4  ;;  %v460_v28 = vrot.slane %v4800_v20, 4  ;;  %490 = vst [vmem:[#allocation2 + $0x68] sm:$0xff] %v418_v18  ;;  %491 = vst [vmem:[#allocation2 + $0x88] sm:$0xff] %v4798_v19 }
 0x16c   :  { %492 = vst [vmem:[#allocation2 + $0xa8] sm:$0xff] %v4800_v20  ;;  %489 = vst [vmem:[#allocation2 + $0x48] sm:$0xff] %v417_v17  ;;  %v461_v30 = vrot.slane %v4802_v21, 4  ;;  %v462_v32 = vrot.slane %v4804_v22, 4  ;;  %v399_v33 = vmax.f32 %v383_v23, 0.0  ;;  %v400_v34 = vmax.f32 %v384_v24, 0.0 }
 0x16d   :  { %493 = vst [vmem:[#allocation2 + $0xc8] sm:$0xff] %v4802_v21  ;;  %494 = vst [vmem:[#allocation2 + $0xe8] sm:$0xff] %v4804_v22  ;;  %v416_v35 = vpack.c.bf16 %v402_v49, %v401_v6  ;;  %v4173_v44 = vld [vmem:[%s5796_s5 + $0x180] ss:$8 sps:$4 sm:$0xff]   ;;  %v4181_v48 = vld [vmem:[%s5796_s5 + $0x1a4] ss:$8 sps:$4 sm:$0xff]  }
 0x16e   :  { %476 = vst [vmem:[#allocation2 + $0x50] ss:$-12 sps:$4 sm:$0xff] %v457_v25   ;;  %477 = vst [vmem:[#allocation2 + $0x70] ss:$-12 sps:$4 sm:$0xff] %v458_v26   ;;  %v415_v52 = vpack.c.bf16 %v400_v34, %v399_v33  ;;  %v4179_v5 = vld [vmem:[%s5796_s5 + $0x1a0] ss:$8 sps:$4 sm:$0xff]  }
 0x16f   :  { %479 = vst [vmem:[#allocation2 + $0x90] ss:$-12 sps:$4 sm:$0xff] %v459_v27   ;;  %481 = vst [vmem:[#allocation2 + $0xb0] ss:$-12 sps:$4 sm:$0xff] %v460_v28   ;;  %v456_v53 = vrot.slane %v416_v35, 4 }
 0x170   :  { %483 = vst [vmem:[#allocation2 + $0xd0] ss:$-12 sps:$4 sm:$0xff] %v461_v30   ;;  %485 = vst [vmem:[#allocation2 + $0xf0] ss:$-12 sps:$4 sm:$0xff] %v462_v32   ;;  %736 = vmatprep.mubr.bf16.mxu1 %v415_v52  ;;  %v455_v54 = vrot.slane %v415_v52, 4 }
 0x171   :  { %488 = vst [vmem:[#allocation2 + $0x28] sm:$0xff] %v416_v35  ;;  %487 = vst [vmem:[#allocation2 + $0x8] sm:$0xff] %v415_v52  ;;  %v4184_v47 = vld [vmem:[%s5796_s5 + $0x1b4] ss:$8 sps:$4 sm:$0xff]   ;;  %v4182_v49 = vld [vmem:[%s5796_s5 + $0x1b0] ss:$8 sps:$4 sm:$0xff]  }
 0x172   :  { %473 = vst [vmem:[#allocation2 + $0x30] ss:$-12 sps:$4 sm:$0xff] %v456_v53   ;;  %471 = vst [vmem:[#allocation2 + $0x10] ss:$-12 sps:$4 sm:$0xff] %v455_v54   ;;  %v4187_v7 = vld [vmem:[%s5796_s5 + $0x1c4] ss:$8 sps:$4 sm:$0xff]  }
 0x173   :  { %v4185_v50 = vld [vmem:[%s5796_s5 + $0x1c0] ss:$8 sps:$4 sm:$0xff]   ;;  %v4190_v8 = vld [vmem:[%s5796_s5 + $0x1d4] ss:$8 sps:$4 sm:$0xff]   ;;  %v4188_v9 = vld [vmem:[%s5796_s5 + $0x1d0] ss:$8 sps:$4 sm:$0xff]  }
 0x174   :  { %v863_v11 = vld [vmem:[#allocation2 + $0x18] sm:$0x3]  ;;  %v4193_v12 = vld [vmem:[%s5796_s5 + $0x1e4] ss:$8 sps:$4 sm:$0xff]   ;;  %v4191_v15 = vld [vmem:[%s5796_s5 + $0x1e0] ss:$8 sps:$4 sm:$0xff]  }
 0x175   :  { %v500_v41 = vld [vmem:[#allocation2 + $0x40] sm:$0xff]  ;;  %v929_v14 = vrot.slane %v863_v11, 2  ;;  %v4196_v16 = vld [vmem:[%s5796_s5 + $0x1f4] ss:$8 sps:$4 sm:$0xff]   ;;  %v867_v23 = vld [vmem:[#allocation2 + $0x38] sm:$0x3] }
 0x176   :  { %v502_v1 = vld [vmem:[#allocation2 + $0x60] sm:$0xff]  ;;  %v935_v28 = vrot.slane %v867_v23, 2  ;;  %v4202_v32 = vld [vmem:[%s5769_s6 + $0x14] ss:$8 sps:$4 sm:$0xff]   ;;  %v4200_v53 = vld [vmem:[%s5769_s6 + $0x10] ss:$8 sps:$4 sm:$0xff]  }
 0x177   :  { %v504_v45 = vld [vmem:[#allocation2 + $0x80] sm:$0xff]  ;;  %v869_v54 = vld [vmem:[#allocation2 + $0x48] sm:$0xfc]  ;;  %v4220_v11 = vld [vmem:[%s5769_s6 + $0x74] ss:$8 sps:$4 sm:$0xff]  }
 0x178   :  { %v506_v6 = vld [vmem:[#allocation2 + $0xa0] sm:$0xff]  ;;  %v861_v10 = vld [vmem:[#allocation2 + $0x8] sm:$0xfc] }
 0x179   :  { %v496_v58 = vld [vmem:[#allocation2] sm:$0xff]  ;;  %v928_v13 = vrot.slane %v861_v10, 2  ;;  %v866_v52 = vld [vmem:[#allocation2 + $0x30] sm:$0x3] }
 0x17a   :  { %737 = vmatmul.mubr.bf16.vlgmr.msra.gmra.mrb[0].mxu1 %v496_v58  ;;  %v498_v39 = vld [vmem:[#allocation2 + $0x20] sm:$0xff] }
 0x17b   :  { %1183 = vmatpush1.bf16.msra.mxu1 %v4149_v55  ;;  %746 = vmatprep.mubr.bf16.mxu1 %v416_v35  ;;  %v508_v51 = vld [vmem:[#allocation2 + $0xc0] sm:$0xff]  ;;  %v871_v55 = vld [vmem:[#allocation2 + $0x58] sm:$0x3] }
 0x17c   :  { %1184 = vmatprep.subr.bf16.mxu1 %v4154_v56  ;;  %v4199_v24 = vld [vmem:[%s5769_s6 + $0x4] ss:$8 sps:$4 sm:$0xff]   ;;  %v4197_v30 = vld [vmem:[%s5769_s6] ss:$8 sps:$4 sm:$0xff]  }
 0x17d   :  { %v864_v35 = vld [vmem:[#allocation2 + $0x20] sm:$0xfc] }
 0x17e   :  { %v4205_v56 = vld [vmem:[%s5769_s6 + $0x24] ss:$8 sps:$4 sm:$0xff]   ;;  %v931_v58 = vrot.slane %v864_v35, 2  ;;  %v4215_v10 = vld [vmem:[%s5769_s6 + $0x60] ss:$8 sps:$4 sm:$0xff]  }
 0x17f   :  { %1185 = vmatpush1.bf16.msra.mxu1 %v4152_v59  ;;  %v932_v59 = vrot.slane %v866_v52, 2 }
 0x180   :  { %1186 = vmatprep.subr.bf16.mxu1 %v4157_v60  ;;  %v940_v60 = vrot.slane %v869_v54, 2  ;;  %v886_v54 = vld [vmem:[#allocation2 + $0xd0] sm:$0x3] }
 0x182   :  { %747 = vmatmul.mubr.bf16.gmra.mrb[4].mxu1 %v498_v39  ;;  %v4208_v39 = vld [vmem:[%s5769_s6 + $0x34] ss:$8 sps:$4 sm:$0xff]  }
 0x183   :  { %1187 = vmatpush1.bf16.msra.mxu1 %v4155_v36  ;;  %756 = vmatprep.mubr.bf16.mxu1 %v417_v17  ;;  %v510_v17 = vld [vmem:[#allocation2 + $0xe0] sm:$0xff]  ;;  %v941_v36 = vrot.slane %v871_v55, 2  ;;  %v889_v55 = vld [vmem:[#allocation2 + $0xe8] sm:$0xfc] }
 0x184   :  { %1188 = vmatprep.subr.bf16.mxu1 %v4160_v37  ;;  %v4203_v37 = vld [vmem:[%s5769_s6 + $0x20] ss:$8 sps:$4 sm:$0xff]  }
 0x187   :  { %1189 = vmatpush1.bf16.msra.mxu1 %v4158_v38  ;;  %v933_v38 = vsel %vm173_vm0, %v931_v58, %v932_v59  ;;  %v962_v59 = vrot.slane %v886_v54, 2 }
 0x188   :  { %1190 = vmatprep.subr.bf16.mxu1 %v4163_v61  ;;  %v942_v61 = vsel %vm173_vm0, %v940_v60, %v941_v36  ;;  %v970_v60 = vrot.slane %v889_v55, 2 }
 0x18a   :  { %757 = vmatmul.mubr.bf16.gmra.mrb[8].mxu1 %v500_v41  ;;  %v873_v41 = vld [vmem:[#allocation2 + $0x68] sm:$0xfc] }
 0x18b   :  { %1191 = vmatpush1.bf16.msra.mxu1 %v4161_v62  ;;  %766 = vmatprep.mubr.bf16.mxu1 %v418_v18  ;;  %v930_v18 = vsel %vm173_vm0, %v928_v13, %v929_v14  ;;  %v868_v62 = vld [vmem:[#allocation2 + $0x40] sm:$0xfc] }
 0x18c   :  { %1192 = vmatprep.subr.bf16.mxu1 %v4166_v40  ;;  %v870_v40 = vld [vmem:[#allocation2 + $0x50] sm:$0x3]  ;;  %v876_v14 = vld [vmem:[#allocation2 + $0x80] sm:$0xfc] }
 0x18f   :  { %1193 = vmatpush1.bf16.msra.mxu1 %v4164_v63  ;;  %v875_v63 = vld [vmem:[#allocation2 + $0x78] sm:$0x3] }
 0x190   :  { %1194 = vmatprep.subr.bf16.mxu1 %v4169_v42  ;;  %v4206_v42 = vld [vmem:[%s5769_s6 + $0x30] ss:$8 sps:$4 sm:$0xff]  }
 0x192   :  { %767 = vmatmul.mubr.bf16.gmra.mrb[12].mxu1 %v502_v1  ;;  %v938_v1 = vrot.slane %v870_v40, 2 }
 0x193   :  { %1195 = vmatpush1.bf16.msra.mxu1 %v4167_v0  ;;  %776 = vmatprep.mubr.bf16.mxu1 %v4798_v19  ;;  %v860_v19 = vld [vmem:[#allocation2] sm:$0xfc] }
 0x194   :  { %1196 = vmatprep.subr.bf16.mxu1 %v4172_v43  ;;  %v925_v25 = vrot.slane %v860_v19, 2  ;;  %v4211_v0 = vld [vmem:[%s5769_s6 + $0x44] ss:$8 sps:$4 sm:$0xff]   ;;  %v937_v43 = vrot.slane %v868_v62, 2  ;;  %v949_v19 = vrot.slane %v876_v14, 2 }
 0x197   :  { %1197 = vmatpush1.bf16.msra.mxu1 %v4170_v46  ;;  %v946_v46 = vrot.slane %v873_v41, 2 }
 0x198   :  { %1198 = vmatprep.subr.bf16.mxu1 %v4175_v2  ;;  %v947_v2 = vrot.slane %v875_v63, 2  ;;  %v1327_v63 = vld [vmem:[#allocation2 + $0x10] sm:$0xff] }
 0x19a   :  { %777 = vmatmul.mubr.bf16.gmra.mrb[16].mxu1 %v504_v45  ;;  %v939_v45 = vsel %vm173_vm0, %v937_v43, %v938_v1  ;;  %v1330_v43 = vld [vmem:[#allocation2 + $0x70] sm:$0xff] }
 0x19b   :  { %1199 = vmatpush1.bf16.msra.mxu1 %v4173_v44  ;;  %786 = vmatprep.mubr.bf16.mxu1 %v4800_v20  ;;  %v862_v20 = vld [vmem:[#allocation2 + $0x10] sm:$0x3]  ;;  %v4209_v44 = vld [vmem:[%s5769_s6 + $0x40] ss:$8 sps:$4 sm:$0xff]  }
 0x19c   :  { %1200 = vmatprep.subr.bf16.mxu1 %v4178_v3  ;;  %v926_v26 = vrot.slane %v862_v20, 2  ;;  %v4214_v3 = vld [vmem:[%s5769_s6 + $0x54] ss:$8 sps:$4 sm:$0xff]  }
 0x19d   :  { %v1331_v1 = vld [vmem:[#allocation2 + $0x90] sm:$0xff] }
 0x19e   :  { %v927_v33 = vsel %vm173_vm0, %v925_v25, %v926_v26  ;;  %v880_v25 = vld [vmem:[#allocation2 + $0xa0] sm:$0xfc]  ;;  %v882_v26 = vld [vmem:[#allocation2 + $0xb0] sm:$0x3] }
 0x19f   :  { %1201 = vmatpush1.bf16.msra.mxu1 %v4176_v4  ;;  %v948_v4 = vsel %vm173_vm0, %v946_v46, %v947_v2  ;;  %v1332_v46 = vld [vmem:[#allocation2 + $0xb0] sm:$0xff] }
 0x1a0   :  { %1202 = vmatprep.subr.bf16.mxu1 %v4181_v48  ;;  %v872_v48 = vld [vmem:[#allocation2 + $0x60] sm:$0xfc]  ;;  %v1333_v2 = vld [vmem:[#allocation2 + $0xd0] sm:$0xff] }
 0x1a2   :  { %787 = vmatmul.mubr.bf16.gmra.mrb[20].mxu1 %v506_v6  ;;  %v879_v6 = vld [vmem:[#allocation2 + $0x98] sm:$0x3] }
 0x1a3   :  { %1203 = vmatpush1.bf16.msra.mxu1 %v4179_v5  ;;  %796 = vmatprep.mubr.bf16.mxu1 %v4802_v21  ;;  %v4194_v21 = vld [vmem:[%s5796_s5 + $0x1f0] ss:$8 sps:$4 sm:$0xff]   ;;  %s4347_s5 = smov [#allocation6]  }
 0x1a4   :  { %1204 = vmatprep.subr.bf16.mxu1 %v4184_v47  ;;  %v874_v5 = vld [vmem:[#allocation2 + $0x70] sm:$0x3]  ;;  %v877_v47 = vld [vmem:[#allocation2 + $0x88] sm:$0xfc]  ;;  %s3431_s23 = sshll.u32 %s4347_s5, 4  ;;  %s3432_s23 = int_to_ptr.vmem [resolvable:$true] %s3431_s23 }
 0x1a5   :  { %p4300_p1 = scmp.lt.s32.totalorder %s3432_s23, %s3432_s23 }
 0x1a7   :  { %1205 = vmatpush1.bf16.msra.mxu1 %v4182_v49  ;;  %v4212_v49 = vld [vmem:[%s5769_s6 + $0x50] ss:$8 sps:$4 sm:$0xff]  }
 0x1a8   :  { %1206 = vmatprep.subr.bf16.mxu1 %v4187_v7  ;;  %v4217_v7 = vld [vmem:[%s5769_s6 + $0x64] ss:$8 sps:$4 sm:$0xff]  }
 0x1aa   :  { %797 = vmatmul.mubr.bf16.gmra.mrb[24].mxu1 %v508_v51  ;;  %v952_v51 = vrot.slane %v877_v47, 2 }
 0x1ab   :  { %1207 = vmatpush1.bf16.msra.mxu1 %v4185_v50  ;;  %806 = vmatprep.mubr.bf16.mxu1 %v4804_v22  ;;  %v865_v22 = vld [vmem:[#allocation2 + $0x28] sm:$0xfc]  ;;  %v943_v50 = vrot.slane %v872_v48, 2 }
 0x1ac   :  { %1208 = vmatprep.subr.bf16.mxu1 %v4190_v8  ;;  %v934_v27 = vrot.slane %v865_v22, 2  ;;  %v944_v8 = vrot.slane %v874_v5, 2 }
 0x1ae   :  { %v936_v34 = vsel %vm173_vm0, %v934_v27, %v935_v28  ;;  %v885_v27 = vld [vmem:[#allocation2 + $0xc8] sm:$0xfc]  ;;  %v887_v28 = vld [vmem:[#allocation2 + $0xd8] sm:$0x3] }
 0x1af   :  { %1209 = vmatpush1.bf16.msra.mxu1 %v4188_v9  ;;  %v953_v9 = vrot.slane %v879_v6, 2 }
 0x1b0   :  { %1210 = vmatprep.subr.bf16.mxu1 %v4193_v12  ;;  %v945_v12 = vsel %vm173_vm0, %v943_v50, %v944_v8 }
 0x1b1   :  { %v954_v13 = vsel %vm173_vm0, %v952_v51, %v953_v9 }
 0x1b2   :  { %807 = vmatmul.mubr.bf16.gmra.mrb[28].mxu1 %v510_v17  ;;  %v883_v17 = vld [vmem:[#allocation2 + $0xb8] sm:$0x3] }
 0x1b3   :  { %1211 = vmatpush1.bf16.msra.mxu1 %v4191_v15  ;;  %1214 = vmatprep.mubr.bf16.mxu1 %v930_v18  ;;  %v878_v15 = vld [vmem:[#allocation2 + $0x90] sm:$0x3]  ;;  %v959_v22 = vrot.slane %v883_v17, 2 }
 0x1b4   :  { %1212 = vmatprep.subr.bf16.mxu1 %v4196_v16  ;;  %v881_v16 = vld [vmem:[#allocation2 + $0xa8] sm:$0xfc]  ;;  %v4218_v18 = vld [vmem:[%s5769_s6 + $0x70] ss:$8 sps:$4 sm:$0xff]   ;;  %v950_v20 = vrot.slane %v878_v15, 2 }
 0x1b6   :  { %v951_v23 = vsel %vm173_vm0, %v949_v19, %v950_v20 }
 0x1b7   :  { %1213 = vmatpush1.bf16.msra.mxu1 %v4194_v21  ;;  %v958_v21 = vrot.slane %v881_v16, 2 }
 0x1b8   :  { %1431 = vmatprep.subr.bf16.mxu1 %v4199_v24 }
 0x1b9   :  { %v960_v24 = vsel %vm173_vm0, %v958_v21, %v959_v22 }
 0x1ba   :  { %1215 = vmatmul.mubr.bf16.vlgmr.msra.gmra.mrb[0].mxu1 %v927_v33  ;;  %v964_v33 = vrot.slane %v885_v27, 2 }
 0x1bb   :  { %1432 = vmatpush1.bf16.msra.mxu1 %v4197_v30  ;;  %1224 = vmatprep.mubr.bf16.mxu1 %v936_v34  ;;  %v955_v30 = vrot.slane %v880_v25, 2  ;;  %v965_v34 = vrot.slane %v887_v28, 2 }
 0x1bc   :  { %1433 = vmatprep.subr.bf16.mxu1 %v4202_v32  ;;  %v956_v32 = vrot.slane %v882_v26, 2 }
 0x1bd   :  { %v966_v52 = vsel %vm173_vm0, %v964_v33, %v965_v34 }
 0x1be   :  { %v957_v35 = vsel %vm173_vm0, %v955_v30, %v956_v32 }
 0x1bf   :  { %1434 = vmatpush1.bf16.msra.mxu1 %v4200_v53  ;;  %v884_v53 = vld [vmem:[#allocation2 + $0xc0] sm:$0xfc] }
 0x1c0   :  { %1435 = vmatprep.subr.bf16.mxu1 %v4205_v56  ;;  %v891_v56 = vld [vmem:[#allocation2 + $0xf8] sm:$0x3]  ;;  %v961_v58 = vrot.slane %v884_v53, 2  ;;  %v4221_v53 = vld [vmem:[%s5773_s10 + $0x40] sm:$0xff]  }
 0x1c1   :  { %v971_v36 = vrot.slane %v891_v56, 2  ;;  %v4222_v56 = vld [vmem:[%s5773_s10] sm:$0xff]   ;;  %3718 = vmatprep.subr.bf16.mxu0 %v4221_v53 }
 0x1c2   :  { %1225 = vmatmul.mubr.bf16.gmra.mrb[4].mxu1 %v933_v38  ;;  %v888_v38 = vld [vmem:[#allocation2 + $0xe0] sm:$0xfc]  ;;  %3719 = vmatpush3.bf16.msra.mxu0 %v4222_v56 }
 0x1c3   :  { %1234 = vmatprep.mubr.bf16.mxu1 %v942_v61  ;;  %1436 = vmatpush1.bf16.msra.mxu1 %v4203_v37  ;;  %v963_v37 = vsel %vm173_vm0, %v961_v58, %v962_v59  ;;  %v890_v61 = vld [vmem:[#allocation2 + $0xf0] sm:$0x3]  ;;  %v967_v62 = vrot.slane %v888_v38, 2 }
 0x1c4   :  { %1437 = vmatprep.subr.bf16.mxu1 %v4208_v39  ;;  %v972_v39 = vsel %vm173_vm0, %v970_v60, %v971_v36  ;;  %v968_v40 = vrot.slane %v890_v61, 2  ;;  %v4223_v61 = vld [vmem:[%s5773_s10 + $0x48] sm:$0xff]  }
 0x1c5   :  { %3720 = vmatprep.subr.bf16.mxu0 %v4223_v61 }
 0x1c6   :  { %v969_v41 = vsel %vm173_vm0, %v967_v62, %v968_v40  ;;  %v4224_v40 = vld [vmem:[%s5773_s10 + $0x8] sm:$0xff]  }
 0x1c7   :  { %1438 = vmatpush1.bf16.msra.mxu1 %v4206_v42  ;;  %v1328_v42 = vld [vmem:[#allocation2 + $0x30] sm:$0xff]  ;;  %3721 = vmatpush3.bf16.msra.mxu0 %v4224_v40 }
 0x1c8   :  { %1439 = vmatprep.subr.bf16.mxu1 %v4211_v0  ;;  %v1329_v0 = vld [vmem:[#allocation2 + $0x50] sm:$0xff] }
 0x1ca   :  { %1235 = vmatmul.mubr.bf16.gmra.mrb[8].mxu1 %v939_v45  ;;  %v4987_v45 = vsub.s32 1, %v4770_v29 }
 0x1cb   :  { %1244 = vmatprep.mubr.bf16.mxu1 %v948_v4  ;;  %1440 = vmatpush1.bf16.msra.mxu1 %v4209_v44  ;;  %v1334_v44 = vld [vmem:[#allocation2 + $0xf0] sm:$0xff] }
 0x1cc   :  { %1441 = vmatprep.subr.bf16.mxu1 %v4214_v3  ;;  %v495_v3 = vld [vmem:[%s5770_s7] sm:$0x3] }
 0x1cd   :  { %v4990_v4 = vrot.slane %v495_v3, %v4776_v31  ;;  %v4993_v48 = vrot.slane %v495_v3, %v4987_v45 }
 0x1cf   :  { %1442 = vmatpush1.bf16.msra.mxu1 %v4212_v49 }
 0x1d0   :  { %1443 = vmatprep.subr.bf16.mxu1 %v4217_v7 }
 0x1d2   :  { %1245 = vmatmul.mubr.bf16.gmra.mrb[12].mxu1 %v945_v12 }
 0x1d3   :  { %1254 = vmatprep.mubr.bf16.mxu1 %v954_v13  ;;  %1444 = vmatpush1.bf16.msra.mxu1 %v4215_v10 }
 0x1d4   :  { %1445 = vmatprep.subr.bf16.mxu1 %v4220_v11 }
 0x1d7   :  { %1446 = vmatpush1.bf16.msra.mxu1 %v4218_v18 }
 0x1da   :  { %1255 = vmatmul.mubr.bf16.gmra.mrb[16].mxu1 %v951_v23 }
 0x1db   :  { %1264 = vmatprep.mubr.bf16.mxu1 %v960_v24 }
 0x1e2   :  { %1265 = vmatmul.mubr.bf16.gmra.mrb[20].mxu1 %v957_v35 }
 0x1e3   :  { %1274 = vmatprep.mubr.bf16.mxu1 %v966_v52 }
 0x1ea   :  { %1275 = vmatmul.mubr.bf16.gmra.mrb[24].mxu1 %v963_v37 }
 0x1eb   :  { %1284 = vmatprep.mubr.bf16.mxu1 %v972_v39 }
 0x1f2   :  { %1285 = vmatmul.mubr.bf16.gmra.mrb[28].mxu1 %v969_v41 }
 0x1f3   :  { %1463 = vmatprep.mubr.bf16.mxu1 %v4343_v57 }
 0x1fa   :  { %1464 = vmatmul.mubr.bf16.vlgmr.msra.gmra.mrb[0].mxu1 %v1327_v63 }
 0x1fb   :  { %1473 = vmatprep.mubr.bf16.mxu1 %v4343_v57 }
 0x202   :  { %1474 = vmatmul.mubr.bf16.gmra.mrb[4].mxu1 %v1328_v42  ;;  %v4225_v42 = vld [vmem:[%s5773_s10 + $0x50] sm:$0xff]  }
 0x203   :  { %1483 = vmatprep.mubr.bf16.mxu1 %v4343_v57  ;;  %3722 = vmatprep.subr.bf16.mxu0 %v4225_v42 }
 0x20a   :  { %1484 = vmatmul.mubr.bf16.gmra.mrb[8].mxu1 %v1329_v0 }
 0x20b   :  { %1493 = vmatprep.mubr.bf16.mxu1 %v4343_v57 }
 0x212   :  { %1494 = vmatmul.mubr.bf16.gmra.mrb[12].mxu1 %v1330_v43 }
 0x213   :  { %1503 = vmatprep.mubr.bf16.mxu1 %v4343_v57 }
 0x21a   :  { %1504 = vmatmul.mubr.bf16.gmra.mrb[16].mxu1 %v1331_v1  ;;  %v4226_v1 = vld [vmem:[%s5773_s10 + $0x10] sm:$0xff]  }
 0x21b   :  { %1513 = vmatprep.mubr.bf16.mxu1 %v4343_v57  ;;  %3723 = vmatpush3.bf16.msra.mxu0 %v4226_v1 }
 0x222   :  { %1514 = vmatmul.mubr.bf16.gmra.mrb[20].mxu1 %v1332_v46 }
 0x223   :  { %1523 = vmatprep.mubr.bf16.mxu1 %v4343_v57 }
 0x22a   :  { %1524 = vmatmul.mubr.bf16.gmra.mrb[24].mxu1 %v1333_v2 }
 0x22b   :  { %1533 = vmatprep.mubr.bf16.mxu1 %v4343_v57 }
 0x232   :  { %1534 = vmatmul.mubr.bf16.gmra.mrb[28].mxu1 %v1334_v44 }
 0x2cd   :  { %v1465_v5 = vpop.f32.mrb[0].mxu1 }
 0x2ce   :  { %v1467_v47 = vpop.f32.mrb[1].mxu1  ;;  %v4996_v57 = vadd.f32 %v1465_v5, %v4990_v4 }
 0x2cf   :  { %v1469_v6 = vpop.f32.mrb[2].mxu1  ;;  %v5002_v50 = vadd.f32 %v1467_v47, %v4993_v48 }
 0x2d0   :  { %v4999_v49 = vadd.f32 %v1469_v6, %v4990_v4  ;;  %v1471_v7 = vpop.f32.mrb[3].mxu1 }
 0x2d1   :  { %v5005_v8 = vadd.f32 %v1471_v7, %v4993_v48  ;;  %v4227_v7 = vld [vmem:[%s5773_s10 + $0x58] sm:$0xff]  }
 0x2d2   :  { %v1578_v51 = vadd.f32 %v4999_v49, %v4996_v57  ;;  %3724 = vmatprep.subr.bf16.mxu0 %v4227_v7 }
 0x2d3   :  { %v1599_v9 = vadd.f32 %v5005_v8, %v5002_v50 }
 0x2d5   :  { %v1475_v10 = vpop.f32.mrb[4].mxu1 }
 0x2d6   :  { %v5012_v11 = vadd.f32 %v1475_v10, %v4990_v4  ;;  %v1477_v12 = vpop.f32.mrb[5].mxu1 }
 0x2d7   :  { %v5015_v13 = vadd.f32 %v1477_v12, %v4993_v48  ;;  %v1479_v14 = vpop.f32.mrb[6].mxu1 }
 0x2d8   :  { %v1579_v15 = vadd.f32 %v5012_v11, %v1578_v51  ;;  %v5019_v16 = vadd.f32 %v1479_v14, %v4990_v4  ;;  %v1481_v17 = vpop.f32.mrb[7].mxu1  ;;  %v4229_v14 = vld [vmem:[%s5773_s10 + $0x60] sm:$0xff]  }
 0x2d9   :  { %v1600_v18 = vadd.f32 %v5015_v13, %v1599_v9  ;;  %v5023_v19 = vadd.f32 %v1481_v17, %v4993_v48  ;;  %v4228_v9 = vld [vmem:[%s5773_s10 + $0x18] sm:$0xff]  }
 0x2da   :  { %v1580_v20 = vadd.f32 %v5019_v16, %v1579_v15  ;;  %3725 = vmatpush3.bf16.msra.mxu0 %v4228_v9 }
 0x2db   :  { %v1601_v21 = vadd.f32 %v5023_v19, %v1600_v18  ;;  %v4230_v18 = vld [vmem:[%s5773_s10 + $0x20] sm:$0xff]   ;;  %3726 = vmatprep.subr.bf16.mxu0 %v4229_v14 }
 0x2dd   :  { %v1485_v22 = vpop.f32.mrb[8].mxu1 }
 0x2de   :  { %v5028_v23 = vadd.f32 %v1485_v22, %v4990_v4  ;;  %v1487_v24 = vpop.f32.mrb[9].mxu1  ;;  %3727 = vmatpush3.bf16.msra.mxu0 %v4230_v18  ;;  %v4237_v18 = vld [vmem:[%s5773_s10 + $0xc0] sm:$0xff]  }
 0x2df   :  { %v5031_v25 = vadd.f32 %v1487_v24, %v4993_v48  ;;  %v1489_v26 = vpop.f32.mrb[10].mxu1 }
 0x2e0   :  { %v1581_v27 = vadd.f32 %v5028_v23, %v1580_v20  ;;  %v5035_v28 = vadd.f32 %v1489_v26, %v4990_v4  ;;  %v1491_v30 = vpop.f32.mrb[11].mxu1 }
 0x2e1   :  { %v1602_v32 = vadd.f32 %v5031_v25, %v1601_v21  ;;  %v5039_v33 = vadd.f32 %v1491_v30, %v4993_v48 }
 0x2e2   :  { %v1582_v34 = vadd.f32 %v5035_v28, %v1581_v27 }
 0x2e3   :  { %v1603_v35 = vadd.f32 %v5039_v33, %v1602_v32  ;;  %v4231_v32 = vld [vmem:[%s5773_s10 + $0x68] sm:$0xff]  }
 0x2e4   :  { %3728 = vmatprep.subr.bf16.mxu0 %v4231_v32 }
 0x2e5   :  { %v1495_v52 = vpop.f32.mrb[12].mxu1 }
 0x2e6   :  { %v5047_v54 = vadd.f32 %v1495_v52, %v4990_v4  ;;  %v1497_v55 = vpop.f32.mrb[13].mxu1 }
 0x2e7   :  { %v5053_v58 = vadd.f32 %v1497_v55, %v4993_v48  ;;  %v1499_v59 = vpop.f32.mrb[14].mxu1  ;;  %v4233_v55 = vld [vmem:[%s5773_s10 + $0x70] sm:$0xff]  }
 0x2e8   :  { %v1583_v60 = vadd.f32 %v5047_v54, %v1582_v34  ;;  %v5057_v36 = vadd.f32 %v1499_v59, %v4990_v4  ;;  %v1501_v37 = vpop.f32.mrb[15].mxu1 }
 0x2e9   :  { %v1604_v39 = vadd.f32 %v5053_v58, %v1603_v35  ;;  %v5061_v38 = vadd.f32 %v1501_v37, %v4993_v48  ;;  %v4232_v35 = vld [vmem:[%s5773_s10 + $0x28] sm:$0xff]   ;;  %v4235_v37 = vld [vmem:[%s5773_s10 + $0x78] sm:$0xff]  }
 0x2ea   :  { %v1584_v62 = vadd.f32 %v5057_v36, %v1583_v60  ;;  %3729 = vmatpush3.bf16.msra.mxu0 %v4232_v35  ;;  %v4234_v60 = vld [vmem:[%s5773_s10 + $0x30] sm:$0xff]  }
 0x2eb   :  { %v1605_v41 = vadd.f32 %v5061_v38, %v1604_v39  ;;  %3730 = vmatprep.subr.bf16.mxu0 %v4233_v55 }
 0x2ed   :  { %v1505_v63 = vpop.f32.mrb[16].mxu1 }
 0x2ee   :  { %v5075_v0 = vadd.f32 %v1505_v63, %v4990_v4  ;;  %v1507_v43 = vpop.f32.mrb[17].mxu1  ;;  %3731 = vmatpush3.bf16.msra.mxu0 %v4234_v60  ;;  %v4236_v63 = vld [vmem:[%s5773_s10 + $0x38] sm:$0xff]  }
 0x2ef   :  { %v5081_v46 = vadd.f32 %v1507_v43, %v4993_v48  ;;  %v1509_v2 = vpop.f32.mrb[18].mxu1  ;;  %3732 = vmatprep.subr.bf16.mxu0 %v4235_v37 }
 0x2f0   :  { %v1585_v44 = vadd.f32 %v5075_v0, %v1584_v62  ;;  %v5085_v3 = vadd.f32 %v1509_v2, %v4990_v4  ;;  %v1511_v5 = vpop.f32.mrb[19].mxu1 }
 0x2f1   :  { %v1606_v47 = vadd.f32 %v5081_v46, %v1605_v41  ;;  %v5089_v6 = vadd.f32 %v1511_v5, %v4993_v48 }
 0x2f2   :  { %v1586_v51 = vadd.f32 %v5085_v3, %v1585_v44  ;;  %3733 = vmatpush3.bf16.msra.mxu0 %v4236_v63 }
 0x2f3   :  { %v1607_v10 = vadd.f32 %v5089_v6, %v1606_v47  ;;  %3782 = vmatprep.subr.bf16.mxu0 %v4237_v18 }
 0x2f5   :  { %v1515_v12 = vpop.f32.mrb[20].mxu1 }
 0x2f6   :  { %v5103_v15 = vadd.f32 %v1515_v12, %v4990_v4  ;;  %v1517_v17 = vpop.f32.mrb[21].mxu1 }
 0x2f7   :  { %v5109_v20 = vadd.f32 %v1517_v17, %v4993_v48  ;;  %v1519_v21 = vpop.f32.mrb[22].mxu1 }
 0x2f8   :  { %v1587_v22 = vadd.f32 %v5103_v15, %v1586_v51  ;;  %v5113_v24 = vadd.f32 %v1519_v21, %v4990_v4  ;;  %v1521_v26 = vpop.f32.mrb[23].mxu1 }
 0x2f9   :  { %v1608_v27 = vadd.f32 %v5109_v20, %v1607_v10  ;;  %v5117_v30 = vadd.f32 %v1521_v26, %v4993_v48 }
 0x2fa   :  { %v1588_v34 = vadd.f32 %v5113_v24, %v1587_v22 }
 0x2fb   :  { %v1609_v52 = vadd.f32 %v5117_v30, %v1608_v27 }
 0x2fd   :  { %v1525_v53 = vpop.f32.mrb[24].mxu1 }
 0x2fe   :  { %v4012_v56 = vadd.f32 %v1525_v53, %v4990_v4  ;;  %v1527_v59 = vpop.f32.mrb[25].mxu1 }
 0x2ff   :  { %v5138_v39 = vadd.f32 %v1527_v59, %v4993_v48  ;;  %v1529_v61 = vpop.f32.mrb[26].mxu1 }
 0x300   :  { %v1589_v62 = vadd.f32 %v4012_v56, %v1588_v34  ;;  %v4014_v40 = vadd.f32 %v1529_v61, %v4990_v4  ;;  %v1531_v41 = vpop.f32.mrb[27].mxu1 }
 0x301   :  { %v1610_v42 = vadd.f32 %v5138_v39, %v1609_v52  ;;  %v5146_v43 = vadd.f32 %v1531_v41, %v4993_v48 }
 0x302   :  { %v1590_v1 = vadd.f32 %v4014_v40, %v1589_v62 }
 0x303   :  { %v1611_v2 = vadd.f32 %v5146_v43, %v1610_v42 }
 0x305   :  { %v1535_v44 = vpop.f32.mrb[28].mxu1 }
 0x306   :  { %v4016_v5 = vadd.f32 %v1535_v44, %v4990_v4  ;;  %v1537_v47 = vpop.f32.mrb[29].mxu1 }
 0x307   :  { %v5151_v7 = vadd.f32 %v1537_v47, %v4993_v48  ;;  %v1539_v51 = vpop.f32.mrb[30].mxu1 }
 0x308   :  { %v1591_v9 = vadd.f32 %v4016_v5, %v1590_v1  ;;  %v4018_v10 = vadd.f32 %v1539_v51, %v4990_v4  ;;  %v1541_v12 = vpop.f32.mrb[31].mxu1 }
 0x309   :  { %v1612_v14 = vadd.f32 %v5151_v7, %v1611_v2  ;;  %v4019_v17 = vadd.f32 %v1541_v12, %v4993_v48 }
 0x30a   :  { %v1592_v21 = vadd.f32 %v4018_v10, %v1591_v9 }
 0x30b   :  { %v1613_v22 = vadd.f32 %v4019_v17, %v1612_v14 }
 0x30c   :  { %v1593_v26 = vrot.slane %v1592_v21, 4 }
 0x30d   :  { %v1614_v27 = vrot.slane %v1613_v22, 4 }
 0x30e   :  { %v1594_v32 = vadd.f32 %v1593_v26, %v1592_v21 }
 0x30f   :  { %v1615_v34 = vadd.f32 %v1614_v27, %v1613_v22 }
 0x310   :  { %v1595_v35 = vrot.slane %v1594_v32, 2 }
 0x311   :  { %v1616_v52 = vrot.slane %v1615_v34, 2 }
 0x312   :  { %v1596_v53 = vadd.f32 %v1595_v35, %v1594_v32 }
 0x313   :  { %v1617_v4 = vadd.f32 %v1616_v52, %v1615_v34 }
 0x314   :  { %v1597_v55 = vrot.slane %v1596_v53, 1 }
 0x315   :  { %v1618_v59 = vrot.slane %v1617_v4, 1 }
 0x316   :  { %v1598_v60 = vadd.f32 %v1597_v55, %v1596_v53 }
 0x317   :  { %v1619_v48 = vadd.f32 %v1618_v59, %v1617_v4 }
 0x318   :  { %v1620_v37 = vmul.f32 0.0078125, %v1598_v60 }
 0x319   :  { %v1621_v47 = vmul.f32 0.0078125, %v1619_v48 }
 0x31a   :  { %v5160_v61 = vsub.f32 %v4996_v57, %v1620_v37  ;;  %v5163_v62 = vsub.f32 %v4999_v49, %v1620_v37  ;;  %v5166_v41 = vsub.f32 %v5012_v11, %v1620_v37  ;;  %v5169_v63 = vsub.f32 %v5019_v16, %v1620_v37 }
 0x31b   :  { %v5172_v42 = vsub.f32 %v5028_v23, %v1620_v37  ;;  %v5175_v1 = vsub.f32 %v5035_v28, %v1620_v37  ;;  %v5178_v2 = vsub.f32 %v5047_v54, %v1620_v37  ;;  %v5181_v57 = vsub.f32 %v5057_v36, %v1620_v37 }
 0x31c   :  { %v5184_v49 = vsub.f32 %v5075_v0, %v1620_v37  ;;  %v5187_v11 = vsub.f32 %v5085_v3, %v1620_v37  ;;  %v5190_v16 = vsub.f32 %v5103_v15, %v1620_v37  ;;  %v5193_v23 = vsub.f32 %v5113_v24, %v1620_v37 }
 0x31d   :  { %v5195_v28 = vsub.f32 %v4012_v56, %v1620_v37  ;;  %v5197_v44 = vsub.f32 %v4014_v40, %v1620_v37  ;;  %v5199_v54 = vsub.f32 %v4016_v5, %v1620_v37  ;;  %v5201_v36 = vsub.f32 %v4018_v10, %v1620_v37 }
 0x31e   :  { %v1654_v0 = vmul.f32 %v5160_v61, %v5160_v61  ;;  %v1656_v3 = vmul.f32 %v5163_v62, %v5163_v62  ;;  %v1658_v15 = vmul.f32 %v5166_v41, %v5166_v41  ;;  %v1660_v24 = vmul.f32 %v5169_v63, %v5169_v63 }
 0x31f   :  { %v5212_v40 = vsub.f32 %v5002_v50, %v1621_v47  ;;  %v5215_v5 = vsub.f32 %v5005_v8, %v1621_v47  ;;  %v5218_v51 = vsub.f32 %v5015_v13, %v1621_v47  ;;  %v5221_v9 = vsub.f32 %v5023_v19, %v1621_v47 }
 0x320   :  { %v1686_v56 = vadd.f32 %v1656_v3, %v1654_v0  ;;  %v5224_v10 = vsub.f32 %v5031_v25, %v1621_v47  ;;  %v5227_v12 = vsub.f32 %v5039_v33, %v1621_v47  ;;  %v5230_v14 = vsub.f32 %v5053_v58, %v1621_v47 }
 0x321   :  { %v5233_v18 = vsub.f32 %v5061_v38, %v1621_v47  ;;  %v5236_v8 = vsub.f32 %v5081_v46, %v1621_v47  ;;  %v5239_v13 = vsub.f32 %v5089_v6, %v1621_v47  ;;  %v5242_v19 = vsub.f32 %v5109_v20, %v1621_v47 }
 0x322   :  { %v1687_v50 = vadd.f32 %v1686_v56, %v1658_v15  ;;  %v5245_v25 = vsub.f32 %v5117_v30, %v1621_v47  ;;  %v5248_v33 = vsub.f32 %v5138_v39, %v1621_v47  ;;  %v5251_v58 = vsub.f32 %v5146_v43, %v1621_v47 }
 0x323   :  { %v1662_v38 = vmul.f32 %v5172_v42, %v5172_v42  ;;  %v5256_v21 = vsub.f32 %v5151_v7, %v1621_v47  ;;  %v5258_v6 = vsub.f32 %v4019_v17, %v1621_v47  ;;  %v1655_v20 = vmul.f32 %v5212_v40, %v5212_v40 }
 0x324   :  { %v1688_v46 = vadd.f32 %v1687_v50, %v1660_v24  ;;  %v1657_v30 = vmul.f32 %v5215_v5, %v5215_v5  ;;  %v1664_v39 = vmul.f32 %v5175_v1, %v5175_v1  ;;  %v1666_v22 = vmul.f32 %v5178_v2, %v5178_v2 }
 0x325   :  { %v1659_v7 = vmul.f32 %v5218_v51, %v5218_v51  ;;  %v1668_v17 = vmul.f32 %v5181_v57, %v5181_v57  ;;  %v1661_v34 = vmul.f32 %v5221_v9, %v5221_v9  ;;  %v1670_v52 = vmul.f32 %v5184_v49, %v5184_v49 }
 0x326   :  { %v1689_v43 = vadd.f32 %v1688_v46, %v1662_v38  ;;  %v1707_v27 = vadd.f32 %v1657_v30, %v1655_v20  ;;  %v1663_v4 = vmul.f32 %v5224_v10, %v5224_v10  ;;  %v1672_v59 = vmul.f32 %v5187_v11, %v5187_v11 }
 0x327   :  { %v1665_v37 = vmul.f32 %v5227_v12, %v5227_v12  ;;  %v1674_v0 = vmul.f32 %v5190_v16, %v5190_v16  ;;  %v1667_v47 = vmul.f32 %v5230_v14, %v5230_v14  ;;  %v1676_v24 = vmul.f32 %v5193_v23, %v5193_v23 }
 0x328   :  { %v1690_v26 = vadd.f32 %v1689_v43, %v1664_v39  ;;  %v1708_v35 = vadd.f32 %v1707_v27, %v1659_v7  ;;  %v1669_v50 = vmul.f32 %v5233_v18, %v5233_v18  ;;  %v1678_v46 = vmul.f32 %v5195_v28, %v5195_v28 }
 0x329   :  { %v1671_v30 = vmul.f32 %v5236_v8, %v5236_v8  ;;  %v1680_v43 = vmul.f32 %v5197_v44, %v5197_v44  ;;  %v1682_v27 = vmul.f32 %v5199_v54, %v5199_v54 }
 0x32a   :  { %v1691_v32 = vadd.f32 %v1690_v26, %v1666_v22  ;;  %v1709_v55 = vadd.f32 %v1708_v35, %v1661_v34  ;;  %v1673_v26 = vmul.f32 %v5239_v13, %v5239_v13  ;;  %v1684_v35 = vmul.f32 %v5201_v36, %v5201_v36 }
 0x32c   :  { %v1692_v53 = vadd.f32 %v1691_v32, %v1668_v17  ;;  %v1710_v48 = vadd.f32 %v1709_v55, %v1663_v4  ;;  %v1675_v32 = vmul.f32 %v5242_v19, %v5242_v19 }
 0x32e   :  { %v1693_v60 = vadd.f32 %v1692_v53, %v1670_v52  ;;  %v1711_v15 = vadd.f32 %v1710_v48, %v1665_v37  ;;  %v1677_v53 = vmul.f32 %v5245_v25, %v5245_v25  ;;  %v1681_v48 = vmul.f32 %v5251_v58, %v5251_v58 }
 0x330   :  { %v1694_v3 = vadd.f32 %v1693_v60, %v1672_v59  ;;  %v1712_v38 = vadd.f32 %v1711_v15, %v1667_v47  ;;  %v1679_v59 = vmul.f32 %v5248_v33, %v5248_v33  ;;  %v1683_v47 = vmul.f32 %v5256_v21, %v5256_v21 }
 0x332   :  { %v1695_v56 = vadd.f32 %v1694_v3, %v1674_v0  ;;  %v1713_v39 = vadd.f32 %v1712_v38, %v1669_v50 }
 0x334   :  { %v1696_v20 = vadd.f32 %v1695_v56, %v1676_v24  ;;  %v1714_v7 = vadd.f32 %v1713_v39, %v1671_v30  ;;  %v1685_v56 = vmul.f32 %v5258_v6, %v5258_v6 }
 0x336   :  { %v1697_v22 = vadd.f32 %v1696_v20, %v1678_v46  ;;  %v1715_v34 = vadd.f32 %v1714_v7, %v1673_v26 }
 0x338   :  { %v1698_v17 = vadd.f32 %v1697_v22, %v1680_v43  ;;  %v1716_v4 = vadd.f32 %v1715_v34, %v1675_v32 }
 0x33a   :  { %v1699_v52 = vadd.f32 %v1698_v17, %v1682_v27  ;;  %v1717_v60 = vadd.f32 %v1716_v4, %v1677_v53 }
 0x33c   :  { %v1700_v55 = vadd.f32 %v1699_v52, %v1684_v35  ;;  %v1718_v0 = vadd.f32 %v1717_v60, %v1679_v59  ;;  %v4344_v52 = vmov 1966171168  }
 0x33d   :  { %v1738_v53 = vunpack.c.l.s4 %v4344_v52 }
 0x33e   :  { %v1701_v37 = vrot.slane %v1700_v55, 4  ;;  %v1719_v15 = vadd.f32 %v1718_v0, %v1681_v48  ;;  %v1576_v0 = vld [vmem:[%s5771_s8] sm:$0x3] }
 0x33f   :  { %v1739_v4 = vunpack.c.0.s8 %v1738_v53 }
 0x340   :  { %v1702_v3 = vadd.f32 %v1701_v37, %v1700_v55  ;;  %v1720_v50 = vadd.f32 %v1719_v15, %v1683_v47  ;;  %v1577_v47 = vld [vmem:[%s5772_s9] sm:$0x3] }
 0x341   :  { %v1742_v59 = vsub.s32 %v1739_v4, %v4770_v29  ;;  %v1804_v29 = vrot.slane %v1577_v47, %v4987_v45 }
 0x342   :  { %v1703_v24 = vrot.slane %v1702_v3, 2  ;;  %v1721_v46 = vadd.f32 %v1720_v50, %v1685_v56  ;;  %v5323_v56 = vrot.slane %v1577_v47, %v4776_v31 }
 0x344   :  { %v1704_v38 = vadd.f32 %v1703_v24, %v1702_v3  ;;  %v1722_v30 = vrot.slane %v1721_v46, 4 }
 0x346   :  { %v1705_v20 = vrot.slane %v1704_v38, 1  ;;  %v1723_v43 = vadd.f32 %v1722_v30, %v1721_v46 }
 0x348   :  { %v1706_v39 = vadd.f32 %v1705_v20, %v1704_v38  ;;  %v1724_v22 = vrot.slane %v1723_v43, 2 }
 0x34a   :  { %v1728_v26 = vmul.f32 0.0078125, %v1706_v39  ;;  %v1725_v7 = vadd.f32 %v1724_v22, %v1723_v43 }
 0x34c   :  { %v1726_v27 = vrot.slane %v1725_v7, 1  ;;  %v1730_v17 = vadd.f32 1e-05, %v1728_v26 }
 0x34e   :  { %v1727_v32 = vadd.f32 %v1726_v27, %v1725_v7  ;;  %4287 = vrsqrt.f32 %v1730_v17 }
 0x350   :  { %v1729_v34 = vmul.f32 0.0078125, %v1727_v32 }
 0x352   :  { %v1731_v35 = vadd.f32 1e-05, %v1729_v34 }
 0x354   :  { %4289 = vrsqrt.f32 %v1731_v35 }
 0x358   :  { %v4288_v55 = vpop.eup %4287 }
 0x35e   :  { %v4290_v60 = vpop.eup %4289 }
 0x35f   :  { %v1736_v37 = vcombine.low %v4288_v55, %v4290_v60 }
 0x361   :  { %v1743_v48 = vrot.slane %v1736_v37, %v1742_v59 }
 0x363   :  { %v1750_v3 = vrot.slane %v1743_v48, %v1742_v59 }
 0x365   :  { %v1752_v15 = vmul.f32 %v1750_v3, %v1576_v0 }
 0x367   :  { %v1761_v24 = vrot.slane %v1752_v15, %v4987_v45  ;;  %v5327_v50 = vrot.slane %v1752_v15, %v4776_v31 }
 0x369   :  { %v1765_v38 = vmul.f32 %v1761_v24, %v5212_v40  ;;  %v1767_v46 = vmul.f32 %v1761_v24, %v5215_v5  ;;  %v1769_v20 = vmul.f32 %v1761_v24, %v5218_v51  ;;  %v1771_v30 = vmul.f32 %v1761_v24, %v5221_v9 }
 0x36a   :  { %v1773_v39 = vmul.f32 %v1761_v24, %v5224_v10  ;;  %v1775_v43 = vmul.f32 %v1761_v24, %v5227_v12  ;;  %v1777_v22 = vmul.f32 %v1761_v24, %v5230_v14  ;;  %v1779_v26 = vmul.f32 %v1761_v24, %v5233_v18 }
 0x36b   :  { %v1781_v45 = vmul.f32 %v1761_v24, %v5236_v8  ;;  %v1783_v7 = vmul.f32 %v1761_v24, %v5239_v13  ;;  %v1785_v40 = vmul.f32 %v1761_v24, %v5242_v19  ;;  %v1787_v5 = vmul.f32 %v1761_v24, %v5245_v25 }
 0x36c   :  { %v1789_v51 = vmul.f32 %v1761_v24, %v5248_v33  ;;  %v1791_v9 = vmul.f32 %v1761_v24, %v5251_v58  ;;  %v1793_v10 = vmul.f32 %v1761_v24, %v5256_v21  ;;  %v1795_v12 = vmul.f32 %v1761_v24, %v5258_v6 }
 0x36d   :  { %v1814_v27 = vadd.f32 %v1804_v29, %v1771_v30  ;;  %v1816_v14 = vadd.f32 %v1804_v29, %v1773_v39  ;;  %v1818_v17 = vadd.f32 %v1804_v29, %v1775_v43  ;;  %v1820_v18 = vadd.f32 %v1804_v29, %v1777_v22 }
 0x36e   :  { %v1822_v32 = vadd.f32 %v1804_v29, %v1779_v26  ;;  %v1824_v8 = vadd.f32 %v1804_v29, %v1781_v45  ;;  %v1826_v34 = vadd.f32 %v1804_v29, %v1783_v7  ;;  %v1828_v13 = vadd.f32 %v1804_v29, %v1785_v40 }
 0x36f   :  { %v1830_v35 = vadd.f32 %v1804_v29, %v1787_v5  ;;  %v1832_v19 = vadd.f32 %v1804_v29, %v1789_v51  ;;  %v1834_v52 = vadd.f32 %v1804_v29, %v1791_v9  ;;  %v1836_v25 = vadd.f32 %v1804_v29, %v1793_v10 }
 0x370   :  { %v1838_v53 = vadd.f32 %v1804_v29, %v1795_v12  ;;  %v1848_v33 = vmax.f32 %v1816_v14, 0.0  ;;  %v1850_v4 = vmax.f32 %v1818_v17, 0.0  ;;  %v1852_v58 = vmax.f32 %v1820_v18, 0.0 }
 0x371   :  { %v1854_v55 = vmax.f32 %v1822_v32, 0.0  ;;  %v1856_v21 = vmax.f32 %v1824_v8, 0.0  ;;  %v1858_v59 = vmax.f32 %v1826_v34, 0.0  ;;  %v1860_v6 = vmax.f32 %v1828_v13, 0.0 }
 0x372   :  { %v1862_v60 = vmax.f32 %v1830_v35, 0.0  ;;  %v1864_v37 = vmax.f32 %v1832_v19, 0.0  ;;  %v1866_v48 = vmax.f32 %v1834_v52, 0.0  ;;  %v1868_v0 = vmax.f32 %v1836_v25, 0.0 }
 0x373   :  { %v1870_v3 = vmax.f32 %v1838_v53, 0.0  ;;  %v1878_v47 = vpack.c.bf16 %v1854_v55, %v1852_v58  ;;  %v1880_v15 = vpack.c.bf16 %v1858_v59, %v1856_v21  ;;  %v1808_v24 = vadd.f32 %v1804_v29, %v1765_v38 }
 0x374   :  { %v1882_v30 = vpack.c.bf16 %v1862_v60, %v1860_v6  ;;  %v1884_v39 = vpack.c.bf16 %v1866_v48, %v1864_v37  ;;  %v1810_v43 = vadd.f32 %v1804_v29, %v1767_v46  ;;  %v1764_v22 = vmul.f32 %v5327_v50, %v5160_v61 }
 0x375   :  { %v1886_v26 = vpack.c.bf16 %v1870_v3, %v1868_v0  ;;  %v1942_v45 = vrot.slane %v1878_v47, 4  ;;  %v1944_v7 = vrot.slane %v1880_v15, 4  ;;  %v1840_v40 = vmax.f32 %v1808_v24, 0.0 }
 0x376   :  { %v1946_v5 = vrot.slane %v1882_v30, 4  ;;  %v1948_v51 = vrot.slane %v1884_v39, 4  ;;  %v1842_v9 = vmax.f32 %v1810_v43, 0.0  ;;  %v1766_v10 = vmul.f32 %v5327_v50, %v5163_v62 }
 0x377   :  { %v1950_v12 = vrot.slane %v1886_v26, 4  ;;  %1982 = vst [vmem:[#allocation3 + $0x78] ss:$-12 sps:$4 sm:$0xff] %v1942_v45   ;;  %1984 = vst [vmem:[#allocation3 + $0x98] ss:$-12 sps:$4 sm:$0xff] %v1944_v7   ;;  %v1807_v38 = vadd.f32 %v5323_v56, %v1764_v22  ;;  %v1812_v14 = vadd.f32 %v1804_v29, %v1769_v20  ;;  %v1846_v46 = vmax.f32 %v1814_v27, 0.0 }
 0x378   :  { %1988 = vst [vmem:[#allocation3 + $0xb8] ss:$-12 sps:$4 sm:$0xff] %v1946_v5   ;;  %1992 = vst [vmem:[#allocation3 + $0xd8] ss:$-12 sps:$4 sm:$0xff] %v1948_v51   ;;  %v1872_v61 = vpack.c.bf16 %v1842_v9, %v1840_v40  ;;  %v1809_v17 = vadd.f32 %v5323_v56, %v1766_v10  ;;  %v1768_v18 = vmul.f32 %v5327_v50, %v5166_v41 }
 0x379   :  { %v1770_v32 = vmul.f32 %v5327_v50, %v5169_v63  ;;  %1996 = vst [vmem:[#allocation3 + $0xf8] ss:$-12 sps:$4 sm:$0xff] %v1950_v12   ;;  %v1839_v62 = vmax.f32 %v1807_v38, 0.0  ;;  %v1844_v8 = vmax.f32 %v1812_v14, 0.0  ;;  %v1876_v34 = vpack.c.bf16 %v1850_v4, %v1848_v33  ;;  %v4239_v14 = vld [vmem:[%s5773_s10 + $0xc8] sm:$0xff]  }
 0x37a   :  { %v1772_v13 = vmul.f32 %v5327_v50, %v5172_v42  ;;  %v1936_v29 = vrot.slane %v1872_v61, 4  ;;  %v1841_v20 = vmax.f32 %v1809_v17, 0.0  ;;  %v1811_v27 = vadd.f32 %v5323_v56, %v1768_v18 }
 0x37b   :  { %v1813_v35 = vadd.f32 %v5323_v56, %v1770_v32  ;;  %v1874_v19 = vpack.c.bf16 %v1846_v46, %v1844_v8  ;;  %v1940_v52 = vrot.slane %v1876_v34, 4  ;;  %v1774_v41 = vmul.f32 %v5327_v50, %v5175_v1 }
 0x37c   :  { %v1815_v63 = vadd.f32 %v5323_v56, %v1772_v13  ;;  %1968 = vst [vmem:[#allocation3 + $0x18] ss:$-12 sps:$4 sm:$0xff] %v1936_v29   ;;  %v1871_v25 = vpack.c.bf16 %v1841_v20, %v1839_v62  ;;  %v1843_v53 = vmax.f32 %v1811_v27, 0.0  ;;  %v1776_v42 = vmul.f32 %v5327_v50, %v5178_v2  ;;  %v4241_v20 = vld [vmem:[%s5773_s10 + $0xd0] sm:$0xff]  }
 0x37d   :  { %v1845_v33 = vmax.f32 %v1813_v35, 0.0  ;;  %v1938_v4 = vrot.slane %v1874_v19, 4  ;;  %1976 = vst [vmem:[#allocation3 + $0x58] ss:$-12 sps:$4 sm:$0xff] %v1940_v52   ;;  %v1817_v58 = vadd.f32 %v5323_v56, %v1774_v41  ;;  %v1778_v21 = vmul.f32 %v5327_v50, %v5181_v57  ;;  %v4242_v35 = vld [vmem:[%s5773_s10 + $0x90] sm:$0xff]   ;;  %v4243_v52 = vld [vmem:[%s5773_s10 + $0xd8] sm:$0xff]  }
 0x37e   :  { %v1847_v55 = vmax.f32 %v1815_v63, 0.0  ;;  %v1935_v59 = vrot.slane %v1871_v25, 4  ;;  %v1819_v1 = vadd.f32 %v5323_v56, %v1776_v42  ;;  %v1780_v60 = vmul.f32 %v5327_v50, %v5184_v49  ;;  %v4244_v25 = vld [vmem:[%s5773_s10 + $0x98] sm:$0xff]   ;;  %v4247_v42 = vld [vmem:[%s5773_s10 + $0xe8] sm:$0xff]  }
 0x37f   :  { %v1873_v6 = vpack.c.bf16 %v1845_v33, %v1843_v53  ;;  %1972 = vst [vmem:[#allocation3 + $0x38] ss:$-12 sps:$4 sm:$0xff] %v1938_v4   ;;  %v1849_v37 = vmax.f32 %v1817_v58, 0.0  ;;  %v1821_v48 = vadd.f32 %v5323_v56, %v1778_v21  ;;  %v1782_v2 = vmul.f32 %v5327_v50, %v5187_v11  ;;  %v4245_v53 = vld [vmem:[%s5773_s10 + $0xe0] sm:$0xff]   ;;  %v2007_v58 = vld [vmem:[#allocation3 + $0x68] sm:$0xff]  ;;  %v4249_v21 = vld [vmem:[%s5773_s10 + $0xf0] sm:$0xff]  }
 0x380   :  { %v1784_v0 = vmul.f32 %v5327_v50, %v5190_v16  ;;  %1967 = vst [vmem:[#allocation3 + $0x10] ss:$-12 sps:$4 sm:$0xff] %v1935_v59   ;;  %v1851_v57 = vmax.f32 %v1819_v1, 0.0  ;;  %v1823_v47 = vadd.f32 %v5323_v56, %v1780_v60  ;;  %v1786_v15 = vmul.f32 %v5327_v50, %v5193_v23  ;;  %v4246_v33 = vld [vmem:[%s5773_s10 + $0xa0] sm:$0xff]   ;;  %v4250_v59 = vld [vmem:[%s5773_s10 + $0xb0] sm:$0xff]   ;;  %v2009_v60 = vld [vmem:[#allocation3 + $0x88] sm:$0xff] }
 0x381   :  { %v1937_v3 = vrot.slane %v1873_v6, 4  ;;  %v1875_v24 = vpack.c.bf16 %v1849_v37, %v1847_v55  ;;  %v1853_v49 = vmax.f32 %v1821_v48, 0.0  ;;  %v1825_v30 = vadd.f32 %v5323_v56, %v1782_v2  ;;  %v4248_v55 = vld [vmem:[%s5773_s10 + $0xa8] sm:$0xff]   ;;  %v4251_v6 = vld [vmem:[%s5773_s10 + $0xf8] sm:$0xff]   ;;  %v4253_v48 = vld [vmem:[%s5773_s10 + $0x140] sm:$0xff]  }
 0x382   :  { %v1827_v39 = vadd.f32 %v5323_v56, %v1784_v0  ;;  %v1855_v43 = vmax.f32 %v1823_v47, 0.0  ;;  %v1829_v11 = vadd.f32 %v5323_v56, %v1786_v15  ;;  %v1788_v16 = vmul.f32 %v5327_v50, %v5195_v28  ;;  %v4238_v28 = vld [vmem:[%s5773_s10 + $0x80] sm:$0xff]   ;;  %v4252_v37 = vld [vmem:[%s5773_s10 + $0xb8] sm:$0xff]   ;;  %v2011_v0 = vld [vmem:[#allocation3 + $0xa8] sm:$0xff] }
 0x383   :  { %1971 = vst [vmem:[#allocation3 + $0x30] ss:$-12 sps:$4 sm:$0xff] %v1937_v3   ;;  %v1790_v22 = vmul.f32 %v5327_v50, %v5197_v44  ;;  %v2001_v26 = vld [vmem:[#allocation3 + $0x8] sm:$0xff]  ;;  %v1939_v45 = vrot.slane %v1875_v24, 4  ;;  %v1877_v7 = vpack.c.bf16 %v1853_v49, %v1851_v57  ;;  %v1857_v23 = vmax.f32 %v1825_v30, 0.0 }
 0x384   :  { %v1859_v40 = vmax.f32 %v1827_v39, 0.0  ;;  %2176 = vmatprep.mubr.bf16.mxu0 %v2001_v26  ;;  %v1861_v5 = vmax.f32 %v1829_v11, 0.0  ;;  %v1831_v51 = vadd.f32 %v5323_v56, %v1788_v16  ;;  %v1792_v10 = vmul.f32 %v5327_v50, %v5199_v54  ;;  %v2005_v63 = vld [vmem:[#allocation3 + $0x48] sm:$0xff]  ;;  %v2266_v49 = vld [vmem:[#allocation3 + $0x18] sm:$0xf] }
 0x385   :  { %v1833_v9 = vadd.f32 %v5323_v56, %v1790_v22  ;;  %1975 = vst [vmem:[#allocation3 + $0x50] ss:$-12 sps:$4 sm:$0xff] %v1939_v45   ;;  %v1941_v44 = vrot.slane %v1877_v7, 4  ;;  %v1879_v12 = vpack.c.bf16 %v1857_v23, %v1855_v43  ;;  %v1794_v38 = vmul.f32 %v5327_v50, %v5201_v36  ;;  %v4240_v36 = vld [vmem:[%s5773_s10 + $0x88] sm:$0xff]  }
 0x386   :  { %v1881_v46 = vpack.c.bf16 %v1861_v5, %v1859_v40  ;;  %v1863_v61 = vmax.f32 %v1831_v51, 0.0  ;;  %v1835_v18 = vadd.f32 %v5323_v56, %v1792_v10  ;;  %v2003_v8 = vld [vmem:[#allocation3 + $0x28] sm:$0xff]  ;;  %v2332_v39 = vrot.slane %v2266_v49, 4  ;;  %v2270_v45 = vld [vmem:[#allocation3 + $0x38] sm:$0xf]  ;;  %v4254_v51 = vld [vmem:[%s5773_s10 + $0x100] sm:$0xff]  }
 0x387   :  { %v1865_v17 = vmax.f32 %v1833_v9, 0.0  ;;  %v2000_v54 = vld [vmem:[#allocation3] sm:$0xff]  ;;  %1979 = vst [vmem:[#allocation3 + $0x70] ss:$-12 sps:$4 sm:$0xff] %v1941_v44   ;;  %v1943_v32 = vrot.slane %v1879_v12, 4  ;;  %v1837_v62 = vadd.f32 %v5323_v56, %v1794_v38  ;;  %v2013_v57 = vld [vmem:[#allocation3 + $0xc8] sm:$0xff] }
 0x388   :  { %2177 = vmatmul.mubr.bf16.vlgmr.msra.gmra.mrb[16].mxu0 %v2000_v54  ;;  %v1945_v34 = vrot.slane %v1881_v46, 4  ;;  %v1867_v29 = vmax.f32 %v1835_v18, 0.0  ;;  %v2015_v15 = vld [vmem:[#allocation3 + $0xe8] sm:$0xff]  ;;  %v2263_v16 = vld [vmem:[#allocation3] sm:$0xf0]  ;;  %v2338_v5 = vrot.slane %v2270_v45, 4 }
 0x389   :  { %v1883_v13 = vpack.c.bf16 %v1865_v17, %v1863_v61  ;;  %3783 = vmatpush3.bf16.msra.mxu0 %v4238_v28  ;;  %2184 = vmatprep.mubr.bf16.mxu0 %v2003_v8  ;;  %1983 = vst [vmem:[#allocation3 + $0x90] ss:$-12 sps:$4 sm:$0xff] %v1943_v32   ;;  %v1869_v50 = vmax.f32 %v1837_v62, 0.0  ;;  %v2264_v24 = vld [vmem:[#allocation3 + $0x8] sm:$0xf0]  ;;  %v2328_v7 = vrot.slane %v2263_v16, 4 }
 0x38a   :  { %3784 = vmatprep.subr.bf16.mxu0 %v4239_v14  ;;  %1987 = vst [vmem:[#allocation3 + $0xb0] ss:$-12 sps:$4 sm:$0xff] %v1945_v34   ;;  %v2002_v41 = vld [vmem:[#allocation3 + $0x20] sm:$0xff]  ;;  %v2331_v30 = vrot.slane %v2264_v24, 4  ;;  %v2265_v22 = vld [vmem:[#allocation3 + $0x10] sm:$0xf] }
 0x38b   :  { %v1947_v56 = vrot.slane %v1883_v13, 4  ;;  %v1885_v27 = vpack.c.bf16 %v1869_v50, %v1867_v29  ;;  %v2268_v26 = vld [vmem:[#allocation3 + $0x28] sm:$0xf0]  ;;  %v2329_v23 = vrot.slane %v2265_v22, 4  ;;  %v2267_v44 = vld [vmem:[#allocation3 + $0x20] sm:$0xf0] }
 0x38c   :  { %v2004_v4 = vld [vmem:[#allocation3 + $0x40] sm:$0xff]  ;;  %v2333_v11 = vsel %vm2327_vm2, %v2331_v30, %v2332_v39  ;;  %v2337_v40 = vrot.slane %v2268_v26, 4  ;;  %v4255_v9 = vld [vmem:[%s5773_s10 + $0x148] sm:$0xff]   ;;  %v2269_v12 = vld [vmem:[#allocation3 + $0x30] sm:$0xf]  ;;  %v2334_v17 = vrot.slane %v2267_v44, 4 }
 0x38d   :  { %1991 = vst [vmem:[#allocation3 + $0xd0] ss:$-12 sps:$4 sm:$0xff] %v1947_v56   ;;  %3785 = vmatpush3.bf16.msra.mxu0 %v4240_v36  ;;  %v1949_v19 = vrot.slane %v1885_v27, 4  ;;  %v2330_v10 = vsel %vm2327_vm2, %v2328_v7, %v2329_v23  ;;  %v4256_v38 = vld [vmem:[%s5773_s10 + $0x108] sm:$0xff]   ;;  %v2274_v46 = vld [vmem:[#allocation3 + $0x58] sm:$0xf] }
 0x38e   :  { %3786 = vmatprep.subr.bf16.mxu0 %v4241_v20  ;;  %v2006_v1 = vld [vmem:[#allocation3 + $0x60] sm:$0xff]  ;;  %v2339_v28 = vsel %vm2327_vm2, %v2337_v40, %v2338_v5  ;;  %v2272_v14 = vld [vmem:[#allocation3 + $0x48] sm:$0xf0]  ;;  %v4257_v61 = vld [vmem:[%s5773_s10 + $0x150] sm:$0xff]   ;;  %v2335_v18 = vrot.slane %v2269_v12, 4  ;;  %v2344_v32 = vrot.slane %v2274_v46, 4 }
 0x38f   :  { %1995 = vst [vmem:[#allocation3 + $0xf0] ss:$-12 sps:$4 sm:$0xff] %v1949_v19   ;;  %v2343_v54 = vrot.slane %v2272_v14, 4  ;;  %v4258_v62 = vld [vmem:[%s5773_s10 + $0x110] sm:$0xff]   ;;  %v4259_v8 = vld [vmem:[%s5773_s10 + $0x158] sm:$0xff]   ;;  %v4261_v27 = vld [vmem:[%s5773_s10 + $0x160] sm:$0xff]  }
 0x390   :  { %2185 = vmatmul.mubr.bf16.gmra.mrb[20].mxu0 %v2002_v41  ;;  %v2008_v2 = vld [vmem:[#allocation3 + $0x80] sm:$0xff]  ;;  %v2336_v34 = vsel %vm2327_vm2, %v2334_v17, %v2335_v18  ;;  %v2273_v36 = vld [vmem:[#allocation3 + $0x50] sm:$0xf]  ;;  %v2276_v50 = vld [vmem:[#allocation3 + $0x68] sm:$0xf0] }
 0x391   :  { %2192 = vmatprep.mubr.bf16.mxu0 %v2005_v63  ;;  %3787 = vmatpush3.bf16.msra.mxu0 %v4242_v35  ;;  %v2010_v3 = vld [vmem:[#allocation3 + $0xa0] sm:$0xff]  ;;  %v2345_v13 = vsel %vm2327_vm2, %v2343_v54, %v2344_v32  ;;  %v2278_v20 = vld [vmem:[#allocation3 + $0x78] sm:$0xf]  ;;  %v2341_v19 = vrot.slane %v2273_v36, 4  ;;  %v2285_v45 = vld [vmem:[#allocation3 + $0xb0] sm:$0xf] }
 0x392   :  { %3788 = vmatprep.subr.bf16.mxu0 %v4243_v52  ;;  %v2271_v29 = vld [vmem:[#allocation3 + $0x40] sm:$0xf0]  ;;  %v4260_v56 = vld [vmem:[%s5773_s10 + $0x118] sm:$0xff]   ;;  %v2349_v52 = vrot.slane %v2276_v50, 4  ;;  %v2350_v41 = vrot.slane %v2278_v20, 4  ;;  %v2359_v5 = vrot.slane %v2285_v45, 4 }
 0x393   :  { %v2340_v35 = vrot.slane %v2271_v29, 4  ;;  %v4262_v63 = vld [vmem:[%s5773_s10 + $0x120] sm:$0xff]   ;;  %v2286_v24 = vld [vmem:[#allocation3 + $0xb8] sm:$0xf]  ;;  %v2288_v7 = vld [vmem:[#allocation3 + $0xc8] sm:$0xf0] }
 0x394   :  { %v2012_v47 = vld [vmem:[#allocation3 + $0xc0] sm:$0xff]  ;;  %v4268_v49 = vld [vmem:[%s5773_s10 + $0x138] sm:$0xff]   ;;  %v2289_v12 = vld [vmem:[#allocation3 + $0xd0] sm:$0xf] }
 0x395   :  { %3789 = vmatpush3.bf16.msra.mxu0 %v4244_v25  ;;  %v4263_v25 = vld [vmem:[%s5773_s10 + $0x168] sm:$0xff]   ;;  %v2283_v26 = vld [vmem:[#allocation3 + $0xa0] sm:$0xf0]  ;;  %v2290_v23 = vld [vmem:[#allocation3 + $0xd8] sm:$0xf] }
 0x396   :  { %3790 = vmatprep.subr.bf16.mxu0 %v4245_v53  ;;  %v2014_v43 = vld [vmem:[#allocation3 + $0xe0] sm:$0xff]  ;;  %v2342_v53 = vsel %vm2327_vm2, %v2340_v35, %v2341_v19  ;;  %v2358_v40 = vrot.slane %v2283_v26, 4  ;;  %v2294_v14 = vld [vmem:[#allocation3 + $0xf8] sm:$0xf]  ;;  %v2634_v50 = vld [vmem:[#allocation3 + $0x10] sm:$0xff] }
 0x397   :  { %v2287_v44 = vld [vmem:[#allocation3 + $0xc0] sm:$0xf0]  ;;  %v2374_v18 = vrot.slane %v2294_v14, 4  ;;  %v2635_v36 = vld [vmem:[#allocation3 + $0x18] sm:$0xff]  ;;  %v2638_v35 = vld [vmem:[#allocation3 + $0x50] sm:$0xff] }
 0x398   :  { %2193 = vmatmul.mubr.bf16.gmra.mrb[24].mxu0 %v2004_v4  ;;  %v2277_v4 = vld [vmem:[#allocation3 + $0x70] sm:$0xf]  ;;  %v2364_v46 = vrot.slane %v2287_v44, 4  ;;  %v2637_v20 = vld [vmem:[#allocation3 + $0x38] sm:$0xff] }
 0x399   :  { %2200 = vmatprep.mubr.bf16.mxu0 %v2007_v58  ;;  %3791 = vmatpush3.bf16.msra.mxu0 %v4246_v33  ;;  %v2351_v33 = vsel %vm2327_vm2, %v2349_v52, %v2350_v41  ;;  %v2280_v58 = vld [vmem:[#allocation3 + $0x88] sm:$0xf0]  ;;  %v2641_v19 = vld [vmem:[#allocation3 + $0x78] sm:$0xff]  ;;  %v2640_v52 = vld [vmem:[#allocation3 + $0x70] sm:$0xff] }
 0x39a   :  { %3792 = vmatprep.subr.bf16.mxu0 %v4247_v42  ;;  %v2275_v42 = vld [vmem:[#allocation3 + $0x60] sm:$0xf0]  ;;  %v2643_v41 = vld [vmem:[#allocation3 + $0x98] sm:$0xff] }
 0x39d   :  { %3793 = vmatpush3.bf16.msra.mxu0 %v4248_v55  ;;  %v2282_v55 = vld [vmem:[#allocation3 + $0x98] sm:$0xf] }
 0x39e   :  { %3794 = vmatprep.subr.bf16.mxu0 %v4249_v21  ;;  %v4264_v21 = vld [vmem:[%s5773_s10 + $0x128] sm:$0xff]  }
 0x3a0   :  { %2201 = vmatmul.mubr.bf16.gmra.mrb[28].mxu0 %v2006_v1  ;;  %v2347_v1 = vrot.slane %v2277_v4, 4  ;;  %v2649_v4 = vld [vmem:[#allocation3 + $0xf8] sm:$0xff] }
 0x3a1   :  { %2208 = vmatprep.mubr.bf16.mxu0 %v2009_v60  ;;  %3795 = vmatpush3.bf16.msra.mxu0 %v4250_v59  ;;  %v4265_v59 = vld [vmem:[%s5773_s10 + $0x170] sm:$0xff]   ;;  %v2355_v60 = vrot.slane %v2280_v58, 4 }
 0x3a2   :  { %3796 = vmatprep.subr.bf16.mxu0 %v4251_v6  ;;  %v2346_v6 = vrot.slane %v2275_v42, 4  ;;  %v2646_v42 = vld [vmem:[#allocation3 + $0xd0] sm:$0xff] }
 0x3a3   :  { %v2648_v58 = vld [vmem:[#allocation3 + $0xf0] sm:$0xff] }
 0x3a5   :  { %3797 = vmatpush3.bf16.msra.mxu0 %v4252_v37  ;;  %v2356_v37 = vrot.slane %v2282_v55, 4 }
 0x3a6   :  { %3846 = vmatprep.subr.bf16.mxu0 %v4253_v48  ;;  %v4266_v48 = vld [vmem:[%s5773_s10 + $0x130] sm:$0xff]  }
 0x3a8   :  { %2209 = vmatmul.mubr.bf16.gmra.mrb[32].mxu0 %v2008_v2  ;;  %v4267_v2 = vld [vmem:[%s5773_s10 + $0x178] sm:$0xff]  }
 0x3a9   :  { %2216 = vmatprep.mubr.bf16.mxu0 %v2011_v0  ;;  %v2348_v0 = vsel %vm2327_vm2, %v2346_v6, %v2347_v1 }
 0x3b0   :  { %2217 = vmatmul.mubr.bf16.gmra.mrb[36].mxu0 %v2010_v3  ;;  %v2357_v3 = vsel %vm2327_vm2, %v2355_v60, %v2356_v37 }
 0x3b1   :  { %2224 = vmatprep.mubr.bf16.mxu0 %v2013_v57  ;;  %v2279_v57 = vld [vmem:[#allocation3 + $0x80] sm:$0xf0] }
 0x3b2   :  { %v2352_v30 = vrot.slane %v2279_v57, 4 }
 0x3b8   :  { %2225 = vmatmul.mubr.bf16.gmra.mrb[40].mxu0 %v2012_v47  ;;  %v2281_v47 = vld [vmem:[#allocation3 + $0x90] sm:$0xf] }
 0x3b9   :  { %2232 = vmatprep.mubr.bf16.mxu0 %v2015_v15  ;;  %v2284_v15 = vld [vmem:[#allocation3 + $0xa8] sm:$0xf0]  ;;  %v2353_v39 = vrot.slane %v2281_v47, 4 }
 0x3bb   :  { %v2354_v16 = vsel %vm2327_vm2, %v2352_v30, %v2353_v39 }
 0x3c0   :  { %2233 = vmatmul.mubr.bf16.gmra.mrb[44].mxu0 %v2014_v43  ;;  %v2361_v43 = vrot.slane %v2284_v15, 4 }
 0x3c1   :  { %2553 = vmatprep.mubr.bf16.mxu0 %v2333_v11  ;;  %v2362_v11 = vrot.slane %v2286_v24, 4 }
 0x3c3   :  { %v2363_v22 = vsel %vm2327_vm2, %v2361_v43, %v2362_v11 }
 0x3c8   :  { %2554 = vmatmul.mubr.bf16.vlgmr.msra.gmra.mrb[48].mxu0 %v2330_v10  ;;  %v2360_v10 = vsel %vm2327_vm2, %v2358_v40, %v2359_v5 }
 0x3c9   :  { %3847 = vmatpush3.bf16.msra.mxu0 %v4254_v51  ;;  %2561 = vmatprep.mubr.bf16.mxu0 %v2339_v28  ;;  %v2367_v51 = vrot.slane %v2288_v7, 4 }
 0x3ca   :  { %3848 = vmatprep.subr.bf16.mxu0 %v4255_v9  ;;  %v2368_v9 = vrot.slane %v2290_v23, 4 }
 0x3cc   :  { %v2369_v28 = vsel %vm2327_vm2, %v2367_v51, %v2368_v9 }
 0x3cd   :  { %3849 = vmatpush3.bf16.msra.mxu0 %v4256_v38  ;;  %v2292_v38 = vld [vmem:[#allocation3 + $0xe8] sm:$0xf0] }
 0x3ce   :  { %3850 = vmatprep.subr.bf16.mxu0 %v4257_v61  ;;  %v2365_v61 = vrot.slane %v2289_v12, 4  ;;  %v2373_v17 = vrot.slane %v2292_v38, 4 }
 0x3d0   :  { %2562 = vmatmul.mubr.bf16.gmra.mrb[52].mxu0 %v2336_v34  ;;  %v2366_v54 = vsel %vm2327_vm2, %v2364_v46, %v2365_v61  ;;  %v2375_v32 = vsel %vm2327_vm2, %v2373_v17, %v2374_v18 }
 0x3d1   :  { %2569 = vmatprep.mubr.bf16.mxu0 %v2345_v13  ;;  %3851 = vmatpush3.bf16.msra.mxu0 %v4258_v62  ;;  %v2291_v62 = vld [vmem:[#allocation3 + $0xe0] sm:$0xf0] }
 0x3d2   :  { %3852 = vmatprep.subr.bf16.mxu0 %v4259_v8  ;;  %v2293_v8 = vld [vmem:[#allocation3 + $0xf0] sm:$0xf]  ;;  %v2370_v34 = vrot.slane %v2291_v62, 4 }
 0x3d3   :  { %v2371_v13 = vrot.slane %v2293_v8, 4 }
 0x3d5   :  { %3853 = vmatpush3.bf16.msra.mxu0 %v4260_v56  ;;  %v2372_v29 = vsel %vm2327_vm2, %v2370_v34, %v2371_v13  ;;  %v2636_v56 = vld [vmem:[#allocation3 + $0x30] sm:$0xff] }
 0x3d6   :  { %3854 = vmatprep.subr.bf16.mxu0 %v4261_v27  ;;  %v2639_v27 = vld [vmem:[#allocation3 + $0x58] sm:$0xff] }
 0x3d8   :  { %2570 = vmatmul.mubr.bf16.gmra.mrb[56].mxu0 %v2342_v53  ;;  %v2644_v53 = vld [vmem:[#allocation3 + $0xb0] sm:$0xff] }
 0x3d9   :  { %2577 = vmatprep.mubr.bf16.mxu0 %v2351_v33  ;;  %3855 = vmatpush3.bf16.msra.mxu0 %v4262_v63  ;;  %v2642_v63 = vld [vmem:[#allocation3 + $0x90] sm:$0xff]  ;;  %v2647_v33 = vld [vmem:[#allocation3 + $0xd8] sm:$0xff] }
 0x3da   :  { %3856 = vmatprep.subr.bf16.mxu0 %v4263_v25  ;;  %v2645_v25 = vld [vmem:[#allocation3 + $0xb8] sm:$0xff] }
 0x3dd   :  { %3857 = vmatpush3.bf16.msra.mxu0 %v4264_v21 }
 0x3de   :  { %3858 = vmatprep.subr.bf16.mxu0 %v4265_v59 }
 0x3e0   :  { %2578 = vmatmul.mubr.bf16.gmra.mrb[60].mxu0 %v2348_v0 }
 0x3e1   :  { %2585 = vmatprep.mubr.bf16.mxu0 %v2357_v3  ;;  %3859 = vmatpush3.bf16.msra.mxu0 %v4266_v48 }
 0x3e2   :  { %3860 = vmatprep.subr.bf16.mxu0 %v4267_v2 }
 0x3e5   :  { %3861 = vmatpush3.bf16.msra.mxu0 %v4268_v49 }
 0x3e8   :  { %2586 = vmatmul.mubr.bf16.gmra.mrb[64].mxu0 %v2354_v16 }
 0x3e9   :  { %2593 = vmatprep.mubr.bf16.mxu0 %v2363_v22 }
 0x3f0   :  { %2594 = vmatmul.mubr.bf16.gmra.mrb[68].mxu0 %v2360_v10 }
 0x3f1   :  { %2601 = vmatprep.mubr.bf16.mxu0 %v2369_v28 }
 0x3f8   :  { %2602 = vmatmul.mubr.bf16.gmra.mrb[72].mxu0 %v2366_v54 }
 0x3f9   :  { %2609 = vmatprep.mubr.bf16.mxu0 %v2375_v32 }
 0x400   :  { %2610 = vmatmul.mubr.bf16.gmra.mrb[76].mxu0 %v2372_v29 }
 0x401   :  { %2811 = vmatprep.mubr.bf16.mxu0 %v2635_v36 }
 0x408   :  { %2812 = vmatmul.mubr.bf16.vlgmr.msra.gmra.mrb[80].mxu0 %v2634_v50  ;;  %v5521_v50 = vld [vmem:[%s5774_s11] ss:$0 sm:$0xff] }
 0x409   :  { %2819 = vmatprep.mubr.bf16.mxu0 %v2637_v20 }
 0x410   :  { %2820 = vmatmul.mubr.bf16.gmra.mrb[84].mxu0 %v2636_v56 }
 0x411   :  { %2827 = vmatprep.mubr.bf16.mxu0 %v2639_v27 }
 0x418   :  { %2828 = vmatmul.mubr.bf16.gmra.mrb[88].mxu0 %v2638_v35 }
 0x419   :  { %2835 = vmatprep.mubr.bf16.mxu0 %v2641_v19 }
 0x420   :  { %2836 = vmatmul.mubr.bf16.gmra.mrb[92].mxu0 %v2640_v52 }
 0x421   :  { %2843 = vmatprep.mubr.bf16.mxu0 %v2643_v41 }
 0x428   :  { %2844 = vmatmul.mubr.bf16.gmra.mrb[96].mxu0 %v2642_v63 }
 0x429   :  { %2851 = vmatprep.mubr.bf16.mxu0 %v2645_v25 }
 0x430   :  { %2852 = vmatmul.mubr.bf16.gmra.mrb[100].mxu0 %v2644_v53 }
 0x431   :  { %2859 = vmatprep.mubr.bf16.mxu0 %v2647_v33 }
 0x438   :  { %2860 = vmatmul.mubr.bf16.gmra.mrb[104].mxu0 %v2646_v42 }
 0x439   :  { %2867 = vmatprep.mubr.bf16.mxu0 %v2649_v4 }
 0x440   :  { %2868 = vmatmul.mubr.bf16.gmra.mrb[108].mxu0 %v2648_v58 }
 0x45b   :  { %v3734_v55 = vpop.f32.mrb[16].mxu0 }
 0x45c   :  { %v3735_v21 = vpop.f32.mrb[17].mxu0 }
 0x45d   :  { %v3736_v59 = vadd.f32 %v3735_v21, %v3734_v55  ;;  %v3737_v6 = vpop.f32.mrb[18].mxu0 }
 0x45e   :  { %v3738_v1 = vpop.f32.mrb[19].mxu0 }
 0x45f   :  { %v3739_v60 = vadd.f32 %v3738_v1, %v3737_v6  ;;  %v2247_v27 = vadd.f32 %v3736_v59, %v5521_v50 }
 0x461   :  { %v2248_v41 = vadd.f32 %v3739_v60, %v5521_v50 }
 0x463   :  { %v3740_v37 = vpop.f32.mrb[20].mxu0 }
 0x464   :  { %v3741_v48 = vpop.f32.mrb[21].mxu0 }
 0x465   :  { %v3742_v2 = vadd.f32 %v3741_v48, %v3740_v37  ;;  %v3743_v0 = vpop.f32.mrb[22].mxu0 }
 0x466   :  { %v3744_v3 = vpop.f32.mrb[23].mxu0 }
 0x467   :  { %v3745_v57 = vadd.f32 %v3744_v3, %v3743_v0  ;;  %v2249_v4 = vadd.f32 %v3742_v2, %v5521_v50 }
 0x469   :  { %v2250_v6 = vadd.f32 %v3745_v57, %v5521_v50 }
 0x46b   :  { %v3746_v47 = vpop.f32.mrb[24].mxu0 }
 0x46c   :  { %v3747_v15 = vpop.f32.mrb[25].mxu0 }
 0x46d   :  { %v3748_v24 = vadd.f32 %v3747_v15, %v3746_v47  ;;  %v3749_v49 = vpop.f32.mrb[26].mxu0 }
 0x46e   :  { %v3750_v30 = vpop.f32.mrb[27].mxu0 }
 0x46f   :  { %v3751_v39 = vadd.f32 %v3750_v30, %v3749_v49  ;;  %v2251_v0 = vadd.f32 %v3748_v24, %v5521_v50 }
 0x471   :  { %v2252_v49 = vadd.f32 %v3751_v39, %v5521_v50 }
 0x473   :  { %v3752_v43 = vpop.f32.mrb[28].mxu0 }
 0x474   :  { %v3753_v11 = vpop.f32.mrb[29].mxu0 }
 0x475   :  { %v3754_v16 = vadd.f32 %v3753_v11, %v3752_v43  ;;  %v3755_v22 = vpop.f32.mrb[30].mxu0 }
 0x476   :  { %v3756_v26 = vpop.f32.mrb[31].mxu0 }
 0x477   :  { %v3757_v45 = vadd.f32 %v3756_v26, %v3755_v22  ;;  %v2253_v22 = vadd.f32 %v3754_v16, %v5521_v50 }
 0x47b   :  { %v3758_v7 = vpop.f32.mrb[32].mxu0 }
 0x47c   :  { %v3759_v23 = vpop.f32.mrb[33].mxu0 }
 0x47d   :  { %v5502_v40 = vadd.f32 %v3759_v23, %v3758_v7  ;;  %v3761_v5 = vpop.f32.mrb[34].mxu0 }
 0x47e   :  { %v3762_v51 = vpop.f32.mrb[35].mxu0 }
 0x47f   :  { %v5504_v9 = vadd.f32 %v3762_v51, %v3761_v5  ;;  %v2254_v5 = vadd.f32 %v3757_v45, %v5521_v50 }
 0x481   :  { %v2256_v16 = vadd.f32 %v5504_v9, %v5521_v50 }
 0x483   :  { %v3764_v10 = vpop.f32.mrb[36].mxu0 }
 0x484   :  { %v3765_v28 = vpop.f32.mrb[37].mxu0 }
 0x485   :  { %v5506_v44 = vadd.f32 %v3765_v28, %v3764_v10  ;;  %v3767_v12 = vpop.f32.mrb[38].mxu0 }
 0x486   :  { %v3768_v38 = vpop.f32.mrb[39].mxu0 }
 0x487   :  { %v5508_v14 = vadd.f32 %v3768_v38, %v3767_v12  ;;  %v2255_v12 = vadd.f32 %v5502_v40, %v5521_v50 }
 0x489   :  { %v2258_v40 = vadd.f32 %v5508_v14, %v5521_v50 }
 0x48b   :  { %v3770_v46 = vpop.f32.mrb[40].mxu0 }
 0x48c   :  { %v3771_v61 = vpop.f32.mrb[41].mxu0 }
 0x48d   :  { %v5510_v17 = vadd.f32 %v3771_v61, %v3770_v46  ;;  %v3773_v18 = vpop.f32.mrb[42].mxu0 }
 0x48e   :  { %v3774_v54 = vpop.f32.mrb[43].mxu0 }
 0x48f   :  { %v5512_v32 = vadd.f32 %v3774_v54, %v3773_v18 }
 0x493   :  { %v3776_v62 = vpop.f32.mrb[44].mxu0 }
 0x494   :  { %v3777_v8 = vpop.f32.mrb[45].mxu0 }
 0x495   :  { %v5514_v34 = vadd.f32 %v3777_v8, %v3776_v62  ;;  %v3779_v13 = vpop.f32.mrb[46].mxu0 }
 0x496   :  { %v3780_v29 = vpop.f32.mrb[47].mxu0 }
 0x497   :  { %v5516_v36 = vadd.f32 %v3780_v29, %v3779_v13  ;;  %v2257_v13 = vadd.f32 %v5506_v44, %v5521_v50  ;;  %v2260_v44 = vadd.f32 %v5512_v32, %v5521_v50 }
 0x49b   :  { %v3798_v20 = vpop.f32.mrb[48].mxu0 }
 0x49c   :  { %v3799_v56 = vpop.f32.mrb[49].mxu0 }
 0x49d   :  { %v3800_v35 = vadd.f32 %v3799_v56, %v3798_v20  ;;  %v3801_v19 = vpop.f32.mrb[50].mxu0 }
 0x49e   :  { %v3802_v52 = vpop.f32.mrb[51].mxu0 }
 0x49f   :  { %v5525_v63 = vadd.f32 %v3800_v35, %v2247_v27  ;;  %v3803_v25 = vadd.f32 %v3802_v52, %v3801_v19 }
 0x4a1   :  { %v5527_v53 = vadd.f32 %v3803_v25, %v2248_v41  ;;  %v2259_v41 = vadd.f32 %v5510_v17, %v5521_v50  ;;  %v2262_v17 = vadd.f32 %v5516_v36, %v5521_v50 }
 0x4a3   :  { %v3804_v33 = vpop.f32.mrb[52].mxu0 }
 0x4a4   :  { %v3805_v42 = vpop.f32.mrb[53].mxu0 }
 0x4a5   :  { %v3806_v58 = vadd.f32 %v3805_v42, %v3804_v33  ;;  %v3807_v55 = vpop.f32.mrb[54].mxu0 }
 0x4a6   :  { %v3808_v21 = vpop.f32.mrb[55].mxu0 }
 0x4a7   :  { %v5531_v59 = vadd.f32 %v3806_v58, %v2249_v4  ;;  %v3809_v1 = vadd.f32 %v3808_v21, %v3807_v55 }
 0x4a9   :  { %v5533_v37 = vadd.f32 %v3809_v1, %v2250_v6  ;;  %v2261_v6 = vadd.f32 %v5514_v34, %v5521_v50 }
 0x4ab   :  { %v3810_v60 = vpop.f32.mrb[56].mxu0 }
 0x4ac   :  { %v3811_v48 = vpop.f32.mrb[57].mxu0 }
 0x4ad   :  { %v3812_v3 = vadd.f32 %v3811_v48, %v3810_v60  ;;  %v3813_v47 = vpop.f32.mrb[58].mxu0 }
 0x4ae   :  { %v3814_v15 = vpop.f32.mrb[59].mxu0 }
 0x4af   :  { %v5537_v2 = vadd.f32 %v3812_v3, %v2251_v0  ;;  %v3815_v30 = vadd.f32 %v3814_v15, %v3813_v47 }
 0x4b1   :  { %v5539_v43 = vadd.f32 %v3815_v30, %v2252_v49 }
 0x4b3   :  { %v3816_v57 = vpop.f32.mrb[60].mxu0 }
 0x4b4   :  { %v3817_v11 = vpop.f32.mrb[61].mxu0 }
 0x4b5   :  { %v3818_v26 = vadd.f32 %v3817_v11, %v3816_v57  ;;  %v3819_v7 = vpop.f32.mrb[62].mxu0 }
 0x4b6   :  { %v3820_v23 = vpop.f32.mrb[63].mxu0 }
 0x4b7   :  { %v5543_v24 = vadd.f32 %v3818_v26, %v2253_v22  ;;  %v3821_v51 = vadd.f32 %v3820_v23, %v3819_v7 }
 0x4b9   :  { %v5545_v10 = vadd.f32 %v3821_v51, %v2254_v5 }
 0x4bb   :  { %v3822_v39 = vpop.f32.mrb[64].mxu0 }
 0x4bc   :  { %v3823_v28 = vpop.f32.mrb[65].mxu0 }
 0x4bd   :  { %v3824_v38 = vadd.f32 %v3823_v28, %v3822_v39  ;;  %v3825_v46 = vpop.f32.mrb[66].mxu0 }
 0x4be   :  { %v3826_v61 = vpop.f32.mrb[67].mxu0 }
 0x4bf   :  { %v5551_v18 = vadd.f32 %v3824_v38, %v2255_v12  ;;  %v3827_v54 = vadd.f32 %v3826_v61, %v3825_v46 }
 0x4c1   :  { %v5553_v45 = vadd.f32 %v3827_v54, %v2256_v16 }
 0x4c3   :  { %v3828_v62 = vpop.f32.mrb[68].mxu0 }
 0x4c4   :  { %v3829_v8 = vpop.f32.mrb[69].mxu0 }
 0x4c5   :  { %v3830_v29 = vadd.f32 %v3829_v8, %v3828_v62  ;;  %v3831_v20 = vpop.f32.mrb[70].mxu0 }
 0x4c6   :  { %v3832_v56 = vpop.f32.mrb[71].mxu0 }
 0x4c7   :  { %v5559_v27 = vadd.f32 %v3830_v29, %v2257_v13  ;;  %v3833_v35 = vadd.f32 %v3832_v56, %v3831_v20 }
 0x4c9   :  { %v5561_v9 = vadd.f32 %v3833_v35, %v2258_v40 }
 0x4cb   :  { %v3834_v19 = vpop.f32.mrb[72].mxu0 }
 0x4cc   :  { %v3835_v52 = vpop.f32.mrb[73].mxu0 }
 0x4cd   :  { %v3836_v25 = vadd.f32 %v3835_v52, %v3834_v19  ;;  %v3837_v33 = vpop.f32.mrb[74].mxu0 }
 0x4ce   :  { %v3838_v42 = vpop.f32.mrb[75].mxu0 }
 0x4cf   :  { %v5567_v4 = vadd.f32 %v3836_v25, %v2259_v41  ;;  %v3839_v58 = vadd.f32 %v3838_v42, %v3837_v33 }
 0x4d1   :  { %v5569_v14 = vadd.f32 %v3839_v58, %v2260_v44 }
 0x4d3   :  { %v3840_v55 = vpop.f32.mrb[76].mxu0 }
 0x4d4   :  { %v3841_v21 = vpop.f32.mrb[77].mxu0 }
 0x4d5   :  { %v3842_v1 = vadd.f32 %v3841_v21, %v3840_v55  ;;  %v3843_v60 = vpop.f32.mrb[78].mxu0  ;;  %v4345_v21 = vmov 0.0  }
 0x4d6   :  { %v3844_v48 = vpop.f32.mrb[79].mxu0  ;;  %3948 = vmatprep.subr.bf16.mxu0 %v4345_v21  ;;  %3968 = vmatprep.subr.bf16.mxu1 %v4345_v21 }
 0x4d7   :  { %v5575_v0 = vadd.f32 %v3842_v1, %v2261_v6  ;;  %v3845_v3 = vadd.f32 %v3844_v48, %v3843_v60  ;;  %v4270_v60 = vld [vmem:[%s5777_s14 + $0x8] sm:$0xff]   ;;  %3964 = vmatprep.mubr.msk.bf16.mxu0 %vm4346_vm3, %v4345_v21  ;;  %3984 = vmatprep.mubr.msk.bf16.mxu1 %vm4346_vm3, %v4345_v21 }
 0x4d9   :  { %v5577_v32 = vadd.f32 %v3845_v3, %v2262_v17 }
 0x4db   :  { %v3862_v47 = vpop.f32.mrb[80].mxu0 }
 0x4dc   :  { %v3863_v15 = vpop.f32.mrb[81].mxu0 }
 0x4dd   :  { %v3864_v49 = vadd.f32 %v3863_v15, %v3862_v47  ;;  %v3865_v30 = vpop.f32.mrb[82].mxu0 }
 0x4de   :  { %v3866_v57 = vpop.f32.mrb[83].mxu0 }
 0x4df   :  { %v5580_v11 = vadd.f32 %v3864_v49, %v5525_v63  ;;  %v3867_v34 = vadd.f32 %v3866_v57, %v3865_v30  ;;  %v4271_v49 = vld [vmem:[%s5777_s14 + $0x10] sm:$0xff]  }
 0x4e1   :  { %v5583_v22 = vadd.f32 %v3867_v34, %v5527_v53  ;;  %v4272_v34 = vld [vmem:[%s5777_s14 + $0x18] sm:$0xff]  }
 0x4e3   :  { %v2894_v36 = vadd.f32 %v5583_v22, %v5580_v11  ;;  %v3868_v50 = vpop.f32.mrb[84].mxu0 }
 0x4e4   :  { %v3869_v26 = vpop.f32.mrb[85].mxu0 }
 0x4e5   :  { %v3870_v7 = vadd.f32 %v3869_v26, %v3868_v50  ;;  %v3871_v23 = vpop.f32.mrb[86].mxu0 }
 0x4e6   :  { %v3872_v5 = vpop.f32.mrb[87].mxu0 }
 0x4e7   :  { %v5588_v51 = vadd.f32 %v3870_v7, %v5531_v59  ;;  %v3873_v39 = vadd.f32 %v3872_v5, %v3871_v23 }
 0x4e9   :  { %v2895_v28 = vadd.f32 %v2894_v36, %v5588_v51  ;;  %v5592_v63 = vadd.f32 %v3873_v39, %v5533_v37 }
 0x4eb   :  { %v2896_v53 = vadd.f32 %v2895_v28, %v5592_v63  ;;  %v3874_v12 = vpop.f32.mrb[88].mxu0 }
 0x4ec   :  { %v3875_v38 = vpop.f32.mrb[89].mxu0 }
 0x4ed   :  { %v3876_v46 = vadd.f32 %v3875_v38, %v3874_v12  ;;  %v3877_v61 = vpop.f32.mrb[90].mxu0  ;;  %v4274_v12 = vld [vmem:[%s5777_s14 + $0x28] sm:$0xff]  }
 0x4ee   :  { %v3878_v16 = vpop.f32.mrb[91].mxu0 }
 0x4ef   :  { %v5596_v54 = vadd.f32 %v3876_v46, %v5537_v2  ;;  %v3879_v62 = vadd.f32 %v3878_v16, %v3877_v61 }
 0x4f1   :  { %v2897_v59 = vadd.f32 %v2896_v53, %v5596_v54  ;;  %v5600_v8 = vadd.f32 %v3879_v62, %v5539_v43 }
 0x4f3   :  { %v2898_v13 = vadd.f32 %v2897_v59, %v5600_v8  ;;  %v3880_v37 = vpop.f32.mrb[92].mxu0 }
 0x4f4   :  { %v3881_v29 = vpop.f32.mrb[93].mxu0 }
 0x4f5   :  { %v3882_v20 = vadd.f32 %v3881_v29, %v3880_v37  ;;  %v3883_v56 = vpop.f32.mrb[94].mxu0 }
 0x4f6   :  { %v3884_v40 = vpop.f32.mrb[95].mxu0 }
 0x4f7   :  { %v5604_v35 = vadd.f32 %v3882_v20, %v5543_v24  ;;  %v3885_v19 = vadd.f32 %v3884_v40, %v3883_v56  ;;  %v4269_v24 = vld [vmem:[%s5777_s14] sm:$0xff]   ;;  %v4276_v20 = vld [vmem:[%s5777_s14 + $0x38] sm:$0xff]  }
 0x4f8   :  { %3949 = vmatpush3.bf16.msra.mxu0 %v4269_v24  ;;  %v4277_v40 = vld [vmem:[%s5781_s18] sm:$0xff]  }
 0x4f9   :  { %v2899_v2 = vadd.f32 %v2898_v13, %v5604_v35  ;;  %v5608_v52 = vadd.f32 %v3885_v19, %v5545_v10  ;;  %3950 = vmatprep.subr.bf16.mxu0 %v4345_v21  ;;  %3969 = vmatpush3.bf16.msra.mxu1 %v4277_v40 }
 0x4fa   :  { %3970 = vmatprep.subr.bf16.mxu1 %v4345_v21 }
 0x4fb   :  { %v2900_v41 = vadd.f32 %v2899_v2, %v5608_v52  ;;  %v3886_v43 = vpop.f32.mrb[96].mxu0 }
 0x4fc   :  { %v3887_v25 = vpop.f32.mrb[97].mxu0  ;;  %3951 = vmatpush3.bf16.msra.mxu0 %v4270_v60 }
 0x4fd   :  { %v3888_v33 = vadd.f32 %v3887_v25, %v3886_v43  ;;  %v3889_v42 = vpop.f32.mrb[98].mxu0  ;;  %3952 = vmatprep.subr.bf16.mxu0 %v4345_v21 }
 0x4fe   :  { %v3890_v44 = vpop.f32.mrb[99].mxu0 }
 0x4ff   :  { %v5612_v58 = vadd.f32 %v3888_v33, %v5551_v18  ;;  %v3891_v55 = vadd.f32 %v3890_v44, %v3889_v42 }
 0x500   :  { %3953 = vmatpush3.bf16.msra.mxu0 %v4271_v49 }
 0x501   :  { %v2901_v10 = vadd.f32 %v2900_v41, %v5612_v58  ;;  %v5621_v6 = vadd.f32 %v3891_v55, %v5553_v45  ;;  %3954 = vmatprep.subr.bf16.mxu0 %v4345_v21 }
 0x503   :  { %v2902_v18 = vadd.f32 %v2901_v10, %v5621_v6  ;;  %v3892_v1 = vpop.f32.mrb[100].mxu0 }
 0x504   :  { %v3893_v48 = vpop.f32.mrb[101].mxu0  ;;  %3955 = vmatpush3.bf16.msra.mxu0 %v4272_v34 }
 0x505   :  { %v3894_v17 = vadd.f32 %v3893_v48, %v3892_v1  ;;  %v3895_v3 = vpop.f32.mrb[102].mxu0  ;;  %3956 = vmatprep.subr.bf16.mxu0 %v4345_v21 }
 0x506   :  { %v3896_v47 = vpop.f32.mrb[103].mxu0 }
 0x507   :  { %v5630_v45 = vadd.f32 %v3894_v17, %v5559_v27  ;;  %v3897_v15 = vadd.f32 %v3896_v47, %v3895_v3 }
 0x509   :  { %v2903_v30 = vadd.f32 %v2902_v18, %v5630_v45  ;;  %v2887_v57 = vadd.f32 %v3897_v15, %v5561_v9  ;;  %v4273_v9 = vld [vmem:[%s5777_s14 + $0x20] sm:$0xff]  }
 0x50a   :  { %3957 = vmatpush3.bf16.msra.mxu0 %v4273_v9 }
 0x50b   :  { %v2904_v36 = vadd.f32 %v2903_v30, %v2887_v57  ;;  %v3898_v50 = vpop.f32.mrb[104].mxu0  ;;  %3958 = vmatprep.subr.bf16.mxu0 %v4345_v21 }
 0x50c   :  { %v3899_v27 = vpop.f32.mrb[105].mxu0 }
 0x50d   :  { %v3900_v26 = vadd.f32 %v3899_v27, %v3898_v50  ;;  %v3901_v7 = vpop.f32.mrb[106].mxu0 }
 0x50e   :  { %v3902_v23 = vpop.f32.mrb[107].mxu0  ;;  %3959 = vmatpush3.bf16.msra.mxu0 %v4274_v12 }
 0x50f   :  { %v2888_v5 = vadd.f32 %v3900_v26, %v5567_v4  ;;  %v3903_v39 = vadd.f32 %v3902_v23, %v3901_v7  ;;  %v4275_v4 = vld [vmem:[%s5777_s14 + $0x30] sm:$0xff]   ;;  %3960 = vmatprep.subr.bf16.mxu0 %v4345_v21  ;;  %s4295_s14 = scalar_lea.vmem %s3432_s23, 128 }
 0x510   :  { %p4296_p0 = scmp.ne.s32.totalorder %s3432_s23, %s4295_s14  ;;  %p4301_p2 = scmp.lt.s32.totalorder %s4295_s14, %s4295_s14 }
 0x511   :  { %v2905_v28 = vadd.f32 %v2904_v36, %v2888_v5  ;;  %v2889_v53 = vadd.f32 %v3903_v39, %v5569_v14 }
 0x512   :  { %3961 = vmatpush3.bf16.msra.mxu0 %v4275_v4  ;;  %p4302_p3 = por %p4301_p2, %p4300_p1 }
 0x513   :  { %v2906_v38 = vadd.f32 %v2905_v28, %v2889_v53  ;;  %v3904_v46 = vpop.f32.mrb[108].mxu0  ;;  %3962 = vmatprep.subr.bf16.mxu0 %v4345_v21 }
 0x514   :  { %v3905_v61 = vpop.f32.mrb[109].mxu0  ;;  %p4303_p4 = pnand %p4302_p3, %p4296_p0 }
 0x515   :  { %v3906_v16 = vadd.f32 %v3905_v61, %v3904_v46  ;;  %v3907_v62 = vpop.f32.mrb[110].mxu0 }
 0x516   :  { %v3908_v59 = vpop.f32.mrb[111].mxu0  ;;  %3963 = vmatpush3.bf16.msra.mxu0 %v4276_v20 }
 0x517   :  { %v2890_v14 = vadd.f32 %v3906_v16, %v5575_v0  ;;  %v3909_v13 = vadd.f32 %v3908_v59, %v3907_v62 }
 0x519   :  { %v2907_v37 = vadd.f32 %v2906_v38, %v2890_v14  ;;  %v2891_v29 = vadd.f32 %v3909_v13, %v5577_v32 }
 0x51b   :  { %v2908_v56 = vadd.f32 %v2907_v37, %v2891_v29 }
 0x51d   :  { %v2909_v19 = vrot.slane %v2908_v56, 4 }
 0x51f   :  { %v2910_v0 = vadd.f32 %v2909_v19, %v2908_v56  ;;  %v2892_v19 = vld [vmem:[%s5775_s12] sm:$0x1] }
 0x521   :  { %v2911_v2 = vrot.slane %v2910_v0, 2 }
 0x523   :  { %v2912_v32 = vadd.f32 %v2911_v2, %v2910_v0 }
 0x525   :  { %v2913_v41 = vrot.slane %v2912_v32, 1 }
 0x527   :  { %v2914_v43 = vadd.f32 %v2913_v41, %v2912_v32 }
 0x529   :  { %v2915_v25 = vmul.f32 0.0078125, %v2914_v43 }
 0x52b   :  { %v2916_v33 = vsub.f32 %v5580_v11, %v2915_v25  ;;  %v2917_v42 = vsub.f32 %v5583_v22, %v2915_v25  ;;  %v2918_v44 = vsub.f32 %v5588_v51, %v2915_v25  ;;  %v2919_v55 = vsub.f32 %v5592_v63, %v2915_v25 }
 0x52c   :  { %v2920_v24 = vsub.f32 %v5596_v54, %v2915_v25  ;;  %v2921_v10 = vsub.f32 %v5600_v8, %v2915_v25  ;;  %v2922_v18 = vsub.f32 %v5604_v35, %v2915_v25  ;;  %v2923_v1 = vsub.f32 %v5608_v52, %v2915_v25 }
 0x52d   :  { %v2924_v60 = vsub.f32 %v5612_v58, %v2915_v25  ;;  %v2925_v48 = vsub.f32 %v5621_v6, %v2915_v25  ;;  %v2926_v11 = vsub.f32 %v5630_v45, %v2915_v25  ;;  %v2927_v17 = vsub.f32 %v2887_v57, %v2915_v25 }
 0x52e   :  { %v2928_v22 = vsub.f32 %v2888_v5, %v2915_v25  ;;  %v2929_v3 = vsub.f32 %v2889_v53, %v2915_v25  ;;  %v2930_v51 = vsub.f32 %v2890_v14, %v2915_v25  ;;  %v2931_v47 = vsub.f32 %v2891_v29, %v2915_v25 }
 0x52f   :  { %v2932_v63 = vmul.f32 %v2916_v33, %v2916_v33  ;;  %v2933_v15 = vmul.f32 %v2917_v42, %v2917_v42  ;;  %v2934_v54 = vmul.f32 %v2918_v44, %v2918_v44  ;;  %v2935_v8 = vmul.f32 %v2919_v55, %v2919_v55 }
 0x530   :  { %v2936_v35 = vmul.f32 %v2920_v24, %v2920_v24  ;;  %v2937_v52 = vmul.f32 %v2921_v10, %v2921_v10  ;;  %v2938_v58 = vmul.f32 %v2922_v18, %v2922_v18  ;;  %v2939_v6 = vmul.f32 %v2923_v1, %v2923_v1 }
 0x531   :  { %v2948_v49 = vadd.f32 %v2933_v15, %v2932_v63  ;;  %v2940_v45 = vmul.f32 %v2924_v60, %v2924_v60  ;;  %v2941_v26 = vmul.f32 %v2925_v48, %v2925_v48  ;;  %v2942_v9 = vmul.f32 %v2926_v11, %v2926_v11  ;;  %v3688_v15 = vld [vmem:[%s5776_s13] ss:$0 sm:$0xff] }
 0x532   :  { %v2943_v5 = vmul.f32 %v2927_v17, %v2927_v17  ;;  %v2944_v28 = vmul.f32 %v2928_v22, %v2928_v22  ;;  %v2945_v12 = vmul.f32 %v2929_v3, %v2929_v3  ;;  %v2946_v46 = vmul.f32 %v2930_v51, %v2930_v51 }
 0x533   :  { %v2949_v30 = vadd.f32 %v2948_v49, %v2934_v54  ;;  %v2947_v16 = vmul.f32 %v2931_v47, %v2931_v47 }
 0x535   :  { %v2950_v34 = vadd.f32 %v2949_v30, %v2935_v8 }
 0x537   :  { %v2951_v36 = vadd.f32 %v2950_v34, %v2936_v35 }
 0x539   :  { %v2952_v50 = vadd.f32 %v2951_v36, %v2937_v52 }
 0x53b   :  { %v2953_v27 = vadd.f32 %v2952_v50, %v2938_v58 }
 0x53d   :  { %v2954_v57 = vadd.f32 %v2953_v27, %v2939_v6 }
 0x53f   :  { %v2955_v7 = vadd.f32 %v2954_v57, %v2940_v45 }
 0x541   :  { %v2956_v23 = vadd.f32 %v2955_v7, %v2941_v26 }
 0x543   :  { %v2957_v39 = vadd.f32 %v2956_v23, %v2942_v9 }
 0x545   :  { %v2958_v53 = vadd.f32 %v2957_v39, %v2943_v5 }
 0x547   :  { %v2959_v38 = vadd.f32 %v2958_v53, %v2944_v28 }
 0x549   :  { %v2960_v61 = vadd.f32 %v2959_v38, %v2945_v12 }
 0x54b   :  { %v2961_v62 = vadd.f32 %v2960_v61, %v2946_v46 }
 0x54d   :  { %v2962_v4 = vadd.f32 %v2961_v62, %v2947_v16 }
 0x54f   :  { %v2963_v59 = vrot.slane %v2962_v4, 4 }
 0x551   :  { %v2964_v14 = vadd.f32 %v2963_v59, %v2962_v4 }
 0x553   :  { %v2965_v13 = vrot.slane %v2964_v14, 2 }
 0x555   :  { %v2966_v37 = vadd.f32 %v2965_v13, %v2964_v14 }
 0x557   :  { %v2967_v29 = vrot.slane %v2966_v37, 1 }
 0x559   :  { %v2968_v20 = vadd.f32 %v2967_v29, %v2966_v37 }
 0x55b   :  { %v2969_v56 = vmul.f32 0.0078125, %v2968_v20 }
 0x55d   :  { %v2970_v40 = vadd.f32 1e-05, %v2969_v56 }
 0x55f   :  { %4291 = vrsqrt.f32 %v2970_v40 }
 0x569   :  { %v4292_v0 = vpop.eup %4291 }
 0x56a   :  { %v2972_v2 = vmul.f32 %v4292_v0, %v2892_v19 }
 0x56c   :  { %v2977_v32 = vrot.slane %v2972_v2, %v4776_v31 }
 0x56e   :  { %v2979_v41 = vmul.f32 %v2977_v32, %v2916_v33  ;;  %v2980_v43 = vmul.f32 %v2977_v32, %v2917_v42  ;;  %v2981_v25 = vmul.f32 %v2977_v32, %v2918_v44  ;;  %v2982_v63 = vmul.f32 %v2977_v32, %v2919_v55 }
 0x56f   :  { %v2983_v54 = vmul.f32 %v2977_v32, %v2920_v24  ;;  %v2984_v49 = vmul.f32 %v2977_v32, %v2921_v10  ;;  %v2985_v8 = vmul.f32 %v2977_v32, %v2922_v18  ;;  %v2986_v30 = vmul.f32 %v2977_v32, %v2923_v1 }
 0x570   :  { %v2987_v35 = vmul.f32 %v2977_v32, %v2924_v60  ;;  %v2988_v34 = vmul.f32 %v2977_v32, %v2925_v48  ;;  %v2989_v52 = vmul.f32 %v2977_v32, %v2926_v11  ;;  %v2990_v36 = vmul.f32 %v2977_v32, %v2927_v17 }
 0x571   :  { %v2991_v58 = vmul.f32 %v2977_v32, %v2928_v22  ;;  %v2992_v50 = vmul.f32 %v2977_v32, %v2929_v3  ;;  %v2993_v6 = vmul.f32 %v2977_v32, %v2930_v51  ;;  %v2994_v27 = vmul.f32 %v2977_v32, %v2931_v47 }
 0x572   :  { %v3004_v33 = vadd.f32 %v3688_v15, %v2982_v63  ;;  %v3005_v42 = vadd.f32 %v3688_v15, %v2983_v54  ;;  %v3006_v44 = vadd.f32 %v3688_v15, %v2984_v49  ;;  %v3007_v55 = vadd.f32 %v3688_v15, %v2985_v8 }
 0x573   :  { %v3008_v45 = vadd.f32 %v3688_v15, %v2986_v30  ;;  %v3009_v57 = vadd.f32 %v3688_v15, %v2987_v35  ;;  %v3010_v26 = vadd.f32 %v3688_v15, %v2988_v34  ;;  %v3011_v7 = vadd.f32 %v3688_v15, %v2989_v52 }
 0x574   :  { %v3012_v24 = vadd.f32 %v3688_v15, %v2990_v36  ;;  %v3013_v10 = vadd.f32 %v3688_v15, %v2991_v58  ;;  %v3014_v18 = vadd.f32 %v3688_v15, %v2992_v50  ;;  %v3015_v1 = vadd.f32 %v3688_v15, %v2993_v6 }
 0x575   :  { %v3016_v60 = vadd.f32 %v3688_v15, %v2994_v27  ;;  %v3020_v48 = vmax.f32 %v3004_v33, 0.0  ;;  %v3022_v11 = vmax.f32 %v3006_v44, 0.0  ;;  %v3023_v17 = vmax.f32 %v3007_v55, 0.0 }
 0x576   :  { %v3024_v22 = vmax.f32 %v3008_v45, 0.0  ;;  %v3025_v3 = vmax.f32 %v3009_v57, 0.0  ;;  %v3026_v51 = vmax.f32 %v3010_v26, 0.0  ;;  %v3027_v47 = vmax.f32 %v3011_v7, 0.0 }
 0x577   :  { %v3028_v9 = vmax.f32 %v3012_v24, 0.0  ;;  %v3029_v23 = vmax.f32 %v3013_v10, 0.0  ;;  %v3030_v5 = vmax.f32 %v3014_v18, 0.0  ;;  %v3031_v39 = vmax.f32 %v3015_v1, 0.0 }
 0x578   :  { %v3032_v28 = vmax.f32 %v3016_v60, 0.0  ;;  %v3061_v53 = vadd.f32 %v3026_v51, %v3025_v3  ;;  %v3001_v12 = vadd.f32 %v3688_v15, %v2979_v41  ;;  %v3002_v38 = vadd.f32 %v3688_v15, %v2980_v43 }
 0x579   :  { %v3068_v46 = vadd.f32 %v3028_v9, %v3027_v47  ;;  %v3075_v61 = vadd.f32 %v3030_v5, %v3029_v23  ;;  %v3003_v16 = vadd.f32 %v3688_v15, %v2981_v25  ;;  %v3021_v62 = vmax.f32 %v3005_v42, 0.0 }
 0x57a   :  { %v3082_v4 = vadd.f32 %v3032_v28, %v3031_v39  ;;  %v3017_v59 = vmax.f32 %v3001_v12, 0.0  ;;  %v3018_v14 = vmax.f32 %v3002_v38, 0.0  ;;  %v3054_v13 = vadd.f32 %v3024_v22, %v3023_v17 }
 0x57b   :  { %v3069_v37 = vrot.slane %v3068_v46, 4  ;;  %v3076_v29 = vrot.slane %v3075_v61, 4  ;;  %v3019_v20 = vmax.f32 %v3003_v16, 0.0  ;;  %v3047_v56 = vadd.f32 %v3022_v11, %v3021_v62 }
 0x57c   :  { %v3083_v40 = vrot.slane %v3082_v4, 4  ;;  %v3033_v19 = vadd.f32 %v3018_v14, %v3017_v59  ;;  %v3055_v0 = vrot.slane %v3054_v13, 4  ;;  %v3062_v2 = vrot.slane %v3061_v53, 4 }
 0x57d   :  { %v3077_v32 = vadd.f32 %v3076_v29, %v3075_v61  ;;  %v3040_v63 = vadd.f32 %v3020_v48, %v3019_v20  ;;  %v3048_v41 = vrot.slane %v3047_v56, 4  ;;  %v3070_v43 = vadd.f32 %v3069_v37, %v3068_v46 }
 0x57e   :  { %v3084_v54 = vadd.f32 %v3083_v40, %v3082_v4  ;;  %v3034_v49 = vrot.slane %v3033_v19, 4  ;;  %v3056_v25 = vadd.f32 %v3055_v0, %v3054_v13  ;;  %v3063_v15 = vadd.f32 %v3062_v2, %v3061_v53 }
 0x57f   :  { %v3041_v8 = vrot.slane %v3040_v63, 4  ;;  %v3049_v30 = vadd.f32 %v3048_v41, %v3047_v56  ;;  %v3071_v35 = vrot.slane %v3070_v43, 2  ;;  %v3078_v34 = vrot.slane %v3077_v32, 2 }
 0x580   :  { %v3085_v52 = vrot.slane %v3084_v54, 2  ;;  %v3035_v36 = vadd.f32 %v3034_v49, %v3033_v19  ;;  %v3057_v58 = vrot.slane %v3056_v25, 2  ;;  %v3064_v50 = vrot.slane %v3063_v15, 2 }
 0x581   :  { %v3042_v6 = vadd.f32 %v3041_v8, %v3040_v63  ;;  %v3050_v27 = vrot.slane %v3049_v30, 2  ;;  %v3072_v33 = vadd.f32 %v3071_v35, %v3070_v43  ;;  %v3079_v42 = vadd.f32 %v3078_v34, %v3077_v32 }
 0x582   :  { %v3086_v44 = vadd.f32 %v3085_v52, %v3084_v54  ;;  %v3036_v55 = vrot.slane %v3035_v36, 2  ;;  %v3058_v45 = vadd.f32 %v3057_v58, %v3056_v25  ;;  %v3065_v57 = vadd.f32 %v3064_v50, %v3063_v15 }
 0x583   :  { %v3043_v26 = vrot.slane %v3042_v6, 2  ;;  %v3051_v7 = vadd.f32 %v3050_v27, %v3049_v30  ;;  %v3073_v24 = vrot.slane %v3072_v33, 1  ;;  %v3080_v60 = vrot.slane %v3079_v42, 1 }
 0x584   :  { %v3037_v10 = vadd.f32 %v3036_v55, %v3035_v36  ;;  %v3059_v18 = vrot.slane %v3058_v45, 1  ;;  %v3066_v1 = vrot.slane %v3065_v57, 1  ;;  %v3087_v48 = vrot.slane %v3086_v44, 1  ;;  %v4278_v55 = vld [vmem:[%s5781_s18 + $0x8] sm:$0xff]  }
 0x585   :  { %v3044_v11 = vadd.f32 %v3043_v26, %v3042_v6  ;;  %v3052_v17 = vrot.slane %v3051_v7, 1  ;;  %v3074_v23 = vadd.f32 %v3073_v24, %v3072_v33  ;;  %v3081_v39 = vadd.f32 %v3080_v60, %v3079_v42  ;;  %3971 = vmatpush3.bf16.msra.mxu1 %v4278_v55  ;;  %v4281_v26 = vld [vmem:[%s5781_s18 + $0x20] sm:$0xff]   ;;  %v4283_v24 = vld [vmem:[%s5781_s18 + $0x30] sm:$0xff]  }
 0x586   :  { %v3038_v22 = vrot.slane %v3037_v10, 1  ;;  %v3060_v3 = vadd.f32 %v3059_v18, %v3058_v45  ;;  %v3067_v51 = vadd.f32 %v3066_v1, %v3065_v57  ;;  %v3088_v28 = vadd.f32 %v3087_v48, %v3086_v44  ;;  %3972 = vmatprep.subr.bf16.mxu1 %v4345_v21  ;;  %v4279_v45 = vld [vmem:[%s5781_s18 + $0x10] sm:$0xff]   ;;  %v4280_v57 = vld [vmem:[%s5781_s18 + $0x18] sm:$0xff]   ;;  %v3689_v18 = vld [vmem:[%s5778_s15] ss:$0 sm:$0xff] }
 0x587   :  { %v3045_v47 = vrot.slane %v3044_v11, 1  ;;  %v3053_v9 = vadd.f32 %v3052_v17, %v3051_v7  ;;  %v3095_v62 = vmul.f32 0.0625, %v3074_v23  ;;  %v3096_v59 = vmul.f32 0.0625, %v3081_v39  ;;  %v4282_v7 = vld [vmem:[%s5781_s18 + $0x28] sm:$0xff]  }
 0x588   :  { %v3039_v5 = vadd.f32 %v3038_v22, %v3037_v10  ;;  %v3093_v38 = vmul.f32 0.0625, %v3060_v3  ;;  %v3094_v61 = vmul.f32 0.0625, %v3067_v51  ;;  %v3097_v13 = vmul.f32 0.0625, %v3088_v28  ;;  %v4284_v10 = vld [vmem:[%s5781_s18 + $0x38] sm:$0xff]  }
 0x589   :  { %v3046_v53 = vadd.f32 %v3045_v47, %v3044_v11  ;;  %v3092_v12 = vmul.f32 0.0625, %v3053_v9  ;;  %v3127_v2 = vpack.c.bf16 %v3095_v62, %v3095_v62  ;;  %v3128_v41 = vpack.c.bf16 %v3096_v59, %v3096_v59  ;;  %3973 = vmatpush3.bf16.msra.mxu1 %v4279_v45 }
 0x58a   :  { %v3090_v46 = vmul.f32 0.0625, %v3039_v5  ;;  %v3125_v29 = vpack.c.bf16 %v3093_v38, %v3093_v38  ;;  %v3126_v56 = vpack.c.bf16 %v3094_v61, %v3094_v61  ;;  %v3129_v54 = vpack.c.bf16 %v3097_v13, %v3097_v13  ;;  %3974 = vmatprep.subr.bf16.mxu1 %v4345_v21 }
 0x58b   :  { %v3091_v16 = vmul.f32 0.0625, %v3046_v53  ;;  %v3124_v4 = vpack.c.bf16 %v3092_v12, %v3092_v12  ;;  %v3166_v34 = vunpack.c.l.b16 %v3127_v2  ;;  %v3167_v58 = vunpack.c.l.b16 %v3128_v41 }
 0x58c   :  { %v3122_v14 = vpack.c.bf16 %v3090_v46, %v3090_v46  ;;  %v3164_v49 = vunpack.c.l.b16 %v3125_v29  ;;  %v3165_v8 = vunpack.c.l.b16 %v3126_v56  ;;  %v3168_v6 = vunpack.c.l.b16 %v3129_v54 }
 0x58d   :  { %v3123_v37 = vpack.c.bf16 %v3091_v16, %v3091_v16  ;;  %v3107_v20 = vsel %vm3106_vm4, %v3091_v16, %v3090_v46  ;;  %v3163_v19 = vunpack.c.l.b16 %v3124_v4  ;;  %3975 = vmatpush3.bf16.msra.mxu1 %v4280_v57  ;;  %v3266_v4 = vld [vmem:[%s5779_s16] sm:$0x1] }
 0x58e   :  { %v3161_v40 = vunpack.c.l.b16 %v3122_v14  ;;  %v3109_v0 = vsel %vm3108_vm5, %v3092_v12, %v3107_v20  ;;  %3976 = vmatprep.subr.bf16.mxu1 %v4345_v21 }
 0x58f   :  { %v3162_v32 = vunpack.c.l.b16 %v3123_v37  ;;  %v3111_v63 = vsel %vm3110_vm6, %v3093_v38, %v3109_v0  ;;  %v3698_v37 = vld [vmem:[%s5780_s17] ss:$0 sm:$0xff] }
 0x590   :  { %v3113_v43 = vsel %vm3112_vm7, %v3094_v61, %v3111_v63 }
 0x591   :  { %v3169_v25 = vsel %vm3106_vm4, %v3162_v32, %v3161_v40  ;;  %v3115_v15 = vsel %vm3114_vm8, %v3095_v62, %v3113_v43  ;;  %3977 = vmatpush3.bf16.msra.mxu1 %v4281_v26 }
 0x592   :  { %v3170_v30 = vsel %vm3108_vm5, %v3163_v19, %v3169_v25  ;;  %v3117_v35 = vsel %vm3116_vm9, %v3096_v59, %v3115_v15  ;;  %3978 = vmatprep.subr.bf16.mxu1 %v4345_v21 }
 0x593   :  { %v3171_v52 = vsel %vm3110_vm6, %v3164_v49, %v3170_v30  ;;  %v3119_v36 = vsel %vm3118_vm10, %v3097_v13, %v3117_v35 }
 0x594   :  { %v3172_v50 = vsel %vm3112_vm7, %v3165_v8, %v3171_v52  ;;  %3121 = vst [vmem:[#allocation6] sm:$0xff] %v3119_v36 }
 0x595   :  { %v3173_v27 = vsel %vm3114_vm8, %v3166_v34, %v3172_v50  ;;  %3979 = vmatpush3.bf16.msra.mxu1 %v4282_v7 }
 0x596   :  { %v3174_v33 = vsel %vm3116_vm9, %v3167_v58, %v3173_v27  ;;  %3980 = vmatprep.subr.bf16.mxu1 %v4345_v21 }
 0x597   :  { %v3175_v42 = vsel %vm3118_vm10, %v3168_v6, %v3174_v33 }
 0x598   :  { %v3176_v44 = vpack.c.b16 %v3175_v42, %v3175_v42 }
 0x599   :  { %3981 = vmatpush3.bf16.msra.mxu1 %v4283_v24 }
 0x59a   :  { %3965 = vmatmul.mubr.bf16.vlgmr.msra.gmra.mrb[112].mxu0 %v3176_v44  ;;  %3982 = vmatprep.subr.bf16.mxu1 %v4345_v21 }
 0x59d   :  { %3983 = vmatpush3.bf16.msra.mxu1 %v4284_v10 }
 0x66d   :  { %v3260_v1 = vpop.f32.mrb[112].mxu0 }
 0x66e   :  { %v3261_v60 = vadd.f32 %v3689_v18, %v3260_v1  ;;  %v3966_v48 = vpop.f32.mrb[113].mxu0 }
 0x66f   :  { %v3263_v11 = vpop.f32.mrb[114].mxu0 }
 0x670   :  { %v3268_v17 = vrot.slane %v3261_v60, 4  ;;  %v3967_v22 = vpop.f32.mrb[115].mxu0 }
 0x672   :  { %v3269_v3 = vadd.f32 %v3268_v17, %v3261_v60 }
 0x674   :  { %v3270_v51 = vrot.slane %v3269_v3, 2 }
 0x676   :  { %v3271_v47 = vadd.f32 %v3270_v51, %v3269_v3 }
 0x678   :  { %v3272_v9 = vrot.slane %v3271_v47, 1 }
 0x67a   :  { %v3273_v21 = vadd.f32 %v3272_v9, %v3271_v47 }
 0x67c   :  { %v3274_v23 = vmul.f32 0.125, %v3273_v21 }
 0x67e   :  { %v3275_v5 = vsub.f32 %v3261_v60, %v3274_v23 }
 0x680   :  { %v3276_v39 = vmul.f32 %v3275_v5, %v3275_v5 }
 0x682   :  { %v3277_v28 = vrot.slane %v3276_v39, 4 }
 0x684   :  { %v3278_v53 = vadd.f32 %v3277_v28, %v3276_v39 }
 0x686   :  { %v3279_v12 = vrot.slane %v3278_v53, 2 }
 0x688   :  { %v3280_v38 = vadd.f32 %v3279_v12, %v3278_v53 }
 0x68a   :  { %v3281_v46 = vrot.slane %v3280_v38, 1 }
 0x68c   :  { %v3282_v61 = vadd.f32 %v3281_v46, %v3280_v38 }
 0x68e   :  { %v3283_v16 = vmul.f32 0.125, %v3282_v61 }
 0x690   :  { %v3284_v62 = vadd.f32 1e-05, %v3283_v16 }
 0x692   :  { %4293 = vrsqrt.f32 %v3284_v62 }
 0x69c   :  { %v4294_v59 = vpop.eup %4293 }
 0x69d   :  { %v3286_v14 = vmul.f32 %v4294_v59, %v3266_v4 }
 0x69f   :  { %v3291_v13 = vrot.slane %v3286_v14, %v4776_v31 }
 0x6a1   :  { %v3293_v29 = vmul.f32 %v3291_v13, %v3275_v5 }
 0x6a3   :  { %v3300_v20 = vadd.f32 %v3698_v37, %v3293_v29 }
 0x6a5   :  { %v3301_v56 = vmax.f32 %v3300_v20, 0.0 }
 0x6a7   :  { %v3302_v40 = vpack.c.bf16 %v3301_v56, %v3301_v56 }
 0x6a9   :  { %3985 = vmatmul.mubr.bf16.vlgmr.msra.gmra.mrb[32].mxu1 %v3302_v40 }
 0x6aa   :  { %4306 = shalt.err (!%p4303_p4)
}
 0x6ab   :  { %s4307_s10 = scalar_lea.hbm %s5784_s21, 128 }
 0x6ac   :  { %p4308_p5 = scmp.ne.s32.totalorder %s5784_s21, %s4307_s10  ;;  %p4311_p6 = scmp.lt.u32.totalorder %s4307_s10, %s5784_s21 }
 0x6ae   :  { %p4313_p7 = pnand %p4311_p6, %p4308_p5 }
 0x6b0   :  { %4316 = shalt.err (!%p4313_p7)
}
 0x6b1   :  { %3434 = dma.vmem_to_hbm [thread:$0]  %s3432_s23, 128, %s5784_s21, [#allocation7]   ;;  %v3699_v31 = vld [vmem:[%s5782_s19] ss:$0 sm:$0xff] }
 0x6b2   :  { %s4348_s26 = smov [#allocation4]  }
 0x6b3   :  { %s3421_s27 = sshll.u32 %s4348_s26, 4  ;;  %s3422_s27 = int_to_ptr.vmem [resolvable:$true] %s3421_s27 }
 0x6b4   :  { %s4317_s3 = scalar_lea.vmem %s3422_s27, 128  ;;  %p4322_p9 = scmp.lt.s32.totalorder %s3422_s27, %s3422_s27 }
 0x6b5   :  { %p4318_p8 = scmp.ne.s32.totalorder %s3422_s27, %s4317_s3  ;;  %p4323_p10 = scmp.lt.s32.totalorder %s4317_s3, %s4317_s3 }
 0x6b7   :  { %p4324_p11 = por %p4323_p10, %p4322_p9 }
 0x6b9   :  { %p4325_p12 = pnand %p4324_p11, %p4318_p8 }
 0x77c   :  { %v3408_v19 = vpop.f32.mrb[32].mxu1 }
 0x77d   :  { %v3409_v0 = vadd.f32 %v3699_v31, %v3408_v19  ;;  %v3986_v2 = vpop.f32.mrb[33].mxu1 }
 0x77e   :  { %v3411_v32 = vpop.f32.mrb[34].mxu1 }
 0x77f   :  { %3414 = vst [vmem:[#allocation4] sm:$0xff] %v3409_v0  ;;  %v3987_v63 = vpop.f32.mrb[35].mxu1 }
 0x780   :  { %4328 = shalt.err (!%p4325_p12)
}
 0x781   :  { %s4329_s19 = scalar_lea.hbm %s5783_s20, 128 }
 0x782   :  { %p4330_p13 = scmp.ne.s32.totalorder %s5783_s20, %s4329_s19  ;;  %p4333_p0 = scmp.lt.u32.totalorder %s4329_s19, %s5783_s20 }
 0x784   :  { %p4335_p1 = pnand %p4333_p0, %p4330_p13 }
 0x786   :  { %4338 = shalt.err (!%p4335_p1)
}
 0x787   :  { %3424 = dma.vmem_to_hbm [thread:$0]  %s3422_s27, 128, %s5783_s20, [#allocation5]  }
 0x788   :  { %4339 = dma.done.wait [#allocation5], 128  }
 0x789   :  { %4340 = vsyncadd [#allocation5], 4294967168 }
 0x78a   :  { %4341 = dma.done.wait [#allocation7], 128  }
 0x78b   :  { %4342 = vsyncadd [#allocation7], 4294967168 }
 0x78c   :  { %3441 = vsyncpa [#allocation5], 1 }
 0x78d   :  { %3442 = vsyncpa [#allocation7], 1 }

</bundles_post_ra>
